<compile_context>
chip_gen: v5e
topology: v5e:2x2
jax: 0.10.0
libtpu: 0.0.40
codegen_flags: <defaults>
</compile_context>

<pallas_src>
import functools

import jax
import jax.numpy as jnp
from jax.experimental import pallas as pl
from jax.experimental.pallas import tpu as pltpu


def _pair(v):
    if isinstance(v, (list, tuple)):
        return tuple(v)
    return (v, v)


def _round_up(a, b):
    return (a + b - 1) // b * b


def _vmem_limits():
    """Generation-aware VMEM numbers (v5e/v6e: 128 MiB, v7x: 64 MiB)."""
    cap = 64 * 1024 * 1024  # conservative fallback (v7x-sized)
    try:
        info = pltpu.get_tpu_info()
        cap = int(getattr(info, "vmem_capacity_bytes", cap) or cap)
    except Exception:
        pass
    budget = min(int(cap * 0.40), 64 * 1024 * 1024)    # tile-picking budget
    limit = max(min(int(cap * 0.75), 100 * 1024 * 1024), 32 * 1024 * 1024)
    return budget, limit


def _build_wcat(w0, w1, w2, compute_dtype):
    """Fused weight LHS (Op, 3*K*C); column order = bank-major, then k, then c."""
    O, C, kh, kw = w0.shape
    K = kh * kw
    banks = []
    for w in (w0, w1, w2):
        wt = jnp.transpose(w.astype(jnp.float32), (0, 2, 3, 1)).reshape(O, K * C)
        banks.append(wt)
    wcat = jnp.concatenate(banks, axis=1)                       # (O, 3*K*C)
    Op_mm = _round_up(O, 16)        # bf16 sublane multiple for the matmul LHS
    wcat = jnp.pad(wcat, ((0, Op_mm - O), (0, 0))).astype(compute_dtype)
    return wcat, Op_mm


def _unfold_kmajor(x, kernel_size, stride, padding, dilation):
    """F.unfold equivalent with K-major rows (row = k*C + c). -> (N,K*C,L)."""
    N, C, H, W = x.shape
    kh, kw = kernel_size
    sh, sw = stride
    ph, pw = padding
    dil_h, dil_w = dilation
    out_H = (H + 2 * ph - dil_h * (kh - 1) - 1) // sh + 1
    out_W = (W + 2 * pw - dil_w * (kw - 1) - 1) // sw + 1
    xp = jnp.pad(x, ((0, 0), (0, 0), (ph, ph), (pw, pw)))
    cols = []
    for i in range(kh):
        for j in range(kw):
            patch = xp[:, :,
                       i * dil_h: i * dil_h + sh * out_H: sh,
                       j * dil_w: j * dil_w + sw * out_W: sw]
            cols.append(patch.reshape(N, C, out_H * out_W))
    col = jnp.stack(cols, axis=1)                               # (N, K, C, L)
    return col.reshape(N, kh * kw * C, out_H * out_W), out_H, out_W


# ---------------------------------------------------------------------------
# Shared in-kernel tail: depth masks -> single concatenated-bank MXU matmul.
# ---------------------------------------------------------------------------
def _banked_matmul(scale, dk, x4, w, K):
    """scale: f32 scalar; dk: (K, *S) f32; x4: (K, C, *S); w: (Op, 3*K*C).

    Returns (Op, prod(S)) f32.  Masks use closed intervals (<=) to match the
    reference module's .le() exactly.
    """
    center = dk[K // 2: K // 2 + 1]                  # (1, *S) center-pixel depth
    gr = scale * center                              # grid range
    half = 0.5 * gr
    zero = jnp.zeros((), x4.dtype)
    kc = x4.shape[0] * x4.shape[1]
    sp = x4.shape[2:]

    def bank(shift):
        m = (jnp.abs(dk - shift) <= half)[:, None]             # (K, 1, *S) bool
        return jnp.where(m, x4, zero).reshape((kc,) + tuple(sp))  # (K*C, *S)

    rhs = jnp.concatenate([bank(center + gr), bank(center), bank(center - gr)],
                          axis=0)                              # (3*K*C, *S)
    rhs = rhs.reshape(rhs.shape[0], -1)                        # (3*K*C, TL)
    return jnp.dot(w, rhs, preferred_element_type=jnp.float32)


# ---------------------------------------------------------------------------
# Fused path (stride == 1): unfold happens in VMEM on raw row slabs.
# ---------------------------------------------------------------------------
def _fused_kernel(scale_ref, xm_ref, xh_ref, dm_ref, dhalo_ref, w_ref, out_ref,
                  *, kh, kw, dil_h, dil_w, TH, Wc, Op_out):
    K = kh * kw
    n = pl.program_id(0)
    scale = scale_ref[n]                              # SMEM scalar, read first

    xm = xm_ref[...][0]                               # (C, TH,  Wp) compute dtype
    xh = xh_ref[...][0, 0]                            # (C, hal, Wp)
    dm = dm_ref[...][0]                               # (1, TH,  Wp) f32
    dhl = dhalo_ref[...][0, 0]                        # (1, hal, Wp)

    # Assemble the row-tile + halo slabs (TH is sublane aligned -> clean split).
    x_slab = jnp.concatenate([xm, xh], axis=1)        # (C, TH + hal, Wp)
    d_slab = jnp.concatenate([dm, dhl], axis=1)       # (1, TH + hal, Wp)

    C = x_slab.shape[0]
    xs, ds = [], []
    for i in range(kh):
        r0 = i * dil_h
        for j in range(kw):
            c0 = j * dil_w
            xs.append(x_slab[:, r0:r0 + TH, c0:c0 + Wc])   # (C, TH, Wc)
            ds.append(d_slab[:, r0:r0 + TH, c0:c0 + Wc])   # (1, TH, Wc)
    # K-major stacking; the (K, C, ...) split only touches leading dims (free).
    xk = jnp.concatenate(xs, axis=0).reshape(K, C, TH, Wc)
    dk = jnp.concatenate(ds, axis=0)                        # (K, TH, Wc)

    acc = _banked_matmul(scale, dk, xk, w_ref[...], K)      # (Op_mm, TH*Wc) f32
    out_ref[0] = acc[:Op_out].astype(out_ref.dtype)


def _pick_row_tile(*, C, K, Op_mm, Op_out, Wc, Wp, hal, out_H, xb, budget):
    """Largest row tile (multiple of 16) whose working set fits the budget."""
    cap = max(16, _round_up(out_H, 16))
    best, th = 16, 16
    while th <= cap:
        tl = th * Wc
        per_step = (
            2 * (C * th * Wp * xb + C * hal * Wp * xb + th * Wp * 4 + hal * Wp * 4)
            + 2 * Op_mm * 3 * K * C * xb                  # resident weights
            + 2 * Op_out * tl * 4                         # output blocks
            + C * (th + hal) * Wp * xb + (th + hal) * Wp * 4   # slab temporaries
            + K * C * th * Wc * xb + K * th * Wc * 4      # shifted views
            + 3 * K * th * Wc * 4                         # masks
            + 2 * 3 * K * C * tl * xb                     # banked rhs + flatten
            + Op_mm * tl * 4)                             # f32 accumulator
        if per_step <= budget:
            best = th
        th += 16
    return best


def _fused_forward(x, depth, fx, w0, w1, w2, *, kernel_size, padding, dilation,
                   pixel_size, compute_dtype, out_dtype):
    N, C, H, W = x.shape
    O = w0.shape[0]
    kh, kw = kernel_size
    ph, pw = padding
    dil_h, dil_w = dilation
    K = kh * kw
    xb = jnp.dtype(compute_dtype).itemsize

    out_H = H + 2 * ph - dil_h * (kh - 1)
    out_W = W + 2 * pw - dil_w * (kw - 1)

    Wc = _round_up(out_W, 8)              # computed output columns per row
    Wp = Wc + dil_w * (kw - 1)            # padded input width
    hal = max(dil_h * (kh - 1), 1)        # halo rows below each row tile

    wcat, Op_mm = _build_wcat(w0, w1, w2, compute_dtype)
    Op_out = _round_up(O, 8)

    budget, vmem_limit = _vmem_limits()
    TH = _pick_row_tile(C=C, K=K, Op_mm=Op_mm, Op_out=Op_out, Wc=Wc, Wp=Wp,
                        hal=hal, out_H=out_H, xb=xb, budget=budget)
    num_t = -(-out_H // TH)
    Hp = num_t * TH + hal
    TL = TH * Wc                          # multiple of 128 (TH%16==0, Wc%8==0)
    L_flat = num_t * TL

    # Zero padding (matches F.unfold's zero padding; extra rows/cols only feed
    # output pixels that are sliced off below).
    x_pad = jnp.pad(x.astype(compute_dtype),
                    ((0, 0), (0, 0), (ph, Hp - H - ph), (pw, Wp - W - pw)))
    d_pad = jnp.pad(depth.astype(jnp.float32),
                    ((0, 0), (0, 0), (ph, Hp - H - ph), (pw, Wp - W - pw)))
    # Small halo tensors: rows [t*TH + TH, t*TH + TH + hal) of each image.
    x_halo = jnp.stack([x_pad[:, :, (t + 1) * TH:(t + 1) * TH + hal, :]
                        for t in range(num_t)], axis=1)   # (N, num_t, C, hal, Wp)
    d_halo = jnp.stack([d_pad[:, :, (t + 1) * TH:(t + 1) * TH + hal, :]
                        for t in range(num_t)], axis=1)   # (N, num_t, 1, hal, Wp)

    scale = (jnp.float32(pixel_size) / fx.astype(jnp.float32)).reshape(N)

    kernel = functools.partial(_fused_kernel, kh=kh, kw=kw, dil_h=dil_h,
                               dil_w=dil_w, TH=TH, Wc=Wc, Op_out=Op_out)
    out_bytes = jnp.dtype(out_dtype).itemsize
    bytes_accessed = int(x_pad.size * xb + x_halo.size * xb + d_pad.size * 4
                         + d_halo.size * 4 + wcat.size * xb
                         + N * Op_out * L_flat * out_bytes)

    out = pl.pallas_call(
        kernel,
        out_shape=jax.ShapeDtypeStruct((N, Op_out, L_flat), out_dtype),
        grid=(N, num_t),
        in_specs=[
            pl.BlockSpec(memory_space=pltpu.MemorySpace.SMEM),           # scale
            pl.BlockSpec((1, C, TH, Wp), lambda n, t: (n, 0, t, 0)),     # x rows
            pl.BlockSpec((1, 1, C, hal, Wp), lambda n, t: (n, t, 0, 0, 0)),  # x halo
            pl.BlockSpec((1, 1, TH, Wp), lambda n, t: (n, 0, t, 0)),     # depth rows
            pl.BlockSpec((1, 1, 1, hal, Wp), lambda n, t: (n, t, 0, 0, 0)),  # d halo
            # Resident fused weights (constant index_map -> no re-DMA).  Small
            # enough that double-buffering costs negligible VMEM.
            pl.BlockSpec((Op_mm, 3 * K * C), lambda n, t: (0, 0)),
        ],
        out_specs=pl.BlockSpec((1, Op_out, TL), lambda n, t: (n, 0, t)),
        compiler_params=pltpu.CompilerParams(
            # TODO(synk): on v7x, CORE_PARALLEL on a grid axis would shard the
            # loop across both TensorCores; plain "parallel" kept for safety.
            dimension_semantics=("parallel", "parallel"),
            vmem_limit_bytes=vmem_limit),
        cost_estimate=pl.CostEstimate(
            flops=2 * N * O * 3 * K * C * out_H * out_W, transcendentals=0,
            bytes_accessed=bytes_accessed),
    )(scale, x_pad, x_halo, d_pad, d_halo, wcat)

    out = out.reshape(N, Op_out, num_t * TH, Wc)
    return out[:, :O, :out_H, :out_W]


# ---------------------------------------------------------------------------
# General-stride fallback: im2col in HBM (previous, validated structure) with
# the same K-major layout / single concatenated matmul.
# ---------------------------------------------------------------------------
def _im2col_kernel(scale_ref, xcol_ref, dcol_ref, w_ref, out_ref, *, K, Op_out):
    n = pl.program_id(0)
    scale = scale_ref[n]
    xc = xcol_ref[0]                                  # (K*C, TL) compute dtype
    dc = dcol_ref[0]                                  # (K,   TL) f32
    x4 = xc.reshape(K, xc.shape[0] // K, xc.shape[-1])
    acc = _banked_matmul(scale, dc, x4, w_ref[...], K)
    out_ref[0] = acc[:Op_out].astype(out_ref.dtype)


def _pick_l_tile(*, C, K, Op_mm, Op_out, xb, budget):
    best = 128
    for tl in (128, 256, 512, 1024, 2048, 4096, 8192):
        per_step = (2 * K * C * tl * xb + 2 * K * tl * 4 + 2 * Op_out * tl * 4
                    + 2 * Op_mm * 3 * K * C * xb
                    + 8 * K * C * tl * xb + 4 * K * tl * 4 + Op_mm * tl * 4)
        if per_step <= budget:
            best = tl
    return best


def _im2col_forward(x, depth, fx, w0, w1, w2, *, kernel_size, stride, padding,
                    dilation, pixel_size, compute_dtype, out_dtype):
    N, C, H, W = x.shape
    O = w0.shape[0]
    kh, kw = kernel_size
    K = kh * kw
    xb = jnp.dtype(compute_dtype).itemsize

    x_col, out_H, out_W = _unfold_kmajor(x.astype(compute_dtype), kernel_size,
                                         stride, padding, dilation)
    d_col, _, _ = _unfold_kmajor(depth.astype(jnp.float32), kernel_size,
                                 stride, padding, dilation)
    L = out_H * out_W

    wcat, Op_mm = _build_wcat(w0, w1, w2, compute_dtype)
    Op_out = _round_up(O, 8)
    budget, vmem_limit = _vmem_limits()
    TL = min(_pick_l_tile(C=C, K=K, Op_mm=Op_mm, Op_out=Op_out, xb=xb,
                          budget=budget), _round_up(L, 128))
    Lp = _round_up(L, TL)
    x_col = jnp.pad(x_col, ((0, 0), (0, 0), (0, Lp - L)))
    d_col = jnp.pad(d_col, ((0, 0), (0, 0), (0, Lp - L)))
    scale = (jnp.float32(pixel_size) / fx.astype(jnp.float32)).reshape(N)

    kernel = functools.partial(_im2col_kernel, K=K, Op_out=Op_out)
    out = pl.pallas_call(
        kernel,
        out_shape=jax.ShapeDtypeStruct((N, Op_out, Lp), out_dtype),
        grid=(N, Lp // TL),
        in_specs=[
            pl.BlockSpec(memory_space=pltpu.MemorySpace.SMEM),
            pl.BlockSpec((1, K * C, TL), lambda n, l: (n, 0, l)),
            pl.BlockSpec((1, K, TL), lambda n, l: (n, 0, l)),
            pl.BlockSpec((Op_mm, 3 * K * C), lambda n, l: (0, 0)),
        ],
        out_specs=pl.BlockSpec((1, Op_out, TL), lambda n, l: (n, 0, l)),
        compiler_params=pltpu.CompilerParams(
            dimension_semantics=("parallel", "parallel"),
            vmem_limit_bytes=vmem_limit),
        cost_estimate=pl.CostEstimate(
            flops=2 * N * O * 3 * K * C * L, transcendentals=0,
            bytes_accessed=int(x_col.size * xb + d_col.size * 4 + wcat.size * xb
                               + N * Op_out * Lp
                               * jnp.dtype(out_dtype).itemsize)),
    )(scale, x_col, d_col, wcat)
    return out[:, :O, :L].reshape(N, O, out_H, out_W)


def conv2_5d_depth_forward(x, depth, fx, w0, w1, w2, *, kernel_size, stride,
                           padding, dilation, pixel_size,
                           compute_dtype=jnp.bfloat16, out_dtype=jnp.float32):
    fx = jnp.asarray(fx).reshape(-1)
    if tuple(stride) == (1, 1):
        return _fused_forward(x, depth, fx, w0, w1, w2,
                              kernel_size=kernel_size, padding=padding,
                              dilation=dilation, pixel_size=pixel_size,
                              compute_dtype=compute_dtype, out_dtype=out_dtype)
    return _im2col_forward(x, depth, fx, w0, w1, w2, kernel_size=kernel_size,
                           stride=stride, padding=padding, dilation=dilation,
                           pixel_size=pixel_size, compute_dtype=compute_dtype,
                           out_dtype=out_dtype)


class Conv2_5D_depth:
    """JAX/Pallas port of the PyTorch Conv2_5D_depth module."""

    def __init__(self, in_channels, out_channels, kernel_size, stride=1,
                 padding=0, dilation=1, bias=False, pixel_size=1,
                 is_graph=False, compute_dtype=jnp.bfloat16,
                 out_dtype=jnp.float32, key=None):
        self.in_channels = in_channels
        self.out_channels = out_channels
        self.kernel_size = _pair(kernel_size)
        self.kernel_size_prod = self.kernel_size[0] * self.kernel_size[1]
        assert self.kernel_size_prod % 2 == 1
        self.stride = _pair(stride)
        self.padding = _pair(padding)
        self.dilation = _pair(dilation)
        self.pixel_size = pixel_size
        self.compute_dtype = compute_dtype
        self.out_dtype = out_dtype
        # TODO(synk): is_graph weights (O,1,kh,kw) and the bias branch are not
        # implemented (the reference forward's `if self.bias:` is itself
        # broken); only the default dense, bias-less path is supported.
        assert not is_graph
        assert not bias
        if key is None:
            key = jax.random.PRNGKey(0)
        k0, k1, k2 = jax.random.split(key, 3)
        wshape = (out_channels, in_channels, *self.kernel_size)
        # Deterministic synthetic init (the module never specifies an init).
        self.weight_0 = 0.1 * jax.random.normal(k0, wshape, dtype=jnp.float32)
        self.weight_1 = 0.1 * jax.random.normal(k1, wshape, dtype=jnp.float32)
        self.weight_2 = 0.1 * jax.random.normal(k2, wshape, dtype=jnp.float32)

    def __call__(self, x, depth, camera_params):
        fx = camera_params['intrinsic']['fx']
        return conv2_5d_depth_forward(
            x, depth, fx, self.weight_0, self.weight_1, self.weight_2,
            kernel_size=self.kernel_size, stride=self.stride,
            padding=self.padding, dilation=self.dilation,
            pixel_size=self.pixel_size, compute_dtype=self.compute_dtype,
            out_dtype=self.out_dtype)


def _reference(x, depth, fx, w0, w1, w2, *, kernel_size, stride, padding,
               dilation, pixel_size):
    """Pure-JAX f32 reference mirroring the PyTorch forward."""
    N, C, H, W = x.shape
    O = w0.shape[0]
    kh, kw = kernel_size
    K = kh * kw
    x_col, out_H, out_W = _unfold_kmajor(x.astype(jnp.float32), kernel_size,
                                         stride, padding, dilation)
    d_col, _, _ = _unfold_kmajor(depth.astype(jnp.float32), kernel_size,
                                 stride, padding, dilation)
    L = out_H * out_W
    x4 = x_col.reshape(N, K, C, L)
    center = d_col[:, K // 2: K // 2 + 1, :]                      # (N, 1, L)
    scale = (jnp.float32(pixel_size)
             / jnp.asarray(fx, jnp.float32).reshape(-1)).reshape(N, 1, 1)
    gr = scale * center
    half = 0.5 * gr

    def masked(shift):
        m = (jnp.abs(d_col - shift) <= half).astype(jnp.float32)  # (N, K, L)
        return x4 * m[:, :, None, :]

    out = jnp.einsum('ock,nkcl->nol', w0.reshape(O, C, K), masked(center + gr))
    out += jnp.einsum('ock,nkcl->nol', w1.reshape(O, C, K), masked(center))
    out += jnp.einsum('ock,nkcl->nol', w2.reshape(O, C, K), masked(center - gr))
    return out.reshape(N, O, out_H, out_W)


if __name__ == "__main__":
    key = jax.random.PRNGKey(0)
    kx, kd, kw_ = jax.random.split(key, 3)

    N, C, H, W = 2, 4, 16, 16
    O = 8
    x = jax.random.normal(kx, (N, C, H, W), dtype=jnp.float32)
    # Positive depths (meters-ish) so the per-pixel grid range is well defined.
    depth = 0.5 + 2.0 * jax.random.uniform(kd, (N, 1, H, W), dtype=jnp.float32)
    camera_params = {'intrinsic': {'fx': jnp.array([500.0, 620.0],
                                                   dtype=jnp.float32)}}

    module = Conv2_5D_depth(C, O, kernel_size=3, stride=1, padding=1,
                            dilation=1, bias=False, pixel_size=1, key=kw_)

    out = jax.block_until_ready(module(x, depth, camera_params))

    ref = _reference(x, depth, camera_params['intrinsic']['fx'],
                     module.weight_0, module.weight_1, module.weight_2,
                     kernel_size=module.kernel_size, stride=module.stride,
                     padding=module.padding, dilation=module.dilation,
                     pixel_size=module.pixel_size)
    assert out.shape == (N, O, H, W), out.shape
    # Mask/grid-range math is exact f32 in both paths; the only drift is bf16
    # rounding of x / weights with f32 MXU accumulation.
    err = float(jnp.max(jnp.abs(out - ref)))
    assert err < 3e-2, err

    print("KERNEL_OK")
</pallas_src>

<mosaic_0001>
module attributes {stable_mosaic.version = 11 : i64} {
  func.func @_fused_kernel(%arg0: i32, %arg1: i32, %arg2: memref<2xf32, #tpu.memory_space<smem>>, %arg3: memref<1x4x16x18xbf16, #tpu.memory_space<vmem>>, %arg4: memref<1x1x4x2x18xbf16, #tpu.memory_space<vmem>>, %arg5: memref<1x1x16x18xf32, #tpu.memory_space<vmem>>, %arg6: memref<1x1x1x2x18xf32, #tpu.memory_space<vmem>>, %arg7: memref<16x108xbf16, #tpu.memory_space<vmem>>, %arg8: memref<1x8x256xf32, #tpu.memory_space<vmem>>) attributes {dimension_semantics = [#tpu.dimension_semantics<parallel>, #tpu.dimension_semantics<parallel>], iteration_bounds = array<i64: 2, 1>, scalar_prefetch = 0 : i64, scratch_operands = 0 : i64, tpu.core_type = #tpu.core_type<tc>, window_params = [{transform_indices = @transform_0, window_bounds = array<i64: 2>}, {transform_indices = @transform_1, window_bounds = array<i64: 1, 4, 16, 18>}, {transform_indices = @transform_2, window_bounds = array<i64: 1, 1, 4, 2, 18>}, {transform_indices = @transform_3, window_bounds = array<i64: 1, 1, 16, 18>}, {transform_indices = @transform_4, window_bounds = array<i64: 1, 1, 1, 2, 18>}, {pipeline_mode = #tpu.pipeline_mode<synchronous>, transform_indices = @transform_5, window_bounds = array<i64: 16, 108>}, {transform_indices = @transform_6, window_bounds = array<i64: 1, 8, 256>}]} {
    %0 = arith.index_cast %arg0 : i32 to index
    %1 = memref.load %arg2[%0] : memref<2xf32, #tpu.memory_space<smem>>
    %c0 = arith.constant 0 : index
    %c0_0 = arith.constant 0 : index
    %c0_1 = arith.constant 0 : index
    %c0_2 = arith.constant 0 : index
    %2 = vector.load %arg3[%c0, %c0_0, %c0_1, %c0_2] : memref<1x4x16x18xbf16, #tpu.memory_space<vmem>>, vector<1x4x16x18xbf16>
    %3 = vector.shape_cast %2 : vector<1x4x16x18xbf16> to vector<4x16x18xbf16>
    %c0_3 = arith.constant 0 : index
    %c0_4 = arith.constant 0 : index
    %c0_5 = arith.constant 0 : index
    %c0_6 = arith.constant 0 : index
    %c0_7 = arith.constant 0 : index
    %4 = vector.load %arg4[%c0_3, %c0_4, %c0_5, %c0_6, %c0_7] : memref<1x1x4x2x18xbf16, #tpu.memory_space<vmem>>, vector<1x1x4x2x18xbf16>
    %5 = vector.shape_cast %4 : vector<1x1x4x2x18xbf16> to vector<4x2x18xbf16>
    %c0_8 = arith.constant 0 : index
    %c0_9 = arith.constant 0 : index
    %c0_10 = arith.constant 0 : index
    %c0_11 = arith.constant 0 : index
    %6 = vector.load %arg5[%c0_8, %c0_9, %c0_10, %c0_11] : memref<1x1x16x18xf32, #tpu.memory_space<vmem>>, vector<1x1x16x18xf32>
    %7 = vector.shape_cast %6 : vector<1x1x16x18xf32> to vector<1x16x18xf32>
    %c0_12 = arith.constant 0 : index
    %c0_13 = arith.constant 0 : index
    %c0_14 = arith.constant 0 : index
    %c0_15 = arith.constant 0 : index
    %c0_16 = arith.constant 0 : index
    %8 = vector.load %arg6[%c0_12, %c0_13, %c0_14, %c0_15, %c0_16] : memref<1x1x1x2x18xf32, #tpu.memory_space<vmem>>, vector<1x1x1x2x18xf32>
    %9 = vector.shape_cast %8 : vector<1x1x1x2x18xf32> to vector<1x2x18xf32>
    %10 = tpu.concatenate %3, %5 in 1 : vector<4x16x18xbf16>, vector<4x2x18xbf16> -> vector<4x18x18xbf16>
    %11 = tpu.concatenate %7, %9 in 1 : vector<1x16x18xf32>, vector<1x2x18xf32> -> vector<1x18x18xf32>
    %12 = vector.extract_strided_slice %10 {offsets = [0, 0, 0], sizes = [4, 16, 16], strides = [1, 1, 1]} : vector<4x18x18xbf16> to vector<4x16x16xbf16>
    %13 = vector.extract_strided_slice %11 {offsets = [0, 0, 0], sizes = [1, 16, 16], strides = [1, 1, 1]} : vector<1x18x18xf32> to vector<1x16x16xf32>
    %14 = vector.extract_strided_slice %10 {offsets = [0, 0, 1], sizes = [4, 16, 16], strides = [1, 1, 1]} : vector<4x18x18xbf16> to vector<4x16x16xbf16>
    %15 = vector.extract_strided_slice %11 {offsets = [0, 0, 1], sizes = [1, 16, 16], strides = [1, 1, 1]} : vector<1x18x18xf32> to vector<1x16x16xf32>
    %16 = vector.extract_strided_slice %10 {offsets = [0, 0, 2], sizes = [4, 16, 16], strides = [1, 1, 1]} : vector<4x18x18xbf16> to vector<4x16x16xbf16>
    %17 = vector.extract_strided_slice %11 {offsets = [0, 0, 2], sizes = [1, 16, 16], strides = [1, 1, 1]} : vector<1x18x18xf32> to vector<1x16x16xf32>
    %18 = vector.extract_strided_slice %10 {offsets = [0, 1, 0], sizes = [4, 16, 16], strides = [1, 1, 1]} : vector<4x18x18xbf16> to vector<4x16x16xbf16>
    %19 = vector.extract_strided_slice %11 {offsets = [0, 1, 0], sizes = [1, 16, 16], strides = [1, 1, 1]} : vector<1x18x18xf32> to vector<1x16x16xf32>
    %20 = vector.extract_strided_slice %10 {offsets = [0, 1, 1], sizes = [4, 16, 16], strides = [1, 1, 1]} : vector<4x18x18xbf16> to vector<4x16x16xbf16>
    %21 = vector.extract_strided_slice %11 {offsets = [0, 1, 1], sizes = [1, 16, 16], strides = [1, 1, 1]} : vector<1x18x18xf32> to vector<1x16x16xf32>
    %22 = vector.extract_strided_slice %10 {offsets = [0, 1, 2], sizes = [4, 16, 16], strides = [1, 1, 1]} : vector<4x18x18xbf16> to vector<4x16x16xbf16>
    %23 = vector.extract_strided_slice %11 {offsets = [0, 1, 2], sizes = [1, 16, 16], strides = [1, 1, 1]} : vector<1x18x18xf32> to vector<1x16x16xf32>
    %24 = vector.extract_strided_slice %10 {offsets = [0, 2, 0], sizes = [4, 16, 16], strides = [1, 1, 1]} : vector<4x18x18xbf16> to vector<4x16x16xbf16>
    %25 = vector.extract_strided_slice %11 {offsets = [0, 2, 0], sizes = [1, 16, 16], strides = [1, 1, 1]} : vector<1x18x18xf32> to vector<1x16x16xf32>
    %26 = vector.extract_strided_slice %10 {offsets = [0, 2, 1], sizes = [4, 16, 16], strides = [1, 1, 1]} : vector<4x18x18xbf16> to vector<4x16x16xbf16>
    %27 = vector.extract_strided_slice %11 {offsets = [0, 2, 1], sizes = [1, 16, 16], strides = [1, 1, 1]} : vector<1x18x18xf32> to vector<1x16x16xf32>
    %28 = vector.extract_strided_slice %10 {offsets = [0, 2, 2], sizes = [4, 16, 16], strides = [1, 1, 1]} : vector<4x18x18xbf16> to vector<4x16x16xbf16>
    %29 = vector.extract_strided_slice %11 {offsets = [0, 2, 2], sizes = [1, 16, 16], strides = [1, 1, 1]} : vector<1x18x18xf32> to vector<1x16x16xf32>
    %30 = tpu.concatenate %12, %14, %16, %18, %20, %22, %24, %26, %28 in 0 : vector<4x16x16xbf16>, vector<4x16x16xbf16>, vector<4x16x16xbf16>, vector<4x16x16xbf16>, vector<4x16x16xbf16>, vector<4x16x16xbf16>, vector<4x16x16xbf16>, vector<4x16x16xbf16>, vector<4x16x16xbf16> -> vector<36x16x16xbf16>
    %31 = vector.shape_cast %30 : vector<36x16x16xbf16> to vector<9x4x16x16xbf16>
    %32 = tpu.concatenate %13, %15, %17, %19, %21, %23, %25, %27, %29 in 0 : vector<1x16x16xf32>, vector<1x16x16xf32>, vector<1x16x16xf32>, vector<1x16x16xf32>, vector<1x16x16xf32>, vector<1x16x16xf32>, vector<1x16x16xf32>, vector<1x16x16xf32>, vector<1x16x16xf32> -> vector<9x16x16xf32>
    %c0_17 = arith.constant 0 : index
    %c0_18 = arith.constant 0 : index
    %33 = vector.load %arg7[%c0_17, %c0_18] : memref<16x108xbf16, #tpu.memory_space<vmem>>, vector<16x108xbf16>
    %34 = vector.extract_strided_slice %32 {offsets = [4, 0, 0], sizes = [1, 16, 16], strides = [1, 1, 1]} : vector<9x16x16xf32> to vector<1x16x16xf32>
    %35 = vector.broadcast %1 : f32 to vector<1x16x16xf32>
    %36 = arith.mulf %35, %34 : vector<1x16x16xf32>
    %cst = arith.constant 5.000000e-01 : f32
    %37 = vector.broadcast %cst : f32 to vector<1x16x16xf32>
    %38 = arith.mulf %37, %36 : vector<1x16x16xf32>
    %39 = arith.addf %34, %36 : vector<1x16x16xf32>
    %40 = vector.broadcast %39 : vector<1x16x16xf32> to vector<9x16x16xf32>
    %41 = arith.subf %32, %40 : vector<9x16x16xf32>
    %42 = math.absf %41 : vector<9x16x16xf32>
    %43 = vector.broadcast %38 : vector<1x16x16xf32> to vector<9x16x16xf32>
    %44 = arith.cmpf ole, %42, %43 : vector<9x16x16xf32>
    %45 = vector.shape_cast %44 : vector<9x16x16xi1> to vector<9x1x16x16xi1>
    %cst_19 = arith.constant 0.000000e+00 : bf16
    %46 = vector.shape_cast %45 : vector<9x1x16x16xi1> to vector<9x1x16x16xi1>
    %47 = vector.broadcast %46 : vector<9x1x16x16xi1> to vector<9x4x16x16xi1>
    %48 = vector.broadcast %cst_19 : bf16 to vector<9x4x16x16xbf16>
    %49 = arith.select %47, %31, %48 : vector<9x4x16x16xi1>, vector<9x4x16x16xbf16>
    %50 = vector.shape_cast %49 : vector<9x4x16x16xbf16> to vector<36x16x16xbf16>
    %51 = vector.broadcast %34 : vector<1x16x16xf32> to vector<9x16x16xf32>
    %52 = arith.subf %32, %51 : vector<9x16x16xf32>
    %53 = math.absf %52 : vector<9x16x16xf32>
    %54 = vector.broadcast %38 : vector<1x16x16xf32> to vector<9x16x16xf32>
    %55 = arith.cmpf ole, %53, %54 : vector<9x16x16xf32>
    %56 = vector.shape_cast %55 : vector<9x16x16xi1> to vector<9x1x16x16xi1>
    %cst_20 = arith.constant 0.000000e+00 : bf16
    %57 = vector.shape_cast %56 : vector<9x1x16x16xi1> to vector<9x1x16x16xi1>
    %58 = vector.broadcast %57 : vector<9x1x16x16xi1> to vector<9x4x16x16xi1>
    %59 = vector.broadcast %cst_20 : bf16 to vector<9x4x16x16xbf16>
    %60 = arith.select %58, %31, %59 : vector<9x4x16x16xi1>, vector<9x4x16x16xbf16>
    %61 = vector.shape_cast %60 : vector<9x4x16x16xbf16> to vector<36x16x16xbf16>
    %62 = arith.subf %34, %36 : vector<1x16x16xf32>
    %63 = vector.broadcast %62 : vector<1x16x16xf32> to vector<9x16x16xf32>
    %64 = arith.subf %32, %63 : vector<9x16x16xf32>
    %65 = math.absf %64 : vector<9x16x16xf32>
    %66 = vector.broadcast %38 : vector<1x16x16xf32> to vector<9x16x16xf32>
    %67 = arith.cmpf ole, %65, %66 : vector<9x16x16xf32>
    %68 = vector.shape_cast %67 : vector<9x16x16xi1> to vector<9x1x16x16xi1>
    %cst_21 = arith.constant 0.000000e+00 : bf16
    %69 = vector.shape_cast %68 : vector<9x1x16x16xi1> to vector<9x1x16x16xi1>
    %70 = vector.broadcast %69 : vector<9x1x16x16xi1> to vector<9x4x16x16xi1>
    %71 = vector.broadcast %cst_21 : bf16 to vector<9x4x16x16xbf16>
    %72 = arith.select %70, %31, %71 : vector<9x4x16x16xi1>, vector<9x4x16x16xbf16>
    %73 = vector.shape_cast %72 : vector<9x4x16x16xbf16> to vector<36x16x16xbf16>
    %74 = tpu.concatenate %50, %61, %73 in 0 : vector<36x16x16xbf16>, vector<36x16x16xbf16>, vector<36x16x16xbf16> -> vector<108x16x16xbf16>
    %75 = vector.shape_cast %74 : vector<108x16x16xbf16> to vector<108x256xbf16>
    %cst_22 = arith.constant dense<0.000000e+00> : vector<16x256xf32>
    %76 = tpu.matmul %33, %75, %cst_22 {dimension_numbers = #tpu.dot_dimension_numbers<[1], [0], [0], [1], [0, 0, 1, 1], [], []>} : vector<16x108xbf16>, vector<108x256xbf16>, vector<16x256xf32> -> vector<16x256xf32>
    %77 = vector.extract_strided_slice %76 {offsets = [0, 0], sizes = [8, 256], strides = [1, 1]} : vector<16x256xf32> to vector<8x256xf32>
    %c0_23 = arith.constant 0 : index
    %c0_24 = arith.constant 0 : index
    %c0_25 = arith.constant 0 : index
    %78 = vector.load %arg8[%c0_23, %c0_24, %c0_25] : memref<1x8x256xf32, #tpu.memory_space<vmem>>, vector<1x8x256xf32>
    %79 = vector.shape_cast %78 : vector<1x8x256xf32> to vector<8x256xf32>
    %80 = vector.shape_cast %77 : vector<8x256xf32> to vector<1x8x256xf32>
    tpu.vector_store %arg8[%c0_23, %c0_24, %c0_25], %80 {strides = array<i32>} : memref<1x8x256xf32, #tpu.memory_space<vmem>>, vector<1x8x256xf32>,
    return
  }
  func.func @transform_0(%arg0: i32, %arg1: i32) -> i32 {
    %c0_i32 = arith.constant 0 : i32
    %c0_i32_0 = arith.constant 0 : i32
    return %c0_i32 : i32
  }
  func.func @transform_1(%arg0: i32, %arg1: i32) -> (i32, i32, i32, i32) {
    %c0_i32 = arith.constant 0 : i32
    %c0_i32_0 = arith.constant 0 : i32
    %c0_i32_1 = arith.constant 0 : i32
    return %arg0, %c0_i32, %arg1, %c0_i32_0 : i32, i32, i32, i32
  }
  func.func @transform_2(%arg0: i32, %arg1: i32) -> (i32, i32, i32, i32, i32) {
    %c0_i32 = arith.constant 0 : i32
    %c0_i32_0 = arith.constant 0 : i32
    %c0_i32_1 = arith.constant 0 : i32
    %c0_i32_2 = arith.constant 0 : i32
    return %arg0, %arg1, %c0_i32, %c0_i32_0, %c0_i32_1 : i32, i32, i32, i32, i32
  }
  func.func @transform_3(%arg0: i32, %arg1: i32) -> (i32, i32, i32, i32) {
    %c0_i32 = arith.constant 0 : i32
    %c0_i32_0 = arith.constant 0 : i32
    %c0_i32_1 = arith.constant 0 : i32
    return %arg0, %c0_i32, %arg1, %c0_i32_0 : i32, i32, i32, i32
  }
  func.func @transform_4(%arg0: i32, %arg1: i32) -> (i32, i32, i32, i32, i32) {
    %c0_i32 = arith.constant 0 : i32
    %c0_i32_0 = arith.constant 0 : i32
    %c0_i32_1 = arith.constant 0 : i32
    %c0_i32_2 = arith.constant 0 : i32
    return %arg0, %arg1, %c0_i32, %c0_i32_0, %c0_i32_1 : i32, i32, i32, i32, i32
  }
  func.func @transform_5(%arg0: i32, %arg1: i32) -> (i32, i32) {
    %c0_i32 = arith.constant 0 : i32
    %c0_i32_0 = arith.constant 0 : i32
    %c0_i32_1 = arith.constant 0 : i32
    return %c0_i32, %c0_i32_0 : i32, i32
  }
  func.func @transform_6(%arg0: i32, %arg1: i32) -> (i32, i32, i32) {
    %c0_i32 = arith.constant 0 : i32
    %c0_i32_0 = arith.constant 0 : i32
    return %arg0, %c0_i32, %arg1 : i32, i32, i32
  }
}

</mosaic_0001>

<bundles_post_ra>
// kernel: tpu_custom_call.1
= control target key start
LH: loop header
LB: loop body
LE: loop exit
PB: predicated region body
PF: predicated region fallthrough
CT: control target
= control target key end

     0   :  { %11 = vsyncpa [#allocation4], 0  ;;  %s7430_s0 = inlined_call_operand.vmem [shape: f32[2], index: 0, kind: input, shape index: {}]   ;;  %s7431_s1 = inlined_call_operand.vmem [shape: bf16[2,4,18,18], index: 1, kind: input, shape index: {}]   ;;  %s7432_s2 = inlined_call_operand.vmem [shape: bf16[2,1,4,2,18], index: 2, kind: input, shape index: {}]   ;;  %s7433_s3 = inlined_call_operand.vmem [shape: f32[2,1,18,18], index: 3, kind: input, shape index: {}]   ;;  %s7434_s4 = inlined_call_operand.vmem [shape: f32[2,1,1,2,18], index: 4, kind: input, shape index: {}]   ;;  %s7435_s5 = inlined_call_operand.vmem [shape: bf16[16,108], index: 5, kind: input, shape index: {}]   ;;  %s7436_s6 = inlined_call_operand.hbm [shape: f32[2,8,256], index: 6, kind: output, shape index: {}]  }
   0x1   :  { %12 = vsyncpa [#allocation3], 0 }
   0x2   :  { %14 = vsyncpa [#allocation3 + $0x1], 0  ;;  %s4375_s21 = smov 0   ;;  %s4377_s22 = smov 0  }
   0x3   :  { %s4379_s23 = smov 0   ;;  %s4381_s24 = smov 0  }
   0x4   :  { %s4383_s25 = smov 0   ;;  %s4385_s26 = smov 0  }
   0x5 LB: > { %s4035_s27 = sadd.s32 4294967295, %s4321_s26   ;;  %s4036_s28 = sadd.s32 4294967294, %s4321_s26   ;;  %s4321_s26 = sphi %s4385_s26, %s20_s26   ;;  %s4317_s25 = sphi %s4383_s25, %s8144_s25   ;;  %s4313_s24 = sphi %s4381_s24, %s8143_s24   ;;  %s4309_s23 = sphi %s4379_s23, %s8142_s23   ;;  %s4305_s22 = sphi %s4377_s22, %s8141_s22   ;;  %s4301_s21 = sphi %s4375_s21, %s8140_s21  }
   0x6   : > { %s32_s29 = sadd.s32 1, %s4317_s25  ;;  %s62_s30 = sadd.s32 1, %s4309_s23 }
   0x7   : > { %p34_p0 = scmp.ge.s32.totalorder %s32_s29, 2  ;;  %p69_p1 = scmp.ne.s32.totalorder %s4309_s23, %s4305_s22 }
   0x8   : > { %p70_p2 = scmp.eq.s32.totalorder %s4321_s26, 0  ;;  %p206_p3 = scmp.eq.s32.totalorder %s4035_s27, 1 }
   0x9   : > { %s8146_s29 = smov (%p34_p0, %s32_s29), 0  ;;  %p211_p6 = scmp.ne.s32.totalorder %s4305_s22, %s4301_s21 }
   0xa   : > { %p4414_p4 = por %p70_p2, %p69_p1  ;;  %p4418_p5 = por %p206_p3, %p69_p1 }
   0xb   : > { %s57_s9 = ssub.s32 %s4317_s25, %s8146_s29  ;;  %p212_p8 = scmp.eq.s32.totalorder %s4036_s28, 1 }
   0xc   : > { %p60_p7 = scmp.eq.s32.totalorder %s57_s9, 0  ;;  %p4037_p9 = scmp.ge.s32.totalorder %s4321_s26, 1 }
   0xd   : > { %p219_p10 = scmp.lt.s32.totalorder %s4321_s26, 3  ;;  %p4431_p11 = por %p212_p8, %p211_p6 }
   0xe   : > { %s4429_s10 = scalar_select %p60_p7, %s4309_s23, %s62_s30  }
   0xf   : > { %p4435_p12 = pnand %p4037_p9, %p219_p10  ;;  %p4439_p13 = scmp.eq.s32.totalorder %s4035_s27, 0 }
  0x10   : > { %s231_s16 = sshll.u32 %s7430_s0, 4  ;;  %s4327_s17 = smov [#allocation2]   ;;  %s232_s16 = int_to_ptr.vmem [resolvable:$true] %s231_s16 }
  0x11   : > { %p4098_p0 = pneg %p4435_p12  ;;  %p4039_p2 = scmp.ge.s32.totalorder %s4321_s26, 2 }
  0x13   : > { %p4099_p1 = pnand %p4439_p13, %p4098_p0  ;;  %241 = sbr.rel (%p4039_p2) target bundleno = 39 (0x27), region = 24 }
  0x15   : > { %4101 = dma.vmem_to_smem (!%p4099_p1), %s232_s16, 16, %s4327_s17, [#allocation4]  }
  0x18   : > { %244 = sbr.rel (!%p4414_p4) target bundleno = 39 (0x27), region = 28  ;;  %s246_s18 = sand.u32 (%p4414_p4), 1, %s4309_s23  }
  0x19   : > { %s4090_s19 = smul.u32 (%p4414_p4), 48, %s4317_s25  ;;  %s4040_s20 = sshll.u32 (%p4414_p4), %s246_s18, 5 }
  0x1a   : > { %s248_s9 = scalar_lea.vmem (%p4414_p4), [#allocation5], %s4040_s20   ;;  %s4323_s14 = smov (%p4414_p4), 0  }
  0x1b   : > { %s258_s30 = scalar_lea.vmem (%p4414_p4), %s7431_s1, %s4090_s19  }
  0x1d LB: >> { %v278_v0 = vld [vmem:[%s258_s30] sm:$0xf]  ;;  %v280_v1 = vld [vmem:[%s258_s30 + $0x4] sm:$0xf]  ;;  %v282_v2 = vld [vmem:[%s258_s30 + $0xc] sm:$0xf]  ;;  %s4325_s14 = sphi %s4323_s14, %s272_s14  }
  0x1e   : >> { %279 = vst [vmem:[%s248_s9] sm:$0xf] %v278_v0  ;;  %v284_v3 = vld [vmem:[%s258_s30 + $0x10] sm:$0xf]  ;;  %v286_v4 = vld [vmem:[%s258_s30 + $0x18] sm:$0xf]  ;;  %s272_s14 = sadd.s32 1, %s4325_s14  }
  0x1f   : >> { %281 = vst [vmem:[%s248_s9 + $0x4] sm:$0xf] %v280_v1  ;;  %v288_v5 = vld [vmem:[%s258_s30 + $0x1c] sm:$0xf]  ;;  %v290_v6 = vld [vmem:[%s258_s30 + $0x24] sm:$0xf] }
  0x20   : >> { %283 = vst [vmem:[%s248_s9 + $0x8] sm:$0xf] %v282_v2  ;;  %v292_v7 = vld [vmem:[%s258_s30 + $0x28] sm:$0xf]  ;;  %p271_p3 = scmp.ge.s32.totalorder %s272_s14, 1 }
  0x21   : >> { %285 = vst [vmem:[%s248_s9 + $0xc] sm:$0xf] %v284_v3 }
  0x22   : >> { %287 = vst [vmem:[%s248_s9 + $0x10] sm:$0xf] %v286_v4  ;;  %274 = sbr.rel (!%p271_p3) target bundleno = 29 (0x1d), region = 174 }
  0x23   : >> { %289 = vst [vmem:[%s248_s9 + $0x14] sm:$0xf] %v288_v5 }
  0x24   : >> { %291 = vst [vmem:[%s248_s9 + $0x18] sm:$0xf] %v290_v6 }
  0x25   : >> { %293 = vst [vmem:[%s248_s9 + $0x1c] sm:$0xf] %v292_v7 }
  0x27 PF: > { %488 = sbr.rel (%p4435_p12) target bundleno = 916 (0x394), region = 102 }
  0x2c   : > { %4292 = dma.done.wait (%p4439_p13), [#allocation4], 16  }
  0x2d   : > { %4294 = vsyncadd (%p4439_p13), [#allocation4], 4294967280  ;;  %s4467_s7 = sand.u32 1, %s4305_s22  }
  0x2e   : > { %s4052_s15 = sshll.u32 %s4467_s7, 5 }
  0x2f   : > { %s4470_s16 = scalar_lea.vmem [#allocation5], %s4052_s15 }
  0x30   : > { %502 = sfence }
  0x31   : > { %v4473_v8 = vld [vmem:[%s4470_s16 + $0x10] sm:$0xff]  ;;  %v4476_v9 = vld [vmem:[%s4470_s16] sm:$0xff]  ;;  %p559_p4 = scmp.lt.s32.totalorder %s4313_s24, 1  ;;  %s4328_s12 = smov 127   ;;  %v4491_v11 = vld [vmem:[%s4470_s16 + $0x18] sm:$0xff]  ;;  %vm739_vm1 = vcmask 1046528  }
  0x32   : > { %638 = vrot.lane.b32.xlu1 %v4473_v8, %s4328_s12  ;;  %634 = vrot.lane.b32.xlu0 %v4476_v9, %s4328_s12  ;;  %s4329_s13 = smov 126   ;;  %v662_v10 = vshll.u32 %v4476_v9, 16  ;;  %v4085_v12 = vld [vmem:[%s4470_s16 + $0x8] sm:$0xff]  ;;  %v660_v14 = vshrl.u32 %v4476_v9, 16  ;;  %v686_v17 = vshll.u32 %v4473_v8, 16  ;;  %v698_v23 = vshll.u32 %v4491_v11, 16 }
  0x33   : > { %646 = vrot.lane.b32.xlu2 %v4476_v9, %s4329_s13  ;;  %s4486_s17 = scalar_select %p559_p4, %s4313_s24, 1  ;;  %v674_v18 = vshll.u32 %v4085_v12, 16  ;;  %vm658_vm0 = vsmask.f32 7424  ;;  %v684_v25 = vshrl.u32 %v4473_v8, 16  ;;  %v672_v26 = vshrl.u32 %v4085_v12, 16 }
  0x34   : > { %v664_v15 = vrot.slane %v662_v10, 1  ;;  %v688_v27 = vrot.slane %v686_v17, 1  ;;  %v696_v32 = vshrl.u32 %v4491_v11, 16  ;;  %v700_v33 = vrot.slane %v698_v23, 1  ;;  %s4338_s30 = smov 96   ;;  %s4339_s9 = smov 112  }
  0x35   : > { %s4054_s18 = sshll.u32 %s4486_s17, 2  ;;  %v676_v29 = vrot.slane %v674_v18, 1  ;;  %v740_v44 = vrot.slane %v4476_v9, 1  ;;  %v743_v46 = vrot.slane %v4085_v12, 1  ;;  %v749_v50 = vrot.slane %v4491_v11, 1  ;;  %s4091_s28 = smul.u32 24, %s4486_s17 }
  0x36   : > { %s566_s27 = scalar_lea.vmem %s7432_s2, %s4054_s18  ;;  %v665_v21 = vor.u32 %v664_v15, %v660_v14  ;;  %v689_v35 = vor.u32 %v688_v27, %v684_v25  ;;  %v701_v39 = vor.u32 %v700_v33, %v696_v32  ;;  %v746_v52 = vrot.slane %v4473_v8, 1  ;;  %s4056_s15 = sshll.u32 %s4486_s17, 1 }
  0x37   : > { %v603_v13 = vld [vmem:[%s566_s27] sm:$0x1]  ;;  %v605_v19 = vld [vmem:[%s566_s27 + $0x2] sm:$0x1]  ;;  %v604_v20 = vld [vmem:[%s566_s27 + $0x1] sm:$0x1]  ;;  %v677_v37 = vor.u32 %v676_v29, %v672_v26  ;;  %s4573_s14 = scalar_lea.vmem %s7433_s3, %s4091_s28  ;;  %s591_s20 = scalar_lea.vmem %s7434_s4, %s4056_s15 }
  0x38   : > { %v667_v16 = vshll.u32 %v603_v13, 16  ;;  %v606_v24 = vld [vmem:[%s566_s27 + $0x3] sm:$0x1]  ;;  %v691_v28 = vshll.u32 %v605_v19, 16  ;;  %v679_v30 = vshll.u32 %v604_v20, 16  ;;  %v741_v45 = vrot.slane %v603_v13, 1 }
  0x39   : > { %v703_v34 = vshll.u32 %v606_v24, 16  ;;  %v744_v47 = vrot.slane %v604_v20, 1  ;;  %v750_v51 = vrot.slane %v606_v24, 1  ;;  %v747_v53 = vrot.slane %v605_v19, 1  ;;  %v4577_v56 = vld [vmem:[%s4573_s14 + $0x8] sm:$0xff]  ;;  %v4580_v57 = vld [vmem:[%s4573_s14] sm:$0xff] }
  0x3a   : > { %640 = vrot.lane.b32.xlu1 %v4491_v11, %s4328_s12  ;;  %636 = vrot.lane.b32.xlu0 %v4085_v12, %s4328_s12  ;;  %v669_v22 = vrot.slane %v667_v16, 1  ;;  %v693_v36 = vrot.slane %v691_v28, 1  ;;  %v681_v38 = vrot.slane %v679_v30, 1  ;;  %v4538_v48 = vsel %vm739_vm1, %v740_v44, %v741_v45  ;;  %7673 = vst [vmem:[#allocation17_spill] sm:$0xff] %v4577_v56  ;;  %v609_v60 = vld [vmem:[%s591_s20] sm:$0x3] }
  0x3b   : > { %648 = vrot.lane.b32.xlu2 %v4085_v12, %s4329_s13  ;;  %v705_v40 = vrot.slane %v703_v34, 1  ;;  %7669 = vst [vmem:[#allocation13_spill] sm:$0xff] %v4538_v48  ;;  %v4541_v49 = vsel %vm739_vm1, %v743_v46, %v744_v47  ;;  %v4552_v54 = vsel %vm739_vm1, %v749_v50, %v750_v51  ;;  %v4555_v55 = vsel %vm739_vm1, %v746_v52, %v747_v53  ;;  %s4334_s17 = smov 64   ;;  %s4335_s27 = smov 48  }
  0x3c   : > { %v4506_v31 = vsel %vm658_vm0, %v665_v21, %v669_v22  ;;  %v4516_v41 = vsel %vm658_vm0, %v689_v35, %v693_v36  ;;  %v4519_v42 = vsel %vm658_vm0, %v677_v37, %v681_v38  ;;  %7670 = vst [vmem:[#allocation14_spill] sm:$0xff] %v4541_v49  ;;  %v796_v58 = vrot.slane %v4580_v57, 1  ;;  %s4337_s28 = smov 80   ;;  %s4053_s18 = sshll.u32 %s4467_s7, 4 }
  0x3d   : > { %7665 = vst [vmem:[#allocation9_spill] sm:$0xff] %v4506_v31  ;;  %v4522_v43 = vsel %vm658_vm0, %v701_v39, %v705_v40  ;;  %v797_v59 = vrot.slane %v4577_v56, 1  ;;  %v799_v61 = vrot.slane %v609_v60, 1  ;;  %v816_v0 = vrot.slane %v4580_v57, 2  ;;  %s4089_s19 = sshll.u32 %s4313_s24, 4  ;;  %s4243_s15 = scalar_lea.hbm %s7436_s6, 32 }
  0x3e   : > { %7666 = vst [vmem:[#allocation10_spill] sm:$0xff] %v4516_v41  ;;  %v817_v1 = vrot.slane %v4577_v56, 2  ;;  %vm815_vm2 = vcmask 1045504   ;;  %v819_v3 = vrot.slane %v609_v60, 2 }
  0x3f   : > { %7667 = vst [vmem:[#allocation11_spill] sm:$0xff] %v4519_v42  ;;  %v4594_v62 = vsel %vm739_vm1, %v796_v58, %v797_v59  ;;  %v4601_v63 = vsel %vm739_vm1, %v797_v59, %v799_v61 }
  0x40   : > { %7668 = vst [vmem:[#allocation12_spill] sm:$0xff] %v4522_v43  ;;  %v4612_v2 = vsel %vm815_vm2, %v816_v0, %v817_v1  ;;  %v4617_v4 = vsel %vm815_vm2, %v817_v1, %v819_v3 }
  0x41   : > { %7671 = vst [vmem:[#allocation15_spill] sm:$0xff] %v4552_v54 }
  0x42   : > { %652 = vrot.lane.b32.xlu1 %v4491_v11, %s4329_s13  ;;  %650 = vrot.lane.b32.xlu0 %v4473_v8, %s4329_s13  ;;  %7672 = vst [vmem:[#allocation16_spill] sm:$0xff] %v4555_v55 }
  0x43   : > { %711 = vrot.lane.b32.xlu2 %v4506_v31, %s4328_s12  ;;  %7674 = vst [vmem:[#allocation18_spill] sm:$0xff] %v4580_v57 }
  0x44   : > { %7675 = vst [vmem:[#allocation19_spill] sm:$0xff] %v4594_v62 }
  0x45   : > { %7676 = vst [vmem:[#allocation20_spill] sm:$0xff] %v4601_v63 }
  0x46   : > { %7677 = vst [vmem:[#allocation21_spill] sm:$0xff] %v4612_v2 }
  0x47   : > { %7678 = vst [vmem:[#allocation22_spill] sm:$0xff] %v4617_v4 }
  0x4a   : > { %715 = vrot.lane.b32.xlu1 %v4516_v41, %s4328_s12  ;;  %713 = vrot.lane.b32.xlu0 %v4519_v42, %s4328_s12 }
  0x4b   : > { %717 = vrot.lane.b32.xlu2 %v4522_v43, %s4328_s12 }
  0x52   : > { %725 = vrot.lane.b32.xlu1 %v4519_v42, %s4329_s13  ;;  %723 = vrot.lane.b32.xlu0 %v4506_v31, %s4329_s13 }
  0x53   : > { %727 = vrot.lane.b32.xlu2 %v4516_v41, %s4329_s13 }
  0x5a   : > { %756 = vrot.lane.b32.xlu1 %v4538_v48, %s4328_s12  ;;  %729 = vrot.lane.b32.xlu0 %v4522_v43, %s4329_s13 }
  0x5b   : > { %758 = vrot.lane.b32.xlu2 %v4541_v49, %s4328_s12 }
  0x62   : > { %762 = vrot.lane.b32.xlu1 %v4552_v54, %s4328_s12  ;;  %760 = vrot.lane.b32.xlu0 %v4555_v55, %s4328_s12 }
  0x63   : > { %768 = vrot.lane.b32.xlu2 %v4538_v48, %s4329_s13 }
  0x6a   : > { %772 = vrot.lane.b32.xlu1 %v4555_v55, %s4329_s13  ;;  %770 = vrot.lane.b32.xlu0 %v4541_v49, %s4329_s13 }
  0x6b   : > { %774 = vrot.lane.b32.xlu2 %v4552_v54, %s4329_s13 }
  0x72   : > { %784 = vrot.lane.b32.xlu1 %v4577_v56, %s4328_s12  ;;  %782 = vrot.lane.b32.xlu0 %v4580_v57, %s4328_s12 }
  0x73   : > { %788 = vrot.lane.b32.xlu2 %v4580_v57, %s4329_s13 }
  0x7a   : > { %803 = vrot.lane.b32.xlu1 %v4594_v62, %s4328_s12  ;;  %790 = vrot.lane.b32.xlu0 %v4577_v56, %s4329_s13 }
  0x7b   : > { %805 = vrot.lane.b32.xlu2 %v4601_v63, %s4328_s12 }
  0x82   : > { %811 = vrot.lane.b32.xlu1 %v4601_v63, %s4329_s13  ;;  %809 = vrot.lane.b32.xlu0 %v4594_v62, %s4329_s13 }
  0x83   : > { %823 = vrot.lane.b32.xlu2 %v4612_v2, %s4328_s12 }
  0x8a   : > { %829 = vrot.lane.b32.xlu1 %v4612_v2, %s4329_s13  ;;  %825 = vrot.lane.b32.xlu0 %v4617_v4, %s4328_s12  ;;  %s594_s12 = sld [smem:[#allocation2 + %s4313_s24]] }
  0x8b   : > { %831 = vrot.lane.b32.xlu2 %v4617_v4, %s4329_s13  ;;  %s4332_s13 = smov 32  }
  0x8d   : > { %v4625_v5 = vpop.permute.xlu2 %646 }
  0x90   : > { %v837_v30 = vstv %s594_s12 }
  0x95   : > { %v4627_v6 = vpop.permute.xlu2 %648 }
  0x9d   : > { %v4629_v7 = vpop.permute.xlu2 %711 }
  0x9e   : > { %7679 = vst [vmem:[#allocation23_spill] sm:$0xff] %v4629_v7 }
  0xa4   : > { %v4631_v8 = vpop.permute.xlu1 %638  ;;  %v4633_v9 = vpop.permute.xlu0 %634 }
  0xa5   : > { %7680 = vst [vmem:[#allocation24_spill] sm:$0xff] %v4631_v8  ;;  %v4635_v10 = vpop.permute.xlu2 %717 }
  0xa6   : > { %7681 = vst [vmem:[#allocation25_spill] sm:$0xff] %v4633_v9 }
  0xa7   : > { %7682 = vst [vmem:[#allocation26_spill] sm:$0xff] %v4635_v10 }
  0xac   : > { %v4637_v11 = vpop.permute.xlu1 %640  ;;  %v4639_v12 = vpop.permute.xlu0 %636 }
  0xad   : > { %7683 = vst [vmem:[#allocation27_spill] sm:$0xff] %v4637_v11  ;;  %v4641_v13 = vpop.permute.xlu2 %727 }
  0xae   : > { %7684 = vst [vmem:[#allocation28_spill] sm:$0xff] %v4639_v12 }
  0xb4   : > { %v653_v14 = vpop.permute.xlu1 %652  ;;  %v651_v15 = vpop.permute.xlu0 %650 }
  0xb5   : > { %v4647_v18 = vpop.permute.xlu2 %758 }
  0xbc   : > { %v4643_v16 = vpop.permute.xlu1 %715  ;;  %v4645_v17 = vpop.permute.xlu0 %713 }
  0xbd   : > { %7685 = vst [vmem:[#allocation29_spill] sm:$0xff] %v4643_v16  ;;  %v4653_v21 = vpop.permute.xlu2 %768 }
  0xbe   : > { %7686 = vst [vmem:[#allocation30_spill] sm:$0xff] %v4645_v17 }
  0xc4   : > { %v4649_v19 = vpop.permute.xlu1 %725  ;;  %v4651_v20 = vpop.permute.xlu0 %723 }
  0xc5   : > { %v4659_v24 = vpop.permute.xlu2 %774 }
  0xcc   : > { %v4655_v22 = vpop.permute.xlu1 %756  ;;  %v4657_v23 = vpop.permute.xlu0 %729 }
  0xcd   : > { %v789_v27 = vpop.permute.xlu2 %788 }
  0xd4   : > { %v4661_v25 = vpop.permute.xlu1 %762  ;;  %v4663_v26 = vpop.permute.xlu0 %760 }
  0xd5   : > { %v4674_v34 = vpop.permute.xlu2 %805 }
  0xd6   : > { %v839_v35 = vmul.f32 %v837_v30, %v4674_v34 }
  0xd8   : > { %v4678_v36 = vadd.f32 %v839_v35, %v4674_v34  ;;  %v4681_v37 = vsub.f32 %v4674_v34, %v839_v35  ;;  %v4698_v53 = vmul.f32 0.5, %v839_v35 }
  0xda   : > { %7688 = vst [vmem:[#allocation32_spill] sm:$0xff] %v4681_v37  ;;  %v853_v56 = vsub.f32 %v4674_v34, %v4678_v36 }
  0xdc   : > { %v4665_v28 = vpop.permute.xlu1 %772  ;;  %v4667_v29 = vpop.permute.xlu0 %770 }
  0xdd   : > { %v4704_v3 = vpop.permute.xlu2 %823 }
  0xe4   : > { %v4670_v32 = vpop.permute.xlu1 %784  ;;  %v4672_v33 = vpop.permute.xlu0 %782 }
  0xe5   : > { %7687 = vst [vmem:[#allocation31_spill] sm:$0xff] %v4672_v33  ;;  %v1119_v48 = vsub.f32 %v4670_v32, %v4681_v37 }
  0xec   : > { %v4683_v38 = vpop.permute.xlu1 %803  ;;  %v791_v39 = vpop.permute.xlu0 %790 }
  0xed   : > { %v838_v40 = vmul.f32 %v837_v30, %v4683_v38  ;;  %v849_v44 = vsub.f32 %v791_v39, %v4678_v36  ;;  %v983_v45 = vsub.f32 %v789_v27, %v4683_v38  ;;  %v984_v46 = vsub.f32 %v791_v39, %v4674_v34 }
  0xee   : > { %v1121_v47 = vsub.f32 %v791_v39, %v4681_v37 }
  0xef   : > { %v4690_v50 = vmul.f32 0.5, %v838_v40  ;;  %v4693_v51 = vadd.f32 %v838_v40, %v4683_v38  ;;  %v4696_v52 = vsub.f32 %v4683_v38, %v838_v40  ;;  %v1001_v58 = vand.u32 2147483647, %v983_v45 }
  0xf0   : > { %v1002_v59 = vand.u32 2147483647, %v984_v46  ;;  %v867_v61 = vand.u32 2147483647, %v849_v44  ;;  %v1139_v1 = vand.u32 2147483647, %v1121_v47 }
  0xf1   : > { %7689 = vst [vmem:[#allocation33_spill] sm:$0xff] %v4696_v52  ;;  %v848_v60 = vsub.f32 %v789_v27, %v4693_v51  ;;  %v1120_v0 = vsub.f32 %v789_v27, %v4696_v52  ;;  %vm1019_vm3 = vcmp.le.f32.partialorder %v1001_v58, %v4690_v50  ;;  %v1123_v27 = vsub.f32 %v4601_v63, %v4681_v37 }
  0xf2   : > { %vm1020_vm4 = vcmp.le.f32.partialorder %v1002_v59, %v4698_v53  ;;  %vm885_vm7 = vcmp.le.f32.partialorder %v867_v61, %v4698_v53  ;;  %vm1157_vm10 = vcmp.le.f32.partialorder %v1139_v1, %v4698_v53  ;;  %v852_v17 = vsub.f32 %v4683_v38, %v4693_v51 }
  0xf3   : > { %v866_v30 = vand.u32 2147483647, %v848_v60  ;;  %vm4706_vm5 = vmpackc.low %vm1020_vm4, %vm1019_vm3  ;;  %v1138_v35 = vand.u32 2147483647, %v1120_v0  ;;  %v1141_v9 = vand.u32 2147483647, %v1123_v27 }
  0xf4   : > { %v1088_v40 = vsel %vm4706_vm5, %v651_v15, 0  ;;  %v1089_v44 = vsel %vm4706_vm5, %v653_v14, 0 }
  0xf5   : > { %vm884_vm6 = vcmp.le.f32.partialorder %v866_v30, %v4690_v50  ;;  %vm1156_vm8 = vcmp.le.f32.partialorder %v1138_v35, %v4690_v50  ;;  %v4720_v45 = vpack.i.b16 %v1089_v44, %v1088_v40  ;;  %v1439_v30 = vshrl.u32 %v1088_v40, 16 }
  0xf6   : > { %vm936_vm9 = vmpackc.low %vm885_vm7, %vm884_vm6  ;;  %v1440_v33 = vshrl.u32 %v1089_v44, 16  ;;  %v847_v40 = vsub.f32 %v4670_v32, %v4678_v36  ;;  %v832_v44 = vpop.permute.xlu2 %831  ;;  %vm1159_vm12 = vcmp.le.f32.partialorder %v1141_v9, %v4698_v53 }
  0xf7   : > { %7692 = vst [vmem:[#allocation34_spill] sm:$0xff] %v4720_v45  ;;  %v4723_v46 = vsel %vm936_vm9, %v4625_v5, 0  ;;  %v4726_v47 = vsel %vm936_vm9, %v4627_v6, 0  ;;  %v953_v58 = vsel %vm936_vm9, %v651_v15, 0  ;;  %v954_v59 = vsel %vm936_vm9, %v653_v14, 0  ;;  %vm4728_vm11 = vmpackc.low %vm1157_vm10, %vm1156_vm8 }
  0xf8   : > { %v1225_v61 = vsel %vm4728_vm11, %v651_v15, 0  ;;  %v1226_v0 = vsel %vm4728_vm11, %v653_v14, 0  ;;  %v1287_v1 = vshrl.u32 %v4723_v46, 16  ;;  %v1288_v35 = vshrl.u32 %v4726_v47, 16 }
  0xf9   : > { %v4738_v11 = vpack.i.b16 %v954_v59, %v953_v58  ;;  %v1295_v8 = vshrl.u32 %v953_v58, 16  ;;  %v1296_v12 = vshrl.u32 %v954_v59, 16  ;;  %v1122_v15 = vsub.f32 %v4594_v62, %v4696_v52 }
  0xfa   : > { %v4744_v57 = vpack.i.b16 %v1288_v35, %v1287_v1  ;;  %v4748_v49 = vpack.i.b16 %v1226_v0, %v1225_v61  ;;  %v1583_v58 = vshrl.u32 %v1225_v61, 16  ;;  %v1584_v27 = vshrl.u32 %v1226_v0, 16  ;;  %v812_v1 = vpop.permute.xlu1 %811 }
  0xfb   : > { %7695 = vst [vmem:[#allocation35_spill] sm:$0xff] %v4738_v11  ;;  %v4746_v14 = vpack.i.b16 %v1296_v12, %v1295_v8  ;;  %v4752_v11 = vpack.i.b16 %v1440_v33, %v1439_v30  ;;  %v982_v59 = vsub.f32 %v4670_v32, %v4674_v34  ;;  %v1140_v8 = vand.u32 2147483647, %v1122_v15 }
  0xfc   : > { %7696 = vst [vmem:[#allocation36_spill] sm:$0xff] %v4744_v57  ;;  %v4758_v35 = vpack.i.b16 %v1584_v27, %v1583_v58  ;;  %v861_v12 = vsub.f32 %v832_v44, %v4678_v36  ;;  %v4762_v33 = vand.u32 2147483647, %v853_v56  ;;  %v4764_v61 = vand.u32 2147483647, %v847_v40 }
  0xfd   : > { %7697 = vst [vmem:[#allocation37_spill] sm:$0xff] %v4746_v14  ;;  %v810_v14 = vpop.permute.xlu0 %809  ;;  %v996_v0 = vsub.f32 %v832_v44, %v4674_v34  ;;  %v1133_v30 = vsub.f32 %v832_v44, %v4681_v37  ;;  %v855_v57 = vsub.f32 %v812_v1, %v4678_v36  ;;  %v4769_v32 = vand.u32 2147483647, %v982_v59 }
  0xfe   : > { %7698 = vst [vmem:[#allocation38_spill] sm:$0xff] %v4748_v49  ;;  %v4771_v58 = vand.u32 2147483647, %v1119_v48  ;;  %v990_v15 = vsub.f32 %v812_v1, %v4674_v34  ;;  %v1127_v27 = vsub.f32 %v812_v1, %v4681_v37  ;;  %v854_v56 = vsub.f32 %v810_v14, %v4693_v51 }
  0xff   : > { %7699 = vst [vmem:[#allocation39_spill] sm:$0xff] %v4752_v11  ;;  %v989_v40 = vsub.f32 %v810_v14, %v4683_v38  ;;  %vm1158_vm13 = vcmp.le.f32.partialorder %v1140_v8, %v4690_v50  ;;  %v1086_v44 = vsel %vm4706_vm5, %v4625_v5, 0  ;;  %v4782_v59 = vand.u32 2147483647, %v861_v12 }
 0x100   : > { %7700 = vst [vmem:[#allocation40_spill] sm:$0xff] %v4758_v35  ;;  %v873_v35 = vand.u32 2147483647, %v855_v57  ;;  %v1145_v48 = vand.u32 2147483647, %v1127_v27  ;;  %v1087_v1 = vsel %vm4706_vm5, %v4627_v6, 0  ;;  %vm4796_vm15 = vmpackc.low %vm1159_vm12, %vm1158_vm13  ;;  %vm889_vm4 = vcmp.le.f32.partialorder %v4762_v33, %v4698_v53 }
 0x101   : > { %7701 = vst [vmem:[#allocation41_spill] sm:$0xff] %v4764_v61  ;;  %v1126_v61 = vsub.f32 %v810_v14, %v4696_v52  ;;  %v872_v57 = vand.u32 2147483647, %v854_v56  ;;  %v4790_v14 = vand.u32 2147483647, %v1133_v30  ;;  %v7704_v12 = vmov 0 }
 0x102   : > { %7702 = vst [vmem:[#allocation42_spill] sm:$0xff] %v4769_v32  ;;  %vm891_vm14 = vcmp.le.f32.partialorder %v873_v35, %v4698_v53  ;;  %v4788_v32 = vand.u32 2147483647, %v996_v0  ;;  %v1008_v8 = vand.u32 2147483647, %v990_v15  ;;  %v7705_v12 = vsel %vm4796_vm15, 4294967295, %v7704_v12 }
 0x103   : > { %7703 = vst [vmem:[#allocation43_spill] sm:$0xff] %v4771_v58  ;;  %v1144_v58 = vand.u32 2147483647, %v1126_v61  ;;  %vm1163_vm0 = vcmp.le.f32.partialorder %v1145_v48, %v4698_v53  ;;  %vm890_vm1 = vcmp.le.f32.partialorder %v872_v57, %v4690_v50  ;;  %v1007_v39 = vand.u32 2147483647, %v989_v40  ;;  %v830_v57 = vpop.permute.xlu1 %829 }
 0x104   : > { %7706 = vst [vmem:[#allocation44_spill] sm:$0xff] %v7705_v12  ;;  %v4803_v61 = vpack.i.b16 %v1087_v1, %v1086_v44  ;;  %v1431_v0 = vshrl.u32 %v1086_v44, 16  ;;  %v1432_v30 = vshrl.u32 %v1087_v1, 16  ;;  %vm939_vm5 = vmpackc.low %vm891_vm14, %vm890_vm1  ;;  %v4818_v44 = vsel %vm4796_vm15, %v4516_v41, 0 }
 0x105   : > { %vm1162_vm3 = vcmp.le.f32.partialorder %v1144_v58, %v4690_v50  ;;  %v963_v15 = vsel %vm939_vm5, %v4651_v20, 0  ;;  %v964_v27 = vsel %vm939_vm5, %v4649_v19, 0  ;;  %v965_v56 = vsel %vm939_vm5, %v4641_v13, 0  ;;  %7708 = vst [vmem:[#allocation46_spill] sm:$0xff] %v4818_v44 }
 0x106   : > { %7707 = vst [vmem:[#allocation45_spill] sm:$0xff] %v4803_v61  ;;  %v966_v40 = vsel %vm939_vm5, %v4657_v23, 0  ;;  %v4823_v35 = vsel %vm4796_vm15, %v4522_v43, 0  ;;  %vm1026_vm6 = vcmp.le.f32.partialorder %v1008_v8, %v4698_v53  ;;  %v870_v1 = vand.u32 2147483647, %v852_v17  ;;  %vm1211_vm7 = vmpackc.low %vm1163_vm0, %vm1162_vm3 }
 0x107   : > { %7709 = vst [vmem:[#allocation47_spill] sm:$0xff] %v4823_v35  ;;  %vm1025_vm8 = vcmp.le.f32.partialorder %v1007_v39, %v4690_v50  ;;  %v1235_v9 = vsel %vm1211_vm7, %v4651_v20, 0  ;;  %v1236_v7 = vsel %vm1211_vm7, %v4649_v19, 0  ;;  %v1238_v41 = vsel %vm1211_vm7, %v4657_v23, 0 }
 0x108   : > { %v4834_v12 = vpack.i.b16 %v964_v27, %v963_v15  ;;  %v1335_v43 = vshrl.u32 %v963_v15, 16  ;;  %v1336_v42 = vshrl.u32 %v964_v27, 16  ;;  %v4836_v31 = vpack.i.b16 %v966_v40, %v965_v56  ;;  %vm4857_vm13 = vmpackc.low %vm1026_vm6, %vm1025_vm8 }
 0x109   : > { %v1237_v17 = vsel %vm1211_vm7, %v4641_v13, 0  ;;  %v1343_v58 = vshrl.u32 %v965_v56, 16  ;;  %v1344_v48 = vshrl.u32 %v966_v40, 16  ;;  %v860_v63 = vsub.f32 %v830_v57, %v4693_v51 }
 0x10a   : > { %7710 = vst [vmem:[#allocation48_spill] sm:$0xff] %v4834_v12  ;;  %v1223_v62 = vsel %vm4728_vm11, %v4625_v5, 0  ;;  %v1224_v54 = vsel %vm4728_vm11, %v4627_v6, 0  ;;  %vm897_vm9 = vcmp.le.f32.partialorder %v4782_v59, %v4698_v53  ;;  %vm888_vm10 = vcmp.le.f32.partialorder %v870_v1, %v4690_v50 }
 0x10b   : > { %7711 = vst [vmem:[#allocation49_spill] sm:$0xff] %v4836_v31  ;;  %v4849_v15 = vpack.i.b16 %v1336_v42, %v1335_v43  ;;  %vm1690_vm12 = vcmask 1047556   ;;  %v4851_v27 = vpack.i.b16 %v1432_v30, %v1431_v0  ;;  %v4861_v60 = vpack.i.b16 %v1344_v48, %v1343_v58  ;;  %vm4874_vm11 = vmpackc.low %vm889_vm4, %vm888_vm10 }
 0x10c   : > { %v4863_v6 = vpack.i.b16 %v1236_v7, %v1235_v9  ;;  %v1623_v56 = vshrl.u32 %v1235_v9, 16  ;;  %v4867_v42 = vpack.i.b16 %v4823_v35, %v4818_v44  ;;  %v1624_v43 = vshrl.u32 %v1236_v7, 16 }
 0x10d   : > { %7712 = vst [vmem:[#allocation50_spill] sm:$0xff] %v4849_v15  ;;  %v4869_v0 = vpack.i.b16 %v1238_v41, %v1237_v17  ;;  %v1631_v30 = vshrl.u32 %v1237_v17, 16  ;;  %v1575_v39 = vshrl.u32 %v1223_v62, 16  ;;  %v7720_v8 = vmov 0 }
 0x10e   : > { %7713 = vst [vmem:[#allocation51_spill] sm:$0xff] %v4851_v27  ;;  %v7721_v8 = vsel %vm4874_vm11, 4294967295, %v7720_v8  ;;  %v1632_v40 = vshrl.u32 %v1238_v41, 16  ;;  %v878_v1 = vand.u32 2147483647, %v860_v63  ;;  %v995_v9 = vsub.f32 %v830_v57, %v4683_v38 }
 0x10f   : > { %7716 = vst [vmem:[#allocation52_spill] sm:$0xff] %v4861_v60  ;;  %v1576_v58 = vshrl.u32 %v1224_v54, 16  ;;  %vm1032_vm14 = vcmp.le.f32.partialorder %v4788_v32, %v4698_v53  ;;  %v1098_v7 = vsel %vm4857_vm13, %v4651_v20, 0  ;;  %v4884_v17 = vpack.i.b16 %v1624_v43, %v1623_v56 }
 0x110   : > { %7717 = vst [vmem:[#allocation53_spill] sm:$0xff] %v4863_v6  ;;  %v1132_v33 = vsub.f32 %v830_v57, %v4696_v52  ;;  %vm1169_vm0 = vcmp.le.f32.partialorder %v4790_v14, %v4698_v53  ;;  %v1099_v41 = vsel %vm4857_vm13, %v4649_v19, 0  ;;  %v1100_v63 = vsel %vm4857_vm13, %v4641_v13, 0 }
 0x111   : > { %7718 = vst [vmem:[#allocation54_spill] sm:$0xff] %v4867_v42  ;;  %v1101_v48 = vsel %vm4857_vm13, %v4657_v23, 0  ;;  %v4898_v20 = vpack.i.b16 %v1632_v40, %v1631_v30  ;;  %v4902_v57 = vpack.i.b16 %v4726_v47, %v4723_v46  ;;  %v4904_v56 = vpack.i.b16 %v1224_v54, %v1223_v62 }
 0x112   : > { %7719 = vst [vmem:[#allocation55_spill] sm:$0xff] %v4869_v0  ;;  %v2822_v43 = vrot.slane %v4867_v42, 4  ;;  %v4910_v19 = vsel %vm4874_vm11, %v4643_v16, 0  ;;  %v4915_v13 = vsel %vm4874_vm11, %v4635_v10, 0  ;;  %v1479_v23 = vshrl.u32 %v1098_v7, 16 }
 0x113   : > { %7722 = vst [vmem:[#allocation56_spill] sm:$0xff] %v7721_v8  ;;  %vm896_vm1 = vcmp.le.f32.partialorder %v878_v1, %v4690_v50  ;;  %v1013_v5 = vand.u32 2147483647, %v995_v9  ;;  %v1480_v46 = vshrl.u32 %v1099_v41, 16  ;;  %v1487_v47 = vshrl.u32 %v1100_v63, 16 }
 0x114   : > { %7723 = vst [vmem:[#allocation57_spill] sm:$0xff] %v4884_v17  ;;  %v1488_v54 = vshrl.u32 %v1101_v48, 16  ;;  %v1150_v62 = vand.u32 2147483647, %v1132_v33  ;;  %v4918_v30 = vpack.i.b16 %v1576_v58, %v1575_v39  ;;  %vm4926_vm3 = vmpackc.low %vm897_vm9, %vm896_vm1  ;;  %v4933_v9 = vsel %vm1690_vm12, %v2822_v43, %v4748_v49 }
 0x115   : > { %7724 = vst [vmem:[#allocation58_spill] sm:$0xff] %v4898_v20  ;;  %v4937_v39 = vpack.i.b16 %v4915_v13, %v4910_v19  ;;  %vm1031_vm4 = vcmp.le.f32.partialorder %v1013_v5, %v4690_v50  ;;  %v4940_v58 = vpack.i.b16 %v1099_v41, %v1098_v7  ;;  %v4942_v33 = vpack.i.b16 %v1101_v48, %v1100_v63 }
 0x116   : > { %7725 = vst [vmem:[#allocation59_spill] sm:$0xff] %v4902_v57  ;;  %vm1168_vm5 = vcmp.le.f32.partialorder %v1150_v62, %v4690_v50  ;;  %v7736_v59 = vsub.f32 %v4612_v2, %v4696_v52  ;;  %v4950_v1 = vpack.i.b16 %v1480_v46, %v1479_v23  ;;  %v4952_v43 = vpack.i.b16 %v1488_v54, %v1487_v47  ;;  %vm4967_vm6 = vmpackc.low %vm1032_vm14, %vm1031_vm4  ;;  %v826_v46 = vpop.permute.xlu0 %825 }
 0x117   : > { %7726 = vst [vmem:[#allocation60_spill] sm:$0xff] %v4904_v56  ;;  %v975_v42 = vsel %vm4926_vm3, %v4653_v21, 0  ;;  %v976_v7 = vsel %vm4926_vm3, %v4667_v29, 0  ;;  %vm4980_vm7 = vmpackc.low %vm1169_vm0, %vm1168_vm5  ;;  %v977_v5 = vsel %vm4926_vm3, %v4665_v28, 0  ;;  %v978_v48 = vsel %vm4926_vm3, %v4659_v24, 0 }
 0x118   : > { %7727 = vst [vmem:[#allocation61_spill] sm:$0xff] %v4910_v19  ;;  %v4948_v35 = vand.u32 2147483647, %v7736_v59  ;;  %v1383_v59 = vshrl.u32 %v975_v42, 16  ;;  %v1384_v63 = vshrl.u32 %v976_v7, 16  ;;  %v1110_v62 = vsel %vm4967_vm6, %v4653_v21, 0 }
 0x119   : > { %7728 = vst [vmem:[#allocation62_spill] sm:$0xff] %v4915_v13  ;;  %v4993_v41 = vpack.i.b16 %v976_v7, %v975_v42  ;;  %v858_v14 = vsub.f32 %v4704_v3, %v4693_v51  ;;  %v859_v54 = vsub.f32 %v826_v46, %v4678_v36  ;;  %v1111_v47 = vsel %vm4967_vm6, %v4667_v29, 0 }
 0x11a   : > { %7729 = vst [vmem:[#allocation63_spill] sm:$0xff] %v4918_v30  ;;  %v1112_v44 = vsel %vm4967_vm6, %v4665_v28, 0  ;;  %v1113_v40 = vsel %vm4967_vm6, %v4659_v24, 0  ;;  %v1247_v42 = vsel %vm4980_vm7, %v4653_v21, 0  ;;  %v1248_v7 = vsel %vm4980_vm7, %v4667_v29, 0 }
 0x11b   : > { %7732 = vst [vmem:[#allocation64_spill] sm:$0xff] %v4933_v9  ;;  %v1249_v49 = vsel %vm4980_vm7, %v4665_v28, 0  ;;  %v5016_v30 = vpack.i.b16 %v978_v48, %v977_v5  ;;  %v1391_v20 = vshrl.u32 %v977_v5, 16  ;;  %vm1164_vm8 = vcmp.le.f32.partialorder %v4948_v35, %v4690_v50 }
 0x11c   : > { %7733 = vst [vmem:[#allocation65_spill] sm:$0xff] %v4937_v39  ;;  %v1250_v23 = vsel %vm4980_vm7, %v4659_v24, 0  ;;  %v5023_v17 = vpack.i.b16 %v1384_v63, %v1383_v59  ;;  %v1392_v21 = vshrl.u32 %v978_v48, 16  ;;  %v1527_v60 = vshrl.u32 %v1110_v62, 16 }
 0x11d   : > { %7734 = vst [vmem:[#allocation66_spill] sm:$0xff] %v4940_v58  ;;  %v1528_v15 = vshrl.u32 %v1111_v47, 16  ;;  %v1535_v29 = vshrl.u32 %v1112_v44, 16  ;;  %v1536_v13 = vshrl.u32 %v1113_v40, 16  ;;  %v1671_v19 = vshrl.u32 %v1247_v42, 16 }
 0x11e   : > { %7735 = vst [vmem:[#allocation67_spill] sm:$0xff] %v4942_v33  ;;  %v1672_v12 = vshrl.u32 %v1248_v7, 16  ;;  %v1679_v28 = vshrl.u32 %v1249_v49, 16  ;;  %v876_v31 = vand.u32 2147483647, %v858_v14  ;;  %v993_v5 = vsub.f32 %v4704_v3, %v4683_v38 }
 0x11f   : > { %7737 = vst [vmem:[#allocation68_spill] sm:$0xff] %v4950_v1  ;;  %v877_v39 = vand.u32 2147483647, %v859_v54  ;;  %v994_v8 = vsub.f32 %v826_v46, %v4674_v34  ;;  %v1129_v24 = vsub.f32 %v4617_v4, %v4681_v37  ;;  %v1130_v63 = vsub.f32 %v4704_v3, %v4696_v52 }
 0x120   : > { %7738 = vst [vmem:[#allocation69_spill] sm:$0xff] %v4952_v43  ;;  %v1680_v48 = vshrl.u32 %v1250_v23, 16  ;;  %vm894_vm9 = vcmp.le.f32.partialorder %v876_v31, %v4690_v50  ;;  %v1131_v59 = vsub.f32 %v826_v46, %v4681_v37  ;;  %v5035_v32 = vpack.i.b16 %v1111_v47, %v1110_v62  ;;  %v7765_v37 = vld [vmem:[#allocation20_spill] sm:$0xff] }
 0x121   : > { %7743 = vst [vmem:[#allocation70_spill] sm:$0xff] %v4993_v41  ;;  %vm895_vm10 = vcmp.le.f32.partialorder %v877_v39, %v4698_v53  ;;  %v1011_v14 = vand.u32 2147483647, %v993_v5  ;;  %v1012_v0 = vand.u32 2147483647, %v994_v8  ;;  %v5041_v56 = vpack.i.b16 %v1392_v21, %v1391_v20 }
 0x122   : > { %7744 = vst [vmem:[#allocation71_spill] sm:$0xff] %v5016_v30  ;;  %vm5037_vm13 = vmpackc.low %vm895_vm10, %vm894_vm9  ;;  %v1147_v6 = vand.u32 2147483647, %v1129_v24  ;;  %v5043_v9 = vpack.i.b16 %v1528_v15, %v1527_v60  ;;  %v5045_v3 = vpack.i.b16 %v1113_v40, %v1112_v44  ;;  %v5047_v31 = vpack.i.b16 %v1248_v7, %v1247_v42 }
 0x123   : > { %7745 = vst [vmem:[#allocation72_spill] sm:$0xff] %v5023_v17  ;;  %v5049_v39 = vpack.i.b16 %v1250_v23, %v1249_v49  ;;  %vm1030_vm14 = vcmp.le.f32.partialorder %v1012_v0, %v4698_v53  ;;  %v1148_v46 = vand.u32 2147483647, %v1130_v63  ;;  %v1149_v47 = vand.u32 2147483647, %v1131_v59 }
 0x124   : > { %7746 = vst [vmem:[#allocation73_spill] sm:$0xff] %v5035_v32  ;;  %v5052_v62 = vpack.i.b16 %v1536_v13, %v1535_v29  ;;  %v971_v8 = vsel %vm5037_vm13, %v4655_v22, 0  ;;  %v972_v15 = vsel %vm5037_vm13, %v4647_v18, 0  ;;  %vm1029_vm0 = vcmp.le.f32.partialorder %v1011_v14, %v4690_v50  ;;  %v7760_v29 = vld [vmem:[#allocation15_spill] sm:$0xff] }
 0x125   : > { %7749 = vst [vmem:[#allocation74_spill] sm:$0xff] %v5041_v56  ;;  %v5061_v60 = vpack.i.b16 %v1672_v12, %v1671_v19  ;;  %v5063_v49 = vpack.i.b16 %v1680_v48, %v1679_v28  ;;  %vm1076_vm1 = vmpackc.low %vm1030_vm14, %vm1029_vm0  ;;  %vm1165_vm3 = vcmp.le.f32.partialorder %v1147_v6, %v4698_v53  ;;  %vm1166_vm4 = vcmp.le.f32.partialorder %v1148_v46, %v4690_v50 }
 0x126   : > { %7750 = vst [vmem:[#allocation75_spill] sm:$0xff] %v5043_v9  ;;  %vm1167_vm5 = vcmp.le.f32.partialorder %v1149_v47, %v4698_v53  ;;  %vm5074_vm6 = vmpackc.low %vm1165_vm3, %vm1164_vm8  ;;  %v973_v19 = vsel %vm5037_vm13, %v4663_v26, 0  ;;  %v974_v6 = vsel %vm5037_vm13, %v4661_v25, 0  ;;  %v1367_v40 = vshrl.u32 %v971_v8, 16 }
 0x127   : > { %7751 = vst [vmem:[#allocation76_spill] sm:$0xff] %v5045_v3  ;;  %vm1213_vm7 = vmpackc.low %vm1167_vm5, %vm1166_vm4  ;;  %v1368_v44 = vshrl.u32 %v972_v15, 16  ;;  %v1106_v42 = vsel %vm1076_vm1, %v4655_v22, 0  ;;  %v1107_v7 = vsel %vm1076_vm1, %v4647_v18, 0  ;;  %v1108_v35 = vsel %vm1076_vm1, %v4663_v26, 0 }
 0x128   : > { %7752 = vst [vmem:[#allocation77_spill] sm:$0xff] %v5047_v31  ;;  %v1109_v23 = vsel %vm1076_vm1, %v4661_v25, 0  ;;  %v5091_v21 = vsel %vm5074_vm6, %v4555_v55, 0  ;;  %v5096_v28 = vsel %vm5074_vm6, %v7760_v29, 0  ;;  %v1243_v5 = vsel %vm1213_vm7, %v4655_v22, 0 }
 0x129   : > { %7753 = vst [vmem:[#allocation78_spill] sm:$0xff] %v5049_v39  ;;  %v1244_v24 = vsel %vm1213_vm7, %v4647_v18, 0  ;;  %v5101_v63 = vsel %vm1213_vm7, %v4663_v26, 0  ;;  %v5104_v48 = vsel %vm1213_vm7, %v4661_v25, 0  ;;  %v1375_v59 = vshrl.u32 %v973_v19, 16  ;;  %v7764_v25 = vld [vmem:[#allocation19_spill] sm:$0xff] }
 0x12a   : > { %7754 = vst [vmem:[#allocation79_spill] sm:$0xff] %v5052_v62  ;;  %v1376_v54 = vshrl.u32 %v974_v6, 16  ;;  %v1511_v14 = vshrl.u32 %v1106_v42, 16  ;;  %v1512_v46 = vshrl.u32 %v1107_v7, 16  ;;  %v1519_v47 = vshrl.u32 %v1108_v35, 16 }
 0x12b   : > { %7755 = vst [vmem:[#allocation80_spill] sm:$0xff] %v5061_v60  ;;  %v1520_v13 = vshrl.u32 %v1109_v23, 16  ;;  %v5109_v20 = vpack.i.b16 %v5096_v28, %v5091_v21  ;;  %v1655_v22 = vshrl.u32 %v1243_v5, 16  ;;  %v1656_v18 = vshrl.u32 %v1244_v24, 16 }
 0x12c   : > { %7756 = vst [vmem:[#allocation81_spill] sm:$0xff] %v5063_v49  ;;  %v5111_v9 = vpack.i.b16 %v972_v15, %v971_v8  ;;  %v5113_v26 = vpack.i.b16 %v1368_v44, %v1367_v40  ;;  %v985_v32 = vsub.f32 %v7764_v25, %v4683_v38  ;;  %v986_v52 = vsub.f32 %v7765_v37, %v4674_v34 }
 0x12d   : > { %7759 = vst [vmem:[#allocation82_spill] sm:$0xff] %v5091_v21  ;;  %v5119_v49 = vpack.i.b16 %v974_v6, %v973_v19  ;;  %v5121_v60 = vpack.i.b16 %v1376_v54, %v1375_v59  ;;  %v5123_v0 = vpack.i.b16 %v1107_v7, %v1106_v42  ;;  %v5127_v62 = vpack.i.b16 %v5104_v48, %v5101_v63  ;;  %v7781_v19 = vld [vmem:[#allocation13_spill] sm:$0xff] }
 0x12e   : > { %7761 = vst [vmem:[#allocation83_spill] sm:$0xff] %v5096_v28  ;;  %v5129_v8 = vpack.i.b16 %v1512_v46, %v1511_v14  ;;  %v5131_v15 = vpack.i.b16 %v1109_v23, %v1108_v35  ;;  %v5133_v40 = vpack.i.b16 %v1520_v13, %v1519_v47  ;;  %v5135_v44 = vpack.i.b16 %v1244_v24, %v1243_v5 }
 0x12f   : > { %7762 = vst [vmem:[#allocation84_spill] sm:$0xff] %v5111_v9  ;;  %v3048_v42 = vrot.slane %v5109_v20, 4  ;;  %v987_v7 = vsub.f32 %v4683_v38, %v4683_v38  ;;  %v988_v59 = vsub.f32 %v4674_v34, %v4674_v34  ;;  %v991_v13 = vsub.f32 %v4612_v2, %v4683_v38 }
 0x130   : > { %7763 = vst [vmem:[#allocation85_spill] sm:$0xff] %v5113_v26  ;;  %v5137_v26 = vpack.i.b16 %v1656_v18, %v1655_v22  ;;  %v992_v35 = vsub.f32 %v4617_v4, %v4674_v34  ;;  %v1003_v5 = vand.u32 2147483647, %v985_v32  ;;  %v1004_v24 = vand.u32 2147483647, %v986_v52  ;;  %v7775_v52 = vld [vmem:[#allocation9_spill] sm:$0xff] }
 0x131   : > { %7766 = vst [vmem:[#allocation19_spill] sm:$0xff] %v5119_v49  ;;  %v5152_v23 = vsel %vm1690_vm12, %v5127_v62, %v3048_v42  ;;  %v1005_v54 = vand.u32 2147483647, %v987_v7  ;;  %v1006_v14 = vand.u32 2147483647, %v988_v59  ;;  %v7776_v7 = vld [vmem:[#allocation11_spill] sm:$0xff] }
 0x132   : > { %7767 = vst [vmem:[#allocation20_spill] sm:$0xff] %v5121_v60  ;;  %v1009_v46 = vand.u32 2147483647, %v991_v13  ;;  %v4330_v47 = vmov 1983009808   ;;  %vm1021_vm8 = vcmp.le.f32.partialorder %v1003_v5, %v4690_v50  ;;  %vm1022_vm9 = vcmp.le.f32.partialorder %v1004_v24, %v4698_v53  ;;  %v7777_v13 = vld [vmem:[#allocation10_spill] sm:$0xff] }
 0x133   : > { %7768 = vst [vmem:[#allocation86_spill] sm:$0xff] %v5123_v0  ;;  %v1695_v22 = vunpack.c.l.s4 %v4330_v47  ;;  %v1010_v18 = vand.u32 2147483647, %v992_v35  ;;  %vm1023_vm10 = vcmp.le.f32.partialorder %v1005_v54, %v4690_v50  ;;  %vm1024_vm13 = vcmp.le.f32.partialorder %v1006_v14, %v4698_v53  ;;  %vm1072_vm0 = vmpackc.low %vm1022_vm9, %vm1021_vm8  ;;  %v7778_v5 = vld [vmem:[#allocation12_spill] sm:$0xff]  ;;  %v7779_v54 = vld [vmem:[#allocation23_spill] sm:$0xff] }
 0x134   : > { %7769 = vst [vmem:[#allocation87_spill] sm:$0xff] %v5129_v8  ;;  %vm1027_vm14 = vcmp.le.f32.partialorder %v1009_v46, %v4690_v50  ;;  %vm1073_vm3 = vmpackc.low %vm1024_vm13, %vm1023_vm10  ;;  %v1090_v32 = vsel %vm1072_vm0, %v7775_v52, 0  ;;  %v1091_v59 = vsel %vm1072_vm0, %v7776_v7, 0  ;;  %v1092_v35 = vsel %vm1072_vm0, %v7777_v13, 0  ;;  %v7780_v14 = vld [vmem:[#allocation30_spill] sm:$0xff] }
 0x135   : > { %7770 = vst [vmem:[#allocation88_spill] sm:$0xff] %v5131_v15  ;;  %v5159_v42 = vunpack.c.0.s8 %v1695_v22  ;;  %vm1028_vm1 = vcmp.le.f32.partialorder %v1010_v18, %v4698_v53  ;;  %v1093_v24 = vsel %vm1072_vm0, %v7778_v5, 0  ;;  %v1094_v47 = vsel %vm1073_vm3, %v7779_v54, 0 }
 0x136   : > { %7771 = vst [vmem:[#allocation89_spill] sm:$0xff] %v5133_v40  ;;  %vm1075_vm4 = vmpackc.low %vm1028_vm1, %vm1027_vm14  ;;  %v1095_v6 = vsel %vm1073_vm3, %v7780_v14, 0  ;;  %v1096_v46 = vsel %vm1073_vm3, %v4643_v16, 0  ;;  %v1097_v22 = vsel %vm1073_vm3, %v4635_v10, 0  ;;  %v5174_v4 = vpack.i.b16 %v1091_v59, %v1090_v32 }
 0x137   : > { %7772 = vst [vmem:[#allocation90_spill] sm:$0xff] %v5135_v44  ;;  %v1102_v18 = vsel %vm1075_vm4, %v7781_v19, 0  ;;  %v1104_v8 = vsel %vm1075_vm4, %v4555_v55, 0  ;;  %v1105_v60 = vsel %vm1075_vm4, %v7760_v29, 0  ;;  %v5176_v2 = vpack.i.b16 %v1093_v24, %v1092_v35 }
 0x138   : > { %7773 = vst [vmem:[#allocation91_spill] sm:$0xff] %v5137_v26  ;;  %v5178_v0 = vpack.i.b16 %v1095_v6, %v1094_v47  ;;  %v5180_v54 = vpack.i.b16 %v1097_v22, %v1096_v46  ;;  %v1495_v16 = vshrl.u32 %v1102_v18, 16  ;;  %v5184_v28 = vpack.i.b16 %v1105_v60, %v1104_v8 }
 0x139   : > { %7774 = vst [vmem:[#allocation92_spill] sm:$0xff] %v5152_v23  ;;  %v7782_v23 = vld [vmem:[#allocation14_spill] sm:$0xff]  ;;  %v1503_v27 = vshrl.u32 %v1104_v8, 16  ;;  %v1504_v21 = vshrl.u32 %v1105_v60, 16  ;;  %v4331_v11 = vmov 1934713408  }
 0x13a   : > { %v1103_v40 = vsel %vm1075_vm4, %v7782_v23, 0  ;;  %7783 = vst [vmem:[#allocation9_spill] sm:$0xff] %v5174_v4  ;;  %v1743_v55 = vunpack.c.l.s4 %v4331_v11  ;;  %v2362_v29 = vrot.slane %v5178_v0, 4  ;;  %v2374_v56 = vrot.slane %v5180_v54, 4 }
 0x13b   : > { %7784 = vst [vmem:[#allocation11_spill] sm:$0xff] %v5176_v2  ;;  %v5182_v14 = vpack.i.b16 %v1103_v40, %v1102_v18  ;;  %v1496_v10 = vshrl.u32 %v1103_v40, 16  ;;  %v1447_v39 = vshrl.u32 %v1090_v32, 16  ;;  %v2398_v41 = vrot.slane %v5184_v28, 4 }
 0x13c   : > { %7785 = vst [vmem:[#allocation10_spill] sm:$0xff] %v5178_v0  ;;  %v5189_v30 = vunpack.c.0.s8 %v1743_v55  ;;  %v1448_v45 = vshrl.u32 %v1091_v59, 16  ;;  %v1455_v18 = vshrl.u32 %v1092_v35, 16  ;;  %v2363_v40 = vsel %vm1690_vm12, %v2362_v29, %v5174_v4 }
 0x13d   : > { %7786 = vst [vmem:[#allocation12_spill] sm:$0xff] %v5180_v54  ;;  %v2386_v17 = vrot.slane %v5182_v14, 4  ;;  %v2375_v60 = vsel %vm1690_vm12, %v2374_v56, %v5176_v2  ;;  %v1456_v8 = vshrl.u32 %v1093_v24, 16  ;;  %v5199_v0 = vperm.slane %v2363_v40, %v5159_v42 }
 0x13e   : > { %7787 = vst [vmem:[#allocation13_spill] sm:$0xff] %v5182_v14  ;;  %v5202_v55 = vperm.slane %v2375_v60, %v5159_v42  ;;  %v2399_v59 = vsel %vm1690_vm12, %v2398_v41, %v4942_v33  ;;  %v5212_v56 = vpack.i.b16 %v1448_v45, %v1447_v39  ;;  %v1464_v40 = vshrl.u32 %v1095_v6, 16  ;;  %v7797_v41 = vld [vmem:[#allocation18_spill] sm:$0xff]  ;;  %v7800_v6 = vld [vmem:[#allocation17_spill] sm:$0xff] }
 0x13f   : > { %7788 = vst [vmem:[#allocation14_spill] sm:$0xff] %v5184_v28  ;;  %v2387_v11 = vsel %vm1690_vm12, %v2386_v17, %v4940_v58  ;;  %v5210_v29 = vperm.slane %v2399_v59, %v5159_v42  ;;  %v5214_v35 = vpack.i.b16 %v1456_v8, %v1455_v18  ;;  %v1463_v17 = vshrl.u32 %v1094_v47, 16 }
 0x140   : > { %7789 = vst [vmem:[#allocation93_spill] sm:$0xff] %v5199_v0  ;;  %v5205_v32 = vperm.slane %v2387_v11, %v5159_v42  ;;  %v2410_v24 = vrot.slane %v5202_v55, 4  ;;  %v1471_v4 = vshrl.u32 %v1096_v46, 16  ;;  %v1472_v60 = vshrl.u32 %v1097_v22, 16  ;;  %v7801_v22 = vld [vmem:[#allocation41_spill] sm:$0xff] }
 0x141   : > { %7790 = vst [vmem:[#allocation94_spill] sm:$0xff] %v5202_v55  ;;  %v2434_v54 = vrot.slane %v5210_v29, 4  ;;  %v5218_v11 = vpack.i.b16 %v1496_v10, %v1495_v16  ;;  %v5220_v2 = vpack.i.b16 %v1504_v21, %v1503_v27  ;;  %v844_v59 = vsub.f32 %v7797_v41, %v4693_v51 }
 0x142   : > { %7791 = vst [vmem:[#allocation95_spill] sm:$0xff] %v5205_v32  ;;  %v2411_v45 = vsel %vm1690_vm12, %v2410_v24, %v5199_v0  ;;  %v5226_v39 = vpack.i.b16 %v1464_v40, %v1463_v17  ;;  %v5228_v47 = vpack.i.b16 %v1472_v60, %v1471_v4  ;;  %v845_v46 = vsub.f32 %v7800_v6, %v4678_v36  ;;  %v7804_v17 = vld [vmem:[#allocation31_spill] sm:$0xff] }
 0x143   : > { %7792 = vst [vmem:[#allocation96_spill] sm:$0xff] %v5210_v29  ;;  %vm883_vm5 = vcmp.le.f32.partialorder %v7801_v22, %v4698_v53  ;;  %v5235_v10 = vperm.slane %v2411_v45, %v5189_v30  ;;  %v2435_v16 = vsel %vm1690_vm12, %v2434_v54, %v5205_v32  ;;  %v2498_v27 = vrot.slane %v5218_v11, 4 }
 0x144   : > { %7793 = vst [vmem:[#allocation97_spill] sm:$0xff] %v5212_v56  ;;  %v2510_v21 = vrot.slane %v5220_v2, 4  ;;  %v5242_v18 = vperm.slane %v2435_v16, %v5189_v30  ;;  %v2474_v4 = vrot.slane %v5226_v39, 4  ;;  %v2486_v8 = vrot.slane %v5228_v47, 4 }
 0x145   : > { %7794 = vst [vmem:[#allocation98_spill] sm:$0xff] %v5214_v35  ;;  %v846_v24 = vsub.f32 %v7804_v17, %v4693_v51  ;;  %v2460_v40 = vrot.slane %v5235_v10, 4  ;;  %v2499_v60 = vsel %vm1690_vm12, %v2498_v27, %v4950_v1  ;;  %v850_v45 = vsub.f32 %v7764_v25, %v4693_v51 }
 0x146   : > { %7795 = vst [vmem:[#allocation99_spill] sm:$0xff] %v5218_v11  ;;  %v2511_v54 = vsel %vm1690_vm12, %v2510_v21, %v4952_v43  ;;  %v2487_v14 = vsel %vm1690_vm12, %v2486_v8, %v5214_v35  ;;  %v5267_v21 = vperm.slane %v2499_v60, %v5159_v42  ;;  %v863_v8 = vand.u32 2147483647, %v845_v46  ;;  %v5301_v46 = vld [vmem:[%s4470_s16] sm:$0xff]  ;;  %v7822_v11 = vld [vmem:[#allocation42_spill] sm:$0xff] }
 0x147   : > { %7796 = vst [vmem:[#allocation100_spill] sm:$0xff] %v5220_v2  ;;  %v2461_v28 = vsel %vm1690_vm12, %v5242_v18, %v2460_v40  ;;  %v5264_v27 = vperm.slane %v2487_v14, %v5159_v42  ;;  %v5270_v25 = vperm.slane %v2511_v54, %v5159_v42  ;;  %v864_v16 = vand.u32 2147483647, %v846_v24  ;;  %v5307_v24 = vld [vmem:[%s4470_s16 + $0x8] sm:$0xff] }
 0x148   : > { %7798 = vst [vmem:[#allocation18_spill] sm:$0xff] %v5226_v39  ;;  %3284 = vrot.lane.b32.xlu1 %v2461_v28, %s4332_s13  ;;  %v862_v39 = vand.u32 2147483647, %v844_v59  ;;  %vm881_vm8 = vcmp.le.f32.partialorder %v863_v8, %v4698_v53  ;;  %v979_v59 = vsub.f32 %v7797_v41, %v4683_v38  ;;  %v7813_v8 = vld [vmem:[#allocation25_spill] sm:$0xff]  ;;  %vm1018_vm3 = vcmp.le.f32.partialorder %v7822_v11, %v4698_v53 }
 0x149   : > { %7799 = vst [vmem:[#allocation101_spill] sm:$0xff] %v5228_v47  ;;  %v2475_v47 = vsel %vm1690_vm12, %v2474_v4, %v5212_v56  ;;  %v851_v4 = vsub.f32 %v7765_v37, %v4678_v36  ;;  %v2522_v14 = vrot.slane %v5264_v27, 4  ;;  %v2546_v60 = vrot.slane %v5270_v25, 4 }
 0x14a   : > { %7802 = vst [vmem:[#allocation17_spill] sm:$0xff] %v5235_v10  ;;  %v5276_v40 = vperm.slane %v2475_v47, %v5159_v42  ;;  %v868_v56 = vand.u32 2147483647, %v850_v45  ;;  %vm880_vm7 = vcmp.le.f32.partialorder %v862_v39, %v4690_v50  ;;  %vm882_vm9 = vcmp.le.f32.partialorder %v864_v16, %v4690_v50  ;;  %v5313_v45 = vld [vmem:[%s4470_s16 + $0x10] sm:$0xff] }
 0x14b   : > { %7803 = vst [vmem:[#allocation41_spill] sm:$0xff] %v5242_v18  ;;  %v869_v54 = vand.u32 2147483647, %v851_v4  ;;  %v2547_v28 = vsel %vm1690_vm12, %v2546_v60, %v5267_v21  ;;  %vm934_vm13 = vmpackc.low %vm881_vm8, %vm880_vm7  ;;  %v5319_v4 = vld [vmem:[%s4470_s16 + $0x18] sm:$0xff]  ;;  %v7823_v33 = vshrl.u32 %v5101_v63, 16  ;;  %v7824_v43 = vshrl.u32 %v5104_v48, 16 }
 0x14c   : > { %7805 = vst [vmem:[#allocation31_spill] sm:$0xff] %v5264_v27  ;;  %v2523_v37 = vsel %vm1690_vm12, %v2522_v14, %v5276_v40  ;;  %vm886_vm10 = vcmp.le.f32.partialorder %v868_v56, %v4690_v50  ;;  %v5294_v47 = vperm.slane %v2547_v28, %v5189_v30  ;;  %vm935_vm0 = vmpackc.low %vm883_vm5, %vm882_vm9  ;;  %v5304_v56 = vsel %vm934_vm13, %v5301_v46, 0  ;;  %v7817_v28 = vld [vmem:[#allocation24_spill] sm:$0xff]  ;;  %s4333_s16 = smov 16  }
 0x14d   : > { %7806 = vst [vmem:[#allocation102_spill] sm:$0xff] %v5267_v21  ;;  %v5291_v39 = vperm.slane %v2523_v37, %v5189_v30  ;;  %vm887_vm14 = vcmp.le.f32.partialorder %v869_v54, %v4698_v53  ;;  %v5310_v41 = vsel %vm934_vm13, %v5307_v24, 0  ;;  %v5316_v16 = vsel %vm934_vm13, %v5313_v45, 0  ;;  %v7815_v54 = vld [vmem:[#allocation28_spill] sm:$0xff] }
 0x14e   : > { %7807 = vst [vmem:[#allocation103_spill] sm:$0xff] %v5270_v25  ;;  %vm937_vm1 = vmpackc.low %vm887_vm14, %vm886_vm10  ;;  %v5322_v22 = vsel %vm934_vm13, %v5319_v4, 0  ;;  %v5325_v14 = vsel %vm935_vm0, %v7813_v8, 0  ;;  %v2570_v60 = vrot.slane %v5294_v47, 4  ;;  %v5329_v37 = vsel %vm935_vm0, %v7815_v54, 0  ;;  %v7819_v25 = vld [vmem:[#allocation27_spill] sm:$0xff] }
 0x14f   : > { %7808 = vst [vmem:[#allocation104_spill] sm:$0xff] %v5276_v40  ;;  %v5332_v27 = vsel %vm935_vm0, %v7817_v28, 0  ;;  %v5335_v40 = vsel %vm935_vm0, %v7819_v25, 0  ;;  %v5338_v21 = vsel %vm937_vm1, %v7775_v52, 0  ;;  %v5341_v35 = vsel %vm937_vm1, %v7776_v7, 0 }
 0x150   : > { %7809 = vst [vmem:[#allocation105_spill] sm:$0xff] %v5304_v56  ;;  %v5344_v58 = vsel %vm937_vm1, %v7777_v13, 0  ;;  %v5347_v2 = vsel %vm937_vm1, %v7778_v5, 0  ;;  %v5355_v1 = vpack.i.b16 %v7824_v43, %v7823_v33  ;;  %v2571_v10 = vsel %vm1690_vm12, %v2570_v60, %v5291_v39 }
 0x151   : > { %7810 = vst [vmem:[#allocation106_spill] sm:$0xff] %v5310_v41  ;;  %v5361_v18 = vpack.i.b16 %v5329_v37, %v5325_v14  ;;  %v980_v13 = vsub.f32 %v7800_v6, %v4674_v34  ;;  %v7827_v5 = vrot.slane %v5045_v3, 4  ;;  %3263 = vrot.lane.b32.xlu0 %v2571_v10, %s4333_s16  ;;  %v5375_v33 = vpack.i.b16 %v5335_v40, %v5332_v27 }
 0x152   : > { %7811 = vst [vmem:[#allocation107_spill] sm:$0xff] %v5316_v16  ;;  %v5379_v43 = vpack.i.b16 %v5341_v35, %v5338_v21  ;;  %v5383_v48 = vpack.i.b16 %v5310_v41, %v5304_v56  ;;  %v5387_v6 = vpack.i.b16 %v5322_v22, %v5316_v16  ;;  %v5391_v60 = vpack.i.b16 %v5347_v2, %v5344_v58 }
 0x153   : > { %7812 = vst [vmem:[#allocation108_spill] sm:$0xff] %v5322_v22  ;;  %v5369_v55 = vsel %vm1690_vm12, %v7827_v5, %v5131_v15  ;;  %v1689_v10 = vrot.slane %v5361_v18, 4  ;;  %v1702_v5 = vrot.slane %v5375_v33, 4  ;;  %v981_v3 = vsub.f32 %v7804_v17, %v4683_v38 }
 0x154   : > { %7814 = vst [vmem:[#allocation25_spill] sm:$0xff] %v5325_v14  ;;  %v1714_v63 = vrot.slane %v5379_v43, 4  ;;  %v997_v15 = vand.u32 2147483647, %v979_v59  ;;  %v3046_v29 = vrot.slane %v5127_v62, 4  ;;  %v1726_v32 = vrot.slane %v5391_v60, 4 }
 0x155   : > { %7816 = vst [vmem:[#allocation28_spill] sm:$0xff] %v5329_v37  ;;  %v1691_v0 = vsel %vm1690_vm12, %v1689_v10, %v5383_v48  ;;  %v1703_v22 = vsel %vm1690_vm12, %v1702_v5, %v5387_v6  ;;  %v7834_v10 = vld [vmem:[#allocation35_spill] sm:$0xff] }
 0x156   : > { %7818 = vst [vmem:[#allocation24_spill] sm:$0xff] %v5332_v27  ;;  %v5413_v59 = vperm.slane %v1703_v22, %v5159_v42  ;;  %vm1015_vm4 = vcmp.le.f32.partialorder %v997_v15, %v4690_v50  ;;  %v5429_v22 = vperm.slane %v1691_v0, %v5159_v42  ;;  %v3047_v16 = vsel %vm1690_vm12, %v3046_v29, %v5109_v20 }
 0x157   : > { %7820 = vst [vmem:[#allocation27_spill] sm:$0xff] %v5335_v40  ;;  %v998_v40 = vand.u32 2147483647, %v980_v13  ;;  %v1727_v13 = vsel %vm1690_vm12, %v1726_v32, %v7834_v10  ;;  %v5472_v27 = vperm.slane %v5047_v31, %v5159_v42 }
 0x158   : > { %7821 = vst [vmem:[#allocation109_spill] sm:$0xff] %v5347_v2  ;;  %v5419_v5 = vperm.slane %v1727_v13, %v5159_v42  ;;  %v1738_v15 = vrot.slane %v5413_v59, 4 }
 0x159   : > { %7825 = vst [vmem:[#allocation42_spill] sm:$0xff] %v5355_v1  ;;  %vm1016_vm5 = vcmp.le.f32.partialorder %v998_v40, %v4698_v53 }
 0x15a   : > { %7826 = vst [vmem:[#allocation110_spill] sm:$0xff] %v5361_v18  ;;  %v1715_v18 = vsel %vm1690_vm12, %v1714_v63, %v4902_v57  ;;  %vm1069_vm8 = vmpackc.low %vm1016_vm5, %vm1015_vm4  ;;  %v1762_v40 = vrot.slane %v5419_v5, 4 }
 0x15b   : > { %7828 = vst [vmem:[#allocation111_spill] sm:$0xff] %v5375_v33  ;;  %v999_v33 = vand.u32 2147483647, %v981_v3  ;;  %v5426_v3 = vsel %vm5074_vm6, %v7782_v23, 0  ;;  %v5432_v63 = vperm.slane %v1715_v18, %v5159_v42  ;;  %v1078_v12 = vsel %vm1069_vm8, %v5301_v46, 0 }
 0x15c   : > { %7829 = vst [vmem:[#allocation112_spill] sm:$0xff] %v5379_v43  ;;  %v5409_v43 = vsel %vm5074_vm6, %v7781_v19, 0  ;;  %v1079_v0 = vsel %vm1069_vm8, %v5307_v24, 0  ;;  %v1080_v18 = vsel %vm1069_vm8, %v5313_v45, 0  ;;  %v1081_v13 = vsel %vm1069_vm8, %v5319_v4, 0 }
 0x15d   : > { %7830 = vst [vmem:[#allocation113_spill] sm:$0xff] %v5383_v48  ;;  %vm1017_vm7 = vcmp.le.f32.partialorder %v999_v33, %v4690_v50  ;;  %v5437_v32 = vpack.i.b16 %v5426_v3, %v5409_v43  ;;  %v1739_v33 = vsel %vm1690_vm12, %v1738_v15, %v5429_v22  ;;  %v1763_v48 = vsel %vm1690_vm12, %v1762_v40, %v5432_v63 }
 0x15e   : > { %7831 = vst [vmem:[#allocation114_spill] sm:$0xff] %v5387_v6  ;;  %vm1070_vm6 = vmpackc.low %vm1018_vm3, %vm1017_vm7  ;;  %v5456_v11 = vperm.slane %v1739_v33, %v5189_v30  ;;  %v5464_v15 = vpack.i.b16 %v1079_v0, %v1078_v12  ;;  %v5466_v57 = vpack.i.b16 %v1081_v13, %v1080_v18  ;;  %v5475_v33 = vperm.slane %v1763_v48, %v5189_v30 }
 0x15f   : > { %7832 = vst [vmem:[#allocation115_spill] sm:$0xff] %v5391_v60  ;;  %v5450_v62 = vsel %vm1070_vm6, %v7813_v8, 0  ;;  %v5453_v60 = vsel %vm1070_vm6, %v7815_v54, 0  ;;  %v5461_v6 = vsel %vm1070_vm6, %v7817_v28, 0  ;;  %v1085_v10 = vsel %vm1070_vm6, %v7819_v25, 0 }
 0x160   : > { %7833 = vst [vmem:[#allocation116_spill] sm:$0xff] %v5413_v59  ;;  %v1788_v40 = vrot.slane %v5456_v11, 4  ;;  %v5480_v37 = vpack.i.b16 %v5453_v60, %v5450_v62  ;;  %v5483_v14 = vpack.i.b16 %v1085_v10, %v5461_v6  ;;  %v1407_v41 = vshrl.u32 %v1080_v18, 16  ;;  %v7845_v59 = vld [vmem:[#allocation34_spill] sm:$0xff] }
 0x161   : > { %7835 = vst [vmem:[#allocation117_spill] sm:$0xff] %v5419_v5  ;;  %v1408_v56 = vshrl.u32 %v1081_v13, 16  ;;  %v1423_v20 = vshrl.u32 %v5461_v6, 16  ;;  %v2138_v29 = vrot.slane %v5464_v15, 4  ;;  %v2150_v48 = vrot.slane %v5466_v57, 4  ;;  %v7847_v6 = vld [vmem:[#allocation70_spill] sm:$0xff] }
 0x162   : > { %7836 = vst [vmem:[#allocation118_spill] sm:$0xff] %v5432_v63  ;;  %v1789_v31 = vsel %vm1690_vm12, %v5475_v33, %v1788_v40  ;;  %v7846_v5 = vrot.slane %v7845_v59, 4  ;;  %v7849_v59 = vld [vmem:[#allocation71_spill] sm:$0xff]  ;;  %vm3566_vm6 = vcmask 261120  }
 0x163   : > { %7837 = vst [vmem:[#allocation119_spill] sm:$0xff] %v5437_v32  ;;  %3278 = vrot.lane.b32.xlu1 %v1789_v31, %s4332_s13  ;;  %v2139_v13 = vsel %vm1690_vm12, %v2138_v29, %v7847_v6  ;;  %v5511_v31 = vperm.slane %v3047_v16, %v5159_v42 }
 0x164   : > { %7838 = vst [vmem:[#allocation120_spill] sm:$0xff] %v5456_v11  ;;  %v7844_v11 = vrot.slane %v4803_v61, 4  ;;  %v2175_v18 = vsel %vm1690_vm12, %v7846_v5, %v5483_v14  ;;  %v2151_v5 = vsel %vm1690_vm12, %v2150_v48, %v7849_v59 }
 0x165   : > { %7839 = vst [vmem:[#allocation121_spill] sm:$0xff] %v5464_v15  ;;  %v2181_v40 = vperm.slane %v2175_v18, %v5159_v42  ;;  %v2157_v29 = vperm.slane %v2151_v5, %v5159_v42  ;;  %v7851_v18 = vld [vmem:[#allocation78_spill] sm:$0xff] }
 0x166   : > { %7840 = vst [vmem:[#allocation122_spill] sm:$0xff] %v5466_v57  ;;  %v2163_v2 = vsel %vm1690_vm12, %v7844_v11, %v5480_v37  ;;  %v1424_v11 = vshrl.u32 %v1085_v10, 16  ;;  %v5516_v57 = vperm.slane %v7851_v18, %v5159_v42  ;;  %v3078_v10 = vrot.slane %v5511_v31, 4 }
 0x167   : > { %7841 = vst [vmem:[#allocation123_spill] sm:$0xff] %v5475_v33  ;;  %v2169_v15 = vperm.slane %v2163_v2, %v5159_v42  ;;  %v7848_v33 = vrot.slane %v5135_v44, 4  ;;  %v2210_v2 = vrot.slane %v2181_v40, 4  ;;  %v2186_v59 = vrot.slane %v2157_v29, 4 }
 0x168   : > { %7842 = vst [vmem:[#allocation124_spill] sm:$0xff] %v5480_v37  ;;  %v2145_v37 = vperm.slane %v2139_v13, %v5159_v42  ;;  %v1399_v13 = vshrl.u32 %v1078_v12, 16  ;;  %v3102_v16 = vrot.slane %v5516_v57, 4  ;;  %v1400_v44 = vshrl.u32 %v1079_v0, 16 }
 0x169   : > { %7843 = vst [vmem:[#allocation125_spill] sm:$0xff] %v5483_v14  ;;  %v3035_v61 = vsel %vm1690_vm12, %v7848_v33, %v5437_v32  ;;  %v2212_v14 = vrot.slane %v2169_v15, 4  ;;  %v2211_v18 = vsel %vm1690_vm12, %v2210_v2, %v2169_v15 }
 0x16a   : > { %7850 = vst [vmem:[#allocation126_spill] sm:$0xff] %v5511_v31  ;;  %v2188_v6 = vrot.slane %v2145_v37, 4  ;;  %v5519_v33 = vperm.slane %v3035_v61, %v5159_v42  ;;  %v2187_v12 = vsel %vm1690_vm12, %v2186_v59, %v2145_v37  ;;  %v3103_v0 = vsel %vm1690_vm12, %v3102_v16, %v5472_v27 }
 0x16b   : > { %7852 = vst [vmem:[#allocation127_spill] sm:$0xff] %v5516_v57  ;;  %v2213_v48 = vsel %vm1690_vm12, %v2181_v40, %v2212_v14  ;;  %v5543_v15 = vperm.slane %v2187_v12, %v5189_v30  ;;  %v5551_v37 = vpack.i.b16 %v1408_v56, %v1407_v41  ;;  %v1415_v59 = vshrl.u32 %v5450_v62, 16  ;;  %v7910_v57 = vld [vmem:[#allocation55_spill] sm:$0xff] }
 0x16c   : > { %v2189_v5 = vsel %vm1690_vm12, %v2157_v29, %v2188_v6  ;;  %v5526_v32 = vperm.slane %v2213_v48, %v5189_v30  ;;  %v3079_v61 = vsel %vm1690_vm12, %v3078_v10, %v5519_v33  ;;  %v3154_v6 = vrot.slane %v5355_v1, 4 }
 0x16d   : > { %v5532_v63 = vperm.slane %v2189_v5, %v5189_v30  ;;  %v5536_v14 = vperm.slane %v3079_v61, %v5189_v30  ;;  %7856 = vst [vmem:[#allocation131_spill] sm:$0xff] %v5543_v15  ;;  %v5546_v29 = vperm.slane %v3103_v0, %v5189_v30  ;;  %v5549_v10 = vpack.i.b16 %v1400_v44, %v1399_v13  ;;  %v7863_v0 = vld [vmem:[#allocation72_spill] sm:$0xff] }
 0x16e   : > { %7853 = vst [vmem:[#allocation128_spill] sm:$0xff] %v5526_v32  ;;  %v2238_v40 = vrot.slane %v5526_v32, 4  ;;  %v5557_v16 = vperm.slane %v2211_v18, %v5189_v30  ;;  %v2236_v5 = vrot.slane %v5543_v15, 4  ;;  %v1416_v61 = vshrl.u32 %v5453_v60, 16  ;;  %v7873_v32 = vld [vmem:[#allocation43_spill] sm:$0xff] }
 0x16f   : > { %7854 = vst [vmem:[#allocation129_spill] sm:$0xff] %v5532_v63  ;;  %v3128_v2 = vrot.slane %v5536_v14, 4  ;;  %v5564_v56 = vpack.i.b16 %v1424_v11, %v1423_v20  ;;  %v2250_v41 = vrot.slane %v5549_v10, 4  ;;  %v2262_v62 = vrot.slane %v5551_v37, 4  ;;  %v7864_v11 = vld [vmem:[#allocation74_spill] sm:$0xff] }
 0x170   : > { %7855 = vst [vmem:[#allocation130_spill] sm:$0xff] %v5536_v14  ;;  %v2239_v48 = vsel %vm1690_vm12, %v2238_v40, %v5532_v63  ;;  %v2237_v18 = vsel %vm1690_vm12, %v5557_v16, %v2236_v5  ;;  %v5571_v13 = vpack.i.b16 %v1416_v61, %v1415_v59  ;;  %v1639_v60 = vshrl.u32 %v5409_v43, 16  ;;  %v7867_v59 = vld [vmem:[#allocation82_spill] sm:$0xff] }
 0x171   : > { %7857 = vst [vmem:[#allocation132_spill] sm:$0xff] %v5546_v29  ;;  %3324 = vrot.lane.b32.xlu2 %v2239_v48, %s4334_s17  ;;  %v3129_v44 = vsel %vm1690_vm12, %v5546_v29, %v3128_v2  ;;  %v1640_v12 = vshrl.u32 %v5426_v3, 16  ;;  %3282 = vrot.lane.b32.xlu0 %v2237_v18, %s4332_s13  ;;  %v2251_v20 = vsel %vm1690_vm12, %v2250_v41, %v7863_v0  ;;  %v7865_v2 = vld [vmem:[#allocation39_spill] sm:$0xff]  ;;  %v1647_v61 = vshrl.u32 %v7867_v59, 16 }
 0x172   : > { %7858 = vst [vmem:[#allocation133_spill] sm:$0xff] %v5549_v10  ;;  %3290 = vrot.lane.b32.xlu1 %v3129_v44, %s4332_s13  ;;  %v2263_v40 = vsel %vm1690_vm12, %v2262_v62, %v7864_v11  ;;  %v7866_v48 = vrot.slane %v7865_v2, 4  ;;  %v5586_v43 = vperm.slane %v2251_v20, %v5159_v42  ;;  %v7870_v44 = vld [vmem:[#allocation51_spill] sm:$0xff]  ;;  %vm1155_vm9 = vcmp.le.f32.partialorder %v7873_v32, %v4698_v53  ;;  %v7882_v11 = vld [vmem:[#allocation32_spill] sm:$0xff] }
 0x173   : > { %7859 = vst [vmem:[#allocation134_spill] sm:$0xff] %v5551_v37  ;;  %v5589_v3 = vperm.slane %v2263_v40, %v5159_v42  ;;  %v7871_v41 = vrot.slane %v7870_v44, 4  ;;  %v5603_v20 = vpack.i.b16 %v1640_v12, %v1639_v60  ;;  %v7875_v59 = vld [vmem:[#allocation83_spill] sm:$0xff]  ;;  %v7876_v40 = vld [vmem:[#allocation80_spill] sm:$0xff]  ;;  %v7880_v37 = vld [vmem:[#allocation33_spill] sm:$0xff]  ;;  %v7881_v60 = vrot.slane %v5137_v26, 4 }
 0x174   : > { %7860 = vst [vmem:[#allocation135_spill] sm:$0xff] %v5557_v16  ;;  %v2287_v5 = vsel %vm1690_vm12, %v7866_v48, %v5564_v56  ;;  %v1648_v63 = vshrl.u32 %v7875_v59, 16  ;;  %v5608_v10 = vperm.slane %v7876_v40, %v5159_v42  ;;  %v4207_v59 = vld [vmem:[%s4573_s14 + $0x8] sm:$0xff]  ;;  %v7911_v1 = vrot.slane %v7910_v57, 4 }
 0x175   : > { %7861 = vst [vmem:[#allocation136_spill] sm:$0xff] %v5564_v56  ;;  %v2275_v18 = vsel %vm1690_vm12, %v7871_v41, %v5571_v13  ;;  %v5596_v62 = vperm.slane %v2287_v5, %v5159_v42  ;;  %v2298_v44 = vrot.slane %v5589_v3, 4  ;;  %v7878_v5 = vld [vmem:[#allocation81_spill] sm:$0xff]  ;;  %v3143_v12 = vsel %vm1690_vm12, %v7881_v60, %v5603_v20 }
 0x176   : > { %7862 = vst [vmem:[#allocation137_spill] sm:$0xff] %v5571_v13  ;;  %v5601_v48 = vperm.slane %v2275_v18, %v5159_v42  ;;  %v5614_v0 = vperm.slane %v7878_v5, %v5159_v42  ;;  %v4206_v13 = vld [vmem:[%s4573_s14] sm:$0xff]  ;;  %v5618_v2 = vpack.i.b16 %v1648_v63, %v1647_v61  ;;  %v1117_v56 = vsub.f32 %v4207_v59, %v7882_v11 }
 0x177   : > { %7868 = vst [vmem:[#allocation82_spill] sm:$0xff] %v5586_v43  ;;  %v2322_v41 = vrot.slane %v5596_v62, 4  ;;  %v1116_v18 = vsub.f32 %v4206_v13, %v7880_v37  ;;  %v5633_v63 = vperm.slane %v3143_v12, %v5159_v42 }
 0x178   : > { %7869 = vst [vmem:[#allocation138_spill] sm:$0xff] %v5589_v3  ;;  %v2299_v3 = vsel %vm1690_vm12, %v2298_v44, %v5586_v43  ;;  %v3210_v13 = vrot.slane %v5614_v0, 4  ;;  %v3155_v59 = vsel %vm1690_vm12, %v3154_v6, %v5618_v2  ;;  %v7885_v6 = vld [vmem:[#allocation86_spill] sm:$0xff] }
 0x179   : > { %7872 = vst [vmem:[#allocation139_spill] sm:$0xff] %v5596_v62  ;;  %v1118_v62 = vsub.f32 %v7804_v17, %v7880_v37  ;;  %v2323_v14 = vsel %vm1690_vm12, %v2322_v41, %v5601_v48  ;;  %v2305_v61 = vperm.slane %v2299_v3, %v5189_v30  ;;  %v1134_v29 = vand.u32 2147483647, %v1116_v18  ;;  %v7886_v3 = vld [vmem:[#allocation73_spill] sm:$0xff] }
 0x17a   : > { %7874 = vst [vmem:[#allocation43_spill] sm:$0xff] %v5601_v48  ;;  %v2329_v60 = vperm.slane %v2323_v14, %v5189_v30  ;;  %v5641_v17 = vperm.slane %v3155_v59, %v5159_v42  ;;  %v3211_v44 = vsel %vm1690_vm12, %v3210_v13, %v5608_v10  ;;  %v1135_v41 = vand.u32 2147483647, %v1117_v56 }
 0x17b   : > { %7877 = vst [vmem:[#allocation83_spill] sm:$0xff] %v5608_v10  ;;  %v1136_v48 = vand.u32 2147483647, %v1118_v62  ;;  %v5646_v43 = vperm.slane %v3211_v44, %v5189_v30  ;;  %vm1152_vm10 = vcmp.le.f32.partialorder %v1134_v29, %v4690_v50  ;;  %v7887_v18 = vrot.slane %v7886_v3, 4 }
 0x17c   : > { %7879 = vst [vmem:[#allocation80_spill] sm:$0xff] %v5614_v0  ;;  %v2346_v12 = vrot.slane %v2329_v60, 4  ;;  %v2348_v0 = vrot.slane %v2305_v61, 4  ;;  %v3186_v14 = vrot.slane %v5641_v17, 4  ;;  %vm1153_vm13 = vcmp.le.f32.partialorder %v1135_v41, %v4698_v53 }
 0x17d   : > { %7883 = vst [vmem:[#allocation81_spill] sm:$0xff] %v5633_v63  ;;  %vm1154_vm14 = vcmp.le.f32.partialorder %v1136_v48, %v4690_v50  ;;  %v2587_v13 = vsel %vm1690_vm12, %v7887_v18, %v7885_v6  ;;  %v3234_v62 = vrot.slane %v5646_v43, 4  ;;  %vm1206_vm0 = vmpackc.low %vm1153_vm13, %vm1152_vm10  ;;  %v1125_v18 = vsub.f32 %v4674_v34, %v7882_v11 }
 0x17e   : > { %7884 = vst [vmem:[#allocation33_spill] sm:$0xff] %v5641_v17  ;;  %v2347_v56 = vsel %vm1690_vm12, %v2346_v12, %v2305_v61  ;;  %v2349_v59 = vsel %vm1690_vm12, %v2329_v60, %v2348_v0  ;;  %v5660_v29 = vperm.slane %v2587_v13, %v5159_v42  ;;  %v3187_v48 = vsel %vm1690_vm12, %v3186_v14, %v5633_v63  ;;  %vm1207_vm1 = vmpackc.low %vm1155_vm9, %vm1154_vm14  ;;  %v7904_v63 = vld [vmem:[#allocation20_spill] sm:$0xff] }
 0x17f   : > { %3261 = vrot.lane.b32.xlu2 %v2347_v56, %s4333_s16  ;;  %3303 = vrot.lane.b32.xlu1 %v2349_v59, %s4335_s27  ;;  %v5670_v61 = vsel %vm1206_vm0, %v5301_v46, 0  ;;  %v5673_v0 = vsel %vm1206_vm0, %v5307_v24, 0  ;;  %v5676_v60 = vsel %vm1206_vm0, %v5313_v45, 0  ;;  %v5679_v44 = vperm.slane %v3187_v48, %v5189_v30 }
 0x180   : > { %v5682_v41 = vsel %vm1206_vm0, %v5319_v4, 0  ;;  %v5685_v12 = vsel %vm1207_vm1, %v7813_v8, 0  ;;  %v5688_v32 = vsel %vm1207_vm1, %v7815_v54, 0  ;;  %v5691_v46 = vsel %vm1207_vm1, %v7817_v28, 0 }
 0x181   : > { %v5694_v24 = vsel %vm1207_vm1, %v7819_v25, 0  ;;  %v5698_v45 = vpack.i.b16 %v5673_v0, %v5670_v61  ;;  %v5702_v4 = vpack.i.b16 %v5682_v41, %v5676_v60  ;;  %v3235_v8 = vsel %vm1690_vm12, %v3234_v62, %v5679_v44 }
 0x182   : > { %v5708_v54 = vpack.i.b16 %v5688_v32, %v5685_v12  ;;  %v5712_v28 = vpack.i.b16 %v5694_v24, %v5691_v46  ;;  %v5716_v25 = vperm.slane %v5369_v55, %v5159_v42  ;;  %3269 = vrot.lane.b32.xlu0 %v3235_v8, %s4333_s16  ;;  %v1124_v14 = vsub.f32 %v4683_v38, %v7880_v37  ;;  %v7895_v8 = vld [vmem:[#allocation21_spill] sm:$0xff] }
 0x183   : > { %7888 = vst [vmem:[#allocation32_spill] sm:$0xff] %v5698_v45  ;;  %v5726_v56 = vsel %vm4796_vm15, %v7775_v52, 0  ;;  %v5731_v62 = vsel %vm4796_vm15, %v7776_v7, 0  ;;  %v1143_v37 = vand.u32 2147483647, %v1125_v18  ;;  %v7894_v52 = vld [vmem:[#allocation64_spill] sm:$0xff]  ;;  %v856_v7 = vsub.f32 %v7895_v8, %v4693_v51 }
 0x184   : > { %7889 = vst [vmem:[#allocation140_spill] sm:$0xff] %v5702_v4  ;;  %v2610_v55 = vrot.slane %v5708_v54, 4  ;;  %v2622_v59 = vrot.slane %v5712_v28, 4  ;;  %v2634_v48 = vrot.slane %v5716_v25, 4  ;;  %v5738_v38 = vpack.i.b16 %v5731_v62, %v5726_v56 }
 0x185   : > { %7890 = vst [vmem:[#allocation141_spill] sm:$0xff] %v5708_v54  ;;  %v1142_v34 = vand.u32 2147483647, %v1124_v14  ;;  %v5742_v11 = vperm.slane %v7894_v52, %v5159_v42  ;;  %v7896_v14 = vld [vmem:[#allocation85_spill] sm:$0xff]  ;;  %vm1161_vm3 = vcmp.le.f32.partialorder %v1143_v37, %v4698_v53  ;;  %vm3581_vm9 = vcmask 392192  }
 0x186   : > { %7891 = vst [vmem:[#allocation142_spill] sm:$0xff] %v5712_v28  ;;  %v2611_v13 = vsel %vm1690_vm12, %v2610_v55, %v5698_v45  ;;  %v2623_v28 = vsel %vm1690_vm12, %v2622_v59, %v5702_v4  ;;  %v2635_v3 = vsel %vm1690_vm12, %v2634_v48, %v5660_v29  ;;  %v2810_v54 = vrot.slane %v5738_v38, 4  ;;  %v7898_v55 = vld [vmem:[#allocation60_spill] sm:$0xff]  ;;  %v7902_v37 = vld [vmem:[#allocation29_spill] sm:$0xff] }
 0x187   : > { %7893 = vst [vmem:[#allocation44_spill] sm:$0xff] %v5738_v38  ;;  %v5755_v6 = vperm.slane %v2623_v28, %v5159_v42  ;;  %v5758_v52 = vperm.slane %v2635_v3, %v5189_v30  ;;  %vm1160_vm15 = vcmp.le.f32.partialorder %v1142_v34, %v4690_v50  ;;  %v5762_v51 = vperm.slane %v2611_v13, %v5159_v42  ;;  %v7899_v3 = vld [vmem:[#allocation22_spill] sm:$0xff]  ;;  %v7900_v34 = vld [vmem:[#allocation23_spill] sm:$0xff] }
 0x188   : > { %v2811_v59 = vsel %vm1690_vm12, %v2810_v54, %v7898_v55  ;;  %v2858_v48 = vrot.slane %v5742_v11, 4  ;;  %vm1210_vm4 = vmpackc.low %vm1161_vm3, %vm1160_vm15  ;;  %v857_v18 = vsub.f32 %v7899_v3, %v4678_v36  ;;  %v874_v4 = vand.u32 2147483647, %v856_v7  ;;  %v7901_v13 = vld [vmem:[#allocation30_spill] sm:$0xff]  ;;  %v7917_v3 = vld [vmem:[#allocation16_spill] sm:$0xff] }
 0x189   : > { %7897 = vst [vmem:[#allocation64_spill] sm:$0xff] %v5758_v52  ;;  %v2658_v8 = vrot.slane %v5755_v6, 4  ;;  %v2684_v28 = vrot.slane %v5758_v52, 4  ;;  %v5773_v45 = vsel %vm1210_vm4, %v7900_v34, 0  ;;  %v5776_v38 = vsel %vm1210_vm4, %v7901_v13, 0  ;;  %v7903_v54 = vld [vmem:[#allocation26_spill] sm:$0xff] }
 0x18a   : > { %v5779_v17 = vsel %vm1210_vm4, %v7902_v37, 0  ;;  %v5782_v55 = vsel %vm1210_vm4, %v7903_v54, 0  ;;  %v5789_v36 = vpack.i.b16 %v5776_v38, %v5773_v45  ;;  %v5792_v7 = vperm.slane %v2811_v59, %v5159_v42 }
 0x18b   : > { %v2659_v52 = vsel %vm1690_vm12, %v2658_v8, %v5762_v51  ;;  %v5801_v54 = vpack.i.b16 %v5782_v55, %v5779_v17  ;;  %v7908_v8 = vld [vmem:[#allocation53_spill] sm:$0xff]  ;;  %v875_v31 = vand.u32 2147483647, %v857_v18  ;;  %vm892_vm5 = vcmp.le.f32.partialorder %v874_v4, %v4690_v50 }
 0x18c   : > { %7905 = vst [vmem:[#allocation21_spill] sm:$0xff] %v5789_v36  ;;  %v5797_v10 = vperm.slane %v2659_v52, %v5189_v30  ;;  %v7909_v15 = vrot.slane %v7908_v8, 4  ;;  %v2859_v59 = vsel %vm1690_vm12, %v2858_v48, %v5792_v7  ;;  %v5829_v4 = vsel %vm4874_vm11, %v7900_v34, 0 }
 0x18d   : > { %7907 = vst [vmem:[#allocation23_spill] sm:$0xff] %v5801_v54  ;;  %v2847_v8 = vsel %vm1690_vm12, %v7911_v1, %v5801_v54  ;;  %v5823_v18 = vperm.slane %v2859_v59, %v5189_v30  ;;  %vm893_vm7 = vcmp.le.f32.partialorder %v875_v31, %v4698_v53  ;;  %v960_v1 = vsel %vm4874_vm11, %v7901_v13, 0  ;;  %v7918_v13 = vld [vmem:[#allocation15_spill] sm:$0xff] }
 0x18e   : > { %7906 = vst [vmem:[#allocation22_spill] sm:$0xff] %v5797_v10  ;;  %v2835_v16 = vsel %vm1690_vm12, %v7909_v15, %v5789_v36  ;;  %v2685_v52 = vsel %vm1690_vm12, %v5797_v10, %v2684_v28  ;;  %v5820_v15 = vperm.slane %v2847_v8, %v5159_v42  ;;  %vm940_vm8 = vmpackc.low %vm893_vm7, %vm892_vm5  ;;  %v7914_v28 = vld [vmem:[#allocation65_spill] sm:$0xff]  ;;  %v2572_v53 = vrot.slane %v5291_v39, 4 }
 0x18f   : > { %3286 = vrot.lane.b32.xlu2 %v2685_v52, %s4332_s13  ;;  %7912 = vst [vmem:[#allocation30_spill] sm:$0xff] %v5823_v18  ;;  %v5832_v48 = vperm.slane %v2835_v16, %v5159_v42  ;;  %v7915_v8 = vld [vmem:[#allocation49_spill] sm:$0xff]  ;;  %v5844_v34 = vsel %vm940_vm8, %v7781_v19, 0  ;;  %v5847_v16 = vsel %vm940_vm8, %v7782_v23, 0  ;;  %v1543_v37 = vshrl.u32 %v5670_v61, 16 }
 0x190   : > { %v7916_v52 = vrot.slane %v7915_v8, 4  ;;  %v2882_v31 = vrot.slane %v5820_v15, 4  ;;  %v969_v50 = vsel %vm940_vm8, %v7917_v3, 0  ;;  %v970_v10 = vsel %vm940_vm8, %v7918_v13, 0  ;;  %v7923_v13 = vld [vmem:[#allocation48_spill] sm:$0xff] }
 0x191   : > { %v5853_v8 = vpack.i.b16 %v960_v1, %v5829_v4  ;;  %v5857_v39 = vpack.i.b16 %v5847_v16, %v5844_v34  ;;  %v5862_v23 = vpack.i.b16 %v970_v10, %v969_v50  ;;  %v1360_v3 = vshrl.u32 %v970_v10, 16 }
 0x192   : > { %v1927_v59 = vsel %vm1690_vm12, %v7916_v52, %v7914_v28  ;;  %v2883_v19 = vsel %vm1690_vm12, %v2882_v31, %v5832_v48  ;;  %v2908_v52 = vrot.slane %v5823_v18, 4  ;;  %v1359_v28 = vshrl.u32 %v969_v50, 16 }
 0x193   : > { %7919 = vst [vmem:[#allocation29_spill] sm:$0xff] %v5853_v8  ;;  %v5865_v61 = vperm.slane %v2883_v19, %v5189_v30  ;;  %v7924_v57 = vrot.slane %v7923_v13, 4  ;;  %v7925_v54 = vrot.slane %v5111_v9, 4  ;;  %v5879_v18 = vperm.slane %v1927_v59, %v5159_v42 }
 0x194   : > { %7920 = vst [vmem:[#allocation26_spill] sm:$0xff] %v5857_v39  ;;  %v7926_v10 = vrot.slane %v5119_v49, 4  ;;  %v7938_v49 = vld [vmem:[#allocation62_spill] sm:$0xff]  ;;  %vm3544_vm11 = vcmask 130048   ;;  %vm3596_vm10 = vcmask 523264   ;;  %vm3611_vm13 = vcmask 654336  }
 0x195   : > { %7921 = vst [vmem:[#allocation56_spill] sm:$0xff] %v5862_v23  ;;  %v1915_v36 = vsel %vm1690_vm12, %v7924_v57, %v5853_v8  ;;  %v1939_v26 = vsel %vm1690_vm12, %v7925_v54, %v5857_v39  ;;  %v2909_v57 = vsel %vm1690_vm12, %v5865_v61, %v2908_v52  ;;  %v1544_v54 = vshrl.u32 %v5673_v0, 16 }
 0x196   : > { %7922 = vst [vmem:[#allocation16_spill] sm:$0xff] %v5865_v61  ;;  %v5876_v31 = vperm.slane %v1915_v36, %v5159_v42  ;;  %v5882_v50 = vperm.slane %v1939_v26, %v5159_v42  ;;  %v1951_v19 = vsel %vm1690_vm12, %v7926_v10, %v5862_v23  ;;  %v2573_v36 = vsel %vm1690_vm12, %v5294_v47, %v2572_v53 }
 0x197   : > { %v5891_v13 = vperm.slane %v1951_v19, %v5159_v42  ;;  %3288 = vrot.lane.b32.xlu0 %v2909_v57, %s4332_s13  ;;  %3305 = vrot.lane.b32.xlu2 %v2573_v36, %s4335_s27  ;;  %v1551_v10 = vshrl.u32 %v5676_v60, 16  ;;  %v1552_v52 = vshrl.u32 %v5682_v41, 16  ;;  %v5902_v8 = vpack.i.b16 %v1544_v54, %v1543_v37 }
 0x198   : > { %v1964_v26 = vrot.slane %v5876_v31, 4  ;;  %v1988_v59 = vrot.slane %v5882_v50, 4  ;;  %v1559_v19 = vshrl.u32 %v5685_v12, 16  ;;  %v1560_v47 = vshrl.u32 %v5688_v32, 16  ;;  %v7929_v32 = vld [vmem:[#allocation87_spill] sm:$0xff] }
 0x199   : > { %v1567_v0 = vshrl.u32 %v5691_v46, 16  ;;  %v5911_v9 = vpack.i.b16 %v1552_v52, %v1551_v10  ;;  %v1568_v60 = vshrl.u32 %v5694_v24, 16  ;;  %v7930_v46 = vld [vmem:[#allocation75_spill] sm:$0xff]  ;;  %v7933_v10 = vld [vmem:[#allocation89_spill] sm:$0xff]  ;;  %v1328_v23 = vshrl.u32 %v7938_v49, 16 }
 0x19a   : > { %v1965_v53 = vsel %vm1690_vm12, %v5879_v18, %v1964_v26  ;;  %v1989_v57 = vsel %vm1690_vm12, %v5891_v13, %v1988_v59  ;;  %v5920_v12 = vpack.i.b16 %v1560_v47, %v1559_v19  ;;  %v7931_v36 = vrot.slane %v7930_v46, 4  ;;  %v7934_v24 = vld [vmem:[#allocation79_spill] sm:$0xff] }
 0x19b   : > { %v5915_v41 = vperm.slane %v1965_v53, %v5189_v30  ;;  %v5918_v37 = vperm.slane %v1989_v57, %v5189_v30  ;;  %v5926_v26 = vpack.i.b16 %v1568_v60, %v1567_v0  ;;  %v7935_v52 = vrot.slane %v7934_v24, 4  ;;  %v7937_v60 = vld [vmem:[#allocation61_spill] sm:$0xff] }
 0x19c   : > { %v2699_v54 = vsel %vm1690_vm12, %v7931_v36, %v7929_v32  ;;  %v1319_v57 = vshrl.u32 %v5829_v4, 16  ;;  %v2722_v39 = vrot.slane %v5920_v12, 4  ;;  %v1320_v36 = vshrl.u32 %v960_v1, 16 }
 0x19d   : > { %7927 = vst [vmem:[#allocation15_spill] sm:$0xff] %v5915_v41  ;;  %v5929_v59 = vperm.slane %v2699_v54, %v5159_v42  ;;  %v2711_v53 = vsel %vm1690_vm12, %v7935_v52, %v7933_v10  ;;  %v2014_v19 = vrot.slane %v5918_v37, 4  ;;  %v2734_v0 = vrot.slane %v5926_v26, 4 }
 0x19e   : > { %7928 = vst [vmem:[#allocation143_spill] sm:$0xff] %v5918_v37  ;;  %v5938_v47 = vperm.slane %v2711_v53, %v5159_v42  ;;  %v1327_v54 = vshrl.u32 %v7937_v60, 16  ;;  %v1351_v61 = vshrl.u32 %v5844_v34, 16  ;;  %v2723_v4 = vsel %vm1690_vm12, %v2722_v39, %v5902_v8 }
 0x19f   : > { %7932 = vst [vmem:[#allocation87_spill] sm:$0xff] %v5929_v59  ;;  %v2015_v52 = vsel %vm1690_vm12, %v2014_v19, %v5915_v41  ;;  %v5950_v37 = vpack.i.b16 %v1320_v36, %v1319_v57  ;;  %v5954_v1 = vperm.slane %v2723_v4, %v5159_v42  ;;  %v2735_v49 = vsel %vm1690_vm12, %v2734_v0, %v5911_v9  ;;  %v7943_v36 = vld [vmem:[#allocation50_spill] sm:$0xff] }
 0x1a0   : > { %7936 = vst [vmem:[#allocation75_spill] sm:$0xff] %v5938_v47  ;;  %v2746_v53 = vrot.slane %v5938_v47, 4  ;;  %3322 = vrot.lane.b32.xlu1 %v2015_v52, %s4334_s17  ;;  %v5958_v60 = vpack.i.b16 %v1328_v23, %v1327_v54  ;;  %v1352_v34 = vshrl.u32 %v5847_v16, 16  ;;  %v5962_v19 = vperm.slane %v2735_v49, %v5159_v42  ;;  %v7947_v16 = vld [vmem:[#allocation52_spill] sm:$0xff] }
 0x1a1   : > { %7939 = vst [vmem:[#allocation89_spill] sm:$0xff] %v5950_v37  ;;  %v5966_v57 = vpack.i.b16 %v1360_v3, %v1359_v28  ;;  %v7944_v52 = vrot.slane %v7943_v36, 4  ;;  %v7948_v54 = vrot.slane %v7947_v16, 4  ;;  %v1986_v36 = vrot.slane %v5891_v13, 4  ;;  %v7956_v16 = vld [vmem:[#allocation118_spill] sm:$0xff]  ;;  %v7977_v47 = vld [vmem:[#allocation108_spill] sm:$0xff] }
 0x1a2   : > { %7940 = vst [vmem:[#allocation79_spill] sm:$0xff] %v5958_v60  ;;  %v2747_v39 = vsel %vm1690_vm12, %v2746_v53, %v5929_v59  ;;  %v5973_v0 = vpack.i.b16 %v1352_v34, %v1351_v61  ;;  %v2770_v28 = vrot.slane %v5962_v19, 4  ;;  %v7950_v53 = vrot.slane %v7904_v63, 4 }
 0x1a3   : > { %7941 = vst [vmem:[#allocation61_spill] sm:$0xff] %v5962_v19  ;;  %v2027_v4 = vsel %vm1690_vm12, %v7944_v52, %v5950_v37  ;;  %v2753_v41 = vperm.slane %v2747_v39, %v5189_v30  ;;  %v2039_v49 = vsel %vm1690_vm12, %v7948_v54, %v5958_v60  ;;  %v1962_v61 = vrot.slane %v5879_v18, 4 }
 0x1a4   : > { %7942 = vst [vmem:[#allocation62_spill] sm:$0xff] %v5966_v57  ;;  %v5976_v23 = vperm.slane %v2027_v4, %v5159_v42  ;;  %v5984_v3 = vperm.slane %v2039_v49, %v5159_v42  ;;  %v2063_v39 = vsel %vm1690_vm12, %v7950_v53, %v5966_v57  ;;  %v7951_v52 = vrot.slane %v7896_v14, 4  ;;  %v7975_v57 = vld [vmem:[#allocation40_spill] sm:$0xff] }
 0x1a5   : > { %7945 = vst [vmem:[#allocation144_spill] sm:$0xff] %v5973_v0  ;;  %v2796_v34 = vrot.slane %v2753_v41, 4  ;;  %v5996_v54 = vperm.slane %v2063_v39, %v5159_v42  ;;  %v2771_v49 = vsel %vm1690_vm12, %v2770_v28, %v5954_v1  ;;  %v1963_v18 = vsel %vm1690_vm12, %v1962_v61, %v5876_v31 }
 0x1a6   : > { %7946 = vst [vmem:[#allocation145_spill] sm:$0xff] %v5976_v23  ;;  %v2051_v4 = vsel %vm1690_vm12, %v7951_v52, %v5973_v0  ;;  %v2074_v53 = vrot.slane %v5984_v3, 4  ;;  %v2777_v14 = vperm.slane %v2771_v49, %v5189_v30  ;;  %v6010_v39 = vperm.slane %v1963_v18, %v5189_v30 }
 0x1a7   : > { %7949 = vst [vmem:[#allocation146_spill] sm:$0xff] %v5984_v3  ;;  %v6002_v37 = vperm.slane %v2051_v4, %v5159_v42  ;;  %v2098_v52 = vrot.slane %v5996_v54, 4  ;;  %v1987_v13 = vsel %vm1690_vm12, %v1986_v36, %v5882_v50  ;;  %v1740_v3 = vrot.slane %v5429_v22, 4  ;;  %v7957_v22 = vld [vmem:[#allocation117_spill] sm:$0xff] }
 0x1a8   : > { %7952 = vst [vmem:[#allocation147_spill] sm:$0xff] %v5996_v54  ;;  %v2075_v28 = vsel %vm1690_vm12, %v2074_v53, %v5976_v23  ;;  %v6017_v4 = vperm.slane %v1987_v13, %v5189_v30  ;;  %v1764_v31 = vrot.slane %v7956_v16, 4  ;;  %v1608_v61 = vshrl.u32 %v5776_v38, 16 }
 0x1a9   : > { %7953 = vst [vmem:[#allocation148_spill] sm:$0xff] %v6002_v37  ;;  %v2797_v49 = vsel %vm1690_vm12, %v2777_v14, %v2796_v34  ;;  %v2099_v18 = vsel %vm1690_vm12, %v2098_v52, %v6002_v37  ;;  %v2012_v54 = vrot.slane %v6010_v39, 4  ;;  %v1615_v50 = vshrl.u32 %v5779_v17, 16  ;;  %v7958_v52 = vld [vmem:[#allocation116_spill] sm:$0xff] }
 0x1aa   : > { %7954 = vst [vmem:[#allocation149_spill] sm:$0xff] %v6010_v39  ;;  %v1616_v36 = vshrl.u32 %v5782_v55, 16  ;;  %3307 = vrot.lane.b32.xlu0 %v2797_v49, %s4335_s27  ;;  %v6030_v53 = vperm.slane %v2099_v18, %v5189_v30  ;;  %v1765_v16 = vsel %vm1690_vm12, %v7957_v22, %v1764_v31  ;;  %v6035_v38 = vperm.slane %v2075_v28, %v5189_v30  ;;  %v7960_v18 = vld [vmem:[#allocation46_spill] sm:$0xff] }
 0x1ab   : > { %7955 = vst [vmem:[#allocation150_spill] sm:$0xff] %v6017_v4  ;;  %v2013_v34 = vsel %vm1690_vm12, %v6017_v4, %v2012_v54  ;;  %v1741_v13 = vsel %vm1690_vm12, %v7958_v52, %v1740_v3  ;;  %v6042_v17 = vperm.slane %v1765_v16, %v5189_v30  ;;  %v1591_v49 = vshrl.u32 %v5726_v56, 16  ;;  %v7961_v54 = vld [vmem:[#allocation47_spill] sm:$0xff] }
 0x1ac   : > { %v2122_v55 = vrot.slane %v6030_v53, 4  ;;  %3280 = vrot.lane.b32.xlu2 %v2013_v34, %s4332_s13  ;;  %v1592_v31 = vshrl.u32 %v5731_v62, 16  ;;  %v1599_v28 = vshrl.u32 %v7960_v18, 16  ;;  %v2794_v23 = vrot.slane %v2777_v14, 4  ;;  %v7964_v18 = vld [vmem:[#allocation109_spill] sm:$0xff] }
 0x1ad   : > { %7959 = vst [vmem:[#allocation118_spill] sm:$0xff] %v6042_v17  ;;  %v1790_v22 = vrot.slane %v6042_v17, 4  ;;  %v1600_v37 = vshrl.u32 %v7961_v54, 16  ;;  %v7962_v3 = vshrl.u32 %v5773_v45, 16  ;;  %v6058_v34 = vperm.slane %v1741_v13, %v5189_v30  ;;  %v7965_v45 = vld [vmem:[#allocation57_spill] sm:$0xff] }
 0x1ae   : > { %v2123_v16 = vsel %vm1690_vm12, %v2122_v55, %v6035_v38  ;;  %v6060_v56 = vpack.i.b16 %v1592_v31, %v1591_v49  ;;  %v6062_v62 = vpack.i.b16 %v1616_v36, %v1615_v50  ;;  %v1312_v0 = vshrl.u32 %v7964_v18, 16  ;;  %v7967_v50 = vld [vmem:[#allocation58_spill] sm:$0xff]  ;;  %v7972_v17 = vld [vmem:[#allocation25_spill] sm:$0xff] }
 0x1af   : > { %v6053_v52 = vpack.i.b16 %v1608_v61, %v7962_v3  ;;  %7963 = vst [vmem:[#allocation117_spill] sm:$0xff] %v6058_v34  ;;  %3259 = vrot.lane.b32.xlu1 %v2123_v16, %s4333_s16  ;;  %v2795_v14 = vsel %vm1690_vm12, %v2794_v23, %v2753_v41  ;;  %v6067_v54 = vpack.i.b16 %v1600_v37, %v1599_v28  ;;  %v7966_v61 = vrot.slane %v7965_v45, 4  ;;  %v7969_v3 = vld [vmem:[#allocation105_spill] sm:$0xff]  ;;  %v7970_v28 = vld [vmem:[#allocation106_spill] sm:$0xff] }
 0x1b0   : > { %v1791_v13 = vsel %vm1690_vm12, %v1790_v22, %v6058_v34  ;;  %v2922_v49 = vrot.slane %v6060_v56, 4  ;;  %v7968_v36 = vrot.slane %v7967_v50, 4  ;;  %v1255_v16 = vshrl.u32 %v7969_v3, 16  ;;  %v7971_v22 = vld [vmem:[#allocation63_spill] sm:$0xff]  ;;  %v7974_v3 = vld [vmem:[#allocation24_spill] sm:$0xff] }
 0x1b1   : > { %v2947_v55 = vsel %vm1690_vm12, %v7966_v61, %v6053_v52  ;;  %v2934_v41 = vrot.slane %v6067_v54, 4  ;;  %v1256_v18 = vshrl.u32 %v7970_v28, 16  ;;  %v1271_v34 = vshrl.u32 %v7972_v17, 16 }
 0x1b2   : > { %v2959_v31 = vsel %vm1690_vm12, %v7968_v36, %v6062_v62  ;;  %v6083_v37 = vperm.slane %v2947_v55, %v5159_v42  ;;  %3320 = vrot.lane.b32.xlu0 %v1791_v13, %s4334_s17  ;;  %v2923_v61 = vsel %vm1690_vm12, %v2922_v49, %v7971_v22  ;;  %v7973_v36 = vld [vmem:[#allocation28_spill] sm:$0xff]  ;;  %v1279_v63 = vshrl.u32 %v7974_v3, 16  ;;  %v7979_v49 = vld [vmem:[#allocation27_spill] sm:$0xff] }
 0x1b3   : > { %v6086_v23 = vperm.slane %v2959_v31, %v5159_v42  ;;  %v1272_v60 = vshrl.u32 %v7973_v36, 16  ;;  %v2935_v55 = vsel %vm1690_vm12, %v2934_v41, %v7975_v57  ;;  %v7976_v31 = vld [vmem:[#allocation107_spill] sm:$0xff]  ;;  %v1264_v28 = vshrl.u32 %v7977_v47, 16 }
 0x1b4   : > { %v1263_v4 = vshrl.u32 %v7976_v31, 16  ;;  %v6101_v13 = vperm.slane %v2935_v55, %v5159_v42  ;;  %v1280_v17 = vshrl.u32 %v7979_v49, 16  ;;  %v7980_v36 = vshrl.u32 %v5338_v21, 16 }
 0x1b5   : > { %v2994_v39 = vrot.slane %v6086_v23, 4  ;;  %v6103_v19 = vpack.i.b16 %v1272_v60, %v1271_v34  ;;  %v7981_v3 = vshrl.u32 %v5341_v35, 16  ;;  %v6113_v41 = vperm.slane %v2923_v61, %v5159_v42 }
 0x1b6   : > { %v6117_v47 = vpack.i.b16 %v1256_v18, %v1255_v16  ;;  %v7984_v55 = vshrl.u32 %v5344_v58, 16  ;;  %v2970_v34 = vrot.slane %v6101_v13, 4  ;;  %v6125_v49 = vpack.i.b16 %v1280_v17, %v1279_v63 }
 0x1b7   : > { %7978 = vst [vmem:[#allocation116_spill] sm:$0xff] %v6103_v19  ;;  %v6110_v59 = vpack.i.b16 %v7981_v3, %v7980_v36  ;;  %v2995_v31 = vsel %vm1690_vm12, %v2994_v39, %v6083_v37  ;;  %v1802_v35 = vrot.slane %v6103_v19, 4  ;;  %3265 = vrot.lane.b32.xlu1 %v2795_v14, %s4333_s16  ;;  %v6129_v61 = vpack.i.b16 %v1264_v28, %v1263_v4  ;;  %v7987_v36 = vld [vmem:[#allocation36_spill] sm:$0xff]  ;;  %v7988_v4 = vld [vmem:[#allocation37_spill] sm:$0xff] }
 0x1b8   : > { %7983 = vst [vmem:[#allocation47_spill] sm:$0xff] %v6117_v47  ;;  %v6121_v60 = vpack.i.b16 %v1312_v0, %v7984_v55  ;;  %v3001_v21 = vperm.slane %v2995_v31, %v5189_v30  ;;  %v2971_v58 = vsel %vm1690_vm12, %v2970_v34, %v6113_v41  ;;  %v1814_v63 = vrot.slane %v6125_v49, 4 }
 0x1b9   : > { %7982 = vst [vmem:[#allocation46_spill] sm:$0xff] %v6110_v59  ;;  %v1826_v39 = vrot.slane %v6110_v59, 4  ;;  %v1803_v18 = vsel %vm1690_vm12, %v1802_v35, %v6117_v47  ;;  %v2977_v17 = vperm.slane %v2971_v58, %v5189_v30  ;;  %v2636_v34 = vrot.slane %v5660_v29, 4  ;;  %v7989_v59 = vld [vmem:[#allocation95_spill] sm:$0xff] }
 0x1ba   : > { %7985 = vst [vmem:[#allocation109_spill] sm:$0xff] %v6125_v49  ;;  %v1838_v16 = vrot.slane %v6121_v60, 4  ;;  %v3018_v0 = vrot.slane %v3001_v21, 4  ;;  %v1809_v3 = vperm.slane %v1803_v18, %v5159_v42  ;;  %v1815_v31 = vsel %vm1690_vm12, %v1814_v63, %v6129_v61  ;;  %v7990_v49 = vld [vmem:[#allocation77_spill] sm:$0xff] }
 0x1bb   : > { %7986 = vst [vmem:[#allocation57_spill] sm:$0xff] %v6129_v61  ;;  %v1827_v14 = vsel %vm1690_vm12, %v1826_v39, %v7987_v36  ;;  %v1821_v19 = vperm.slane %v1815_v31, %v5159_v42  ;;  %v3020_v58 = vrot.slane %v2977_v17, 4  ;;  %v2660_v47 = vrot.slane %v5762_v51, 4 }
 0x1bc   : > { %v1839_v28 = vsel %vm1690_vm12, %v1838_v16, %v7988_v4  ;;  %v3019_v35 = vsel %vm1690_vm12, %v3018_v0, %v2977_v17  ;;  %v1833_v39 = vperm.slane %v1827_v14, %v5159_v42  ;;  %v3236_v18 = vrot.slane %v5679_v44, 4  ;;  %v7991_v44 = vld [vmem:[#allocation93_spill] sm:$0xff] }
 0x1bd   : > { %v1845_v55 = vperm.slane %v1839_v28, %v5159_v42  ;;  %3267 = vrot.lane.b32.xlu2 %v3019_v35, %s4333_s16  ;;  %v2436_v63 = vrot.slane %v7989_v59, 4  ;;  %v3058_v28 = vrot.slane %v7990_v49, 4  ;;  %v1850_v61 = vrot.slane %v1821_v19, 4 }
 0x1be   : > { %v3021_v29 = vsel %vm1690_vm12, %v3001_v21, %v3020_v58  ;;  %v2661_v0 = vsel %vm1690_vm12, %v5755_v6, %v2660_v47  ;;  %v2637_v51 = vsel %vm1690_vm12, %v5716_v25, %v2636_v34  ;;  %v6164_v14 = vsel %vm1690_vm12, %v5646_v43, %v3236_v18  ;;  %v7992_v21 = vld [vmem:[#allocation96_spill] sm:$0xff]  ;;  %v7993_v58 = vld [vmem:[#allocation78_spill] sm:$0xff] }
 0x1bf   : > { %v1874_v16 = vrot.slane %v1845_v55, 4  ;;  %v2412_v31 = vrot.slane %v7991_v44, 4  ;;  %v1851_v59 = vsel %vm1690_vm12, %v1850_v61, %v1809_v3  ;;  %3309 = vrot.lane.b32.xlu1 %v3021_v29, %s4335_s27  ;;  %v2437_v6 = vsel %vm1690_vm12, %v7992_v21, %v2436_v63  ;;  %v7994_v21 = vld [vmem:[#allocation94_spill] sm:$0xff] }
 0x1c0   : > { %v1852_v47 = vrot.slane %v1809_v3, 4  ;;  %v1857_v25 = vperm.slane %v1851_v59, %v5189_v30  ;;  %v6175_v34 = vperm.slane %v2661_v0, %v5189_v30  ;;  %v6178_v43 = vperm.slane %v2437_v6, %v5189_v30 }
 0x1c1   : > { %v1875_v17 = vsel %vm1690_vm12, %v1874_v16, %v1833_v39  ;;  %v3068_v16 = vrot.slane %v7993_v58, 4  ;;  %v3166_v61 = vrot.slane %v7876_v40, 4  ;;  %v2860_v29 = vrot.slane %v5792_v7, 4 }
 0x1c2   : > { %v1881_v35 = vperm.slane %v1875_v17, %v5189_v30  ;;  %v1876_v17 = vrot.slane %v1833_v39, 4  ;;  %v1900_v44 = vrot.slane %v1857_v25, 4  ;;  %v2124_v63 = vrot.slane %v6035_v38, 4 }
 0x1c3   : > { %v6184_v3 = vperm.slane %v2637_v51, %v5189_v30  ;;  %v2413_v59 = vsel %vm1690_vm12, %v7994_v21, %v2412_v31  ;;  %v1853_v6 = vsel %vm1690_vm12, %v1821_v19, %v1852_v47  ;;  %v2884_v40 = vrot.slane %v5832_v48, 4 }
 0x1c4   : > { %v1898_v18 = vrot.slane %v1881_v35, 4  ;;  %v1877_v58 = vsel %vm1690_vm12, %v1845_v55, %v1876_v17  ;;  %v3176_v39 = vrot.slane %v7878_v5, 4  ;;  %v1901_v7 = vsel %vm1690_vm12, %v1881_v35, %v1900_v44 }
 0x1c5   : > { %v2686_v38 = vrot.slane %v6175_v34, 4  ;;  %v2462_v51 = vrot.slane %v6178_v43, 4  ;;  %3299 = vrot.lane.b32.xlu2 %v1901_v7, %s4335_s27  ;;  %v2125_v31 = vsel %vm1690_vm12, %v6030_v53, %v2124_v63  ;;  %v6201_v19 = vperm.slane %v2413_v59, %v5189_v30  ;;  %v7996_v59 = vld [vmem:[#allocation91_spill] sm:$0xff] }
 0x1c6   : > { %v1899_v0 = vsel %vm1690_vm12, %v1898_v18, %v1857_v25  ;;  %v2861_v48 = vsel %vm1690_vm12, %v5742_v11, %v2860_v29  ;;  %v6208_v55 = vperm.slane %v1853_v6, %v5189_v30  ;;  %v6211_v35 = vperm.slane %v1877_v58, %v5189_v30  ;;  %v7998_v6 = vld [vmem:[#allocation119_spill] sm:$0xff] }
 0x1c7   : > { %3257 = vrot.lane.b32.xlu0 %v1899_v0, %s4333_s16  ;;  %v2687_v5 = vsel %vm1690_vm12, %v2686_v38, %v6184_v3  ;;  %v4336_v47 = vmov 0   ;;  %v2885_v53 = vsel %vm1690_vm12, %v5820_v15, %v2884_v40  ;;  %v3080_v18 = vrot.slane %v5519_v33, 4  ;;  %v7997_v15 = vld [vmem:[#allocation42_spill] sm:$0xff] }
 0x1c8   : > { %7995 = vst [vmem:[#allocation58_spill] sm:$0xff] %v6211_v35  ;;  %v1684_v25 = vpack.i.b16 0, %v4336_v47  ;;  %3328 = vrot.lane.b32.xlu1 %v2687_v5, %s4334_s17  ;;  %v3144_v11 = vrot.slane %v5603_v20, 4  ;;  %v3156_v17 = vrot.slane %v5618_v2, 4  ;;  %v2463_v29 = vsel %vm1690_vm12, %v2462_v51, %v6201_v19  ;;  %v7999_v38 = vld [vmem:[#allocation90_spill] sm:$0xff]  ;;  %v8001_v47 = vld [vmem:[#allocation127_spill] sm:$0xff] }
 0x1c9   : > { %v6222_v44 = vperm.slane %v2861_v48, %v5189_v30  ;;  %v3104_v63 = vrot.slane %v5472_v27, 4  ;;  %v3036_v2 = vrot.slane %v7998_v6, 4  ;;  %v1902_v58 = vrot.slane %v6211_v35, 4  ;;  %v8000_v48 = vld [vmem:[#allocation92_spill] sm:$0xff] }
 0x1ca   : > { %v3167_v21 = vsel %vm1690_vm12, %v1684_v25, %v3166_v61  ;;  %v3145_v0 = vsel %vm1690_vm12, %v7996_v59, %v3144_v11  ;;  %v3157_v33 = vsel %vm1690_vm12, %v7997_v15, %v3156_v17  ;;  %v3177_v20 = vsel %vm1690_vm12, %v1684_v25, %v3176_v39 }
 0x1cb   : > { %v6234_v40 = vperm.slane %v2885_v53, %v5189_v30  ;;  %v3165_v7 = vperm.slane %v3157_v33, %v5159_v42  ;;  %v3175_v27 = vperm.slane %v3167_v21, %v5159_v42  ;;  %v3185_v61 = vperm.slane %v3177_v20, %v5159_v42 }
 0x1cc   : > { %v3037_v51 = vsel %vm1690_vm12, %v7999_v38, %v3036_v2  ;;  %v3057_v5 = vperm.slane %v8000_v48, %v5159_v42  ;;  %v3059_v39 = vsel %vm1690_vm12, %v1684_v25, %v3058_v28  ;;  %v3105_v53 = vsel %vm1690_vm12, %v8001_v47, %v3104_v63 }
 0x1cd   : > { %v3153_v11 = vperm.slane %v3145_v0, %v5159_v42  ;;  %v3198_v17 = vrot.slane %v3165_v7, 4  ;;  %v3045_v21 = vperm.slane %v3037_v51, %v5159_v42  ;;  %3311 = vrot.lane.b32.xlu2 %v6164_v14, %s4335_s27  ;;  %v3222_v59 = vrot.slane %v3185_v61, 4  ;;  %v8002_v51 = vld [vmem:[#allocation126_spill] sm:$0xff] }
 0x1ce   : > { %v3067_v15 = vperm.slane %v3059_v39, %v5159_v42  ;;  %v3069_v49 = vsel %vm1690_vm12, %v1684_v25, %v3068_v16  ;;  %v3090_v33 = vrot.slane %v3057_v5, 4  ;;  %v1903_v28 = vsel %vm1690_vm12, %v1902_v58, %v6208_v55 }
 0x1cf   : > { %3301 = vrot.lane.b32.xlu0 %v2125_v31, %s4335_s27  ;;  %v3199_v31 = vsel %vm1690_vm12, %v3198_v17, %v3153_v11  ;;  %v3077_v63 = vperm.slane %v3069_v49, %v5159_v42  ;;  %v3092_v0 = vrot.slane %v3045_v21, 4  ;;  %v3223_v14 = vsel %vm1690_vm12, %v3222_v59, %v3175_v27  ;;  %v6273_v59 = vpop.permute.xlu2 %3324 }
 0x1d0   : > { %3341 = vrot.lane.b32.xlu1 %v1903_v28, %s4337_s28  ;;  %v3205_v20 = vperm.slane %v3199_v31, %v5189_v30  ;;  %v3091_v6 = vsel %vm1690_vm12, %v3090_v33, %v3045_v21  ;;  %v3224_v2 = vrot.slane %v3175_v27, 4  ;;  %v2910_v16 = vrot.slane %v6234_v40, 4  ;;  %8003 = vst [vmem:[#allocation105_spill] sm:$0xff] %v6273_v59 }
 0x1d1   : > { %v6265_v25 = vperm.slane %v3105_v53, %v5189_v30  ;;  %v6268_v58 = vperm.slane %v3091_v6, %v5189_v30  ;;  %v3114_v38 = vrot.slane %v3077_v63, 4  ;;  %v3081_v48 = vsel %vm1690_vm12, %v8002_v51, %v3080_v18 }
 0x1d2   : > { %v3200_v39 = vrot.slane %v3153_v11, 4  ;;  %v3093_v47 = vsel %vm1690_vm12, %v3057_v5, %v3092_v0  ;;  %v3116_v17 = vrot.slane %v3067_v15, 4  ;;  %v3229_v27 = vperm.slane %v3223_v14, %v5189_v30 }
 0x1d3   : > { %v3244_v21 = vrot.slane %v3205_v20, 4  ;;  %v3115_v49 = vsel %vm1690_vm12, %v3114_v38, %v3067_v15  ;;  %v3136_v53 = vrot.slane %v6268_v58, 4  ;;  %v3225_v28 = vsel %vm1690_vm12, %v3185_v61, %v3224_v2 }
 0x1d4   : > { %v6279_v33 = vperm.slane %v3115_v49, %v5189_v30  ;;  %v3101_v18 = vperm.slane %v3093_v47, %v5189_v30  ;;  %v3117_v11 = vsel %vm1690_vm12, %v3077_v63, %v3116_v17  ;;  %v2911_v5 = vsel %vm1690_vm12, %v2910_v16, %v6222_v44 }
 0x1d5   : > { %v6288_v31 = vperm.slane %v3081_v48, %v5189_v30  ;;  %v3130_v15 = vrot.slane %v6265_v25, 4  ;;  %v3125_v0 = vperm.slane %v3117_v11, %v5189_v30  ;;  %v2924_v14 = vrot.slane %v7971_v22, 4  ;;  %3330 = vrot.lane.b32.xlu2 %v2911_v5, %s4334_s17  ;;  %v8005_v11 = vld [vmem:[#allocation83_spill] sm:$0xff] }
 0x1d6   : > { %v2936_v61 = vrot.slane %v7975_v57, 4  ;;  %v3137_v63 = vsel %vm1690_vm12, %v6279_v33, %v3136_v53  ;;  %v3245_v6 = vsel %vm1690_vm12, %v3229_v27, %v3244_v21  ;;  %v6299_v2 = vperm.slane %v3225_v28, %v5189_v30  ;;  %v8004_v57 = vld [vmem:[#allocation135_spill] sm:$0xff] }
 0x1d7   : > { %3326 = vrot.lane.b32.xlu0 %v2463_v29, %s4334_s17  ;;  %v3140_v29 = vrot.slane %v3101_v18, 4  ;;  %v3138_v16 = vrot.slane %v3125_v0, 4  ;;  %v3242_v38 = vrot.slane %v3229_v27, 4  ;;  %v3201_v51 = vsel %vm1690_vm12, %v3165_v7, %v3200_v39 }
 0x1d8   : > { %3458 = vrot.lane.b32.xlu1 %v3245_v6, %s4335_s27  ;;  %v2234_v48 = vrot.slane %v8004_v57, 4  ;;  %v3131_v47 = vsel %vm1690_vm12, %v3130_v15, %v6288_v31  ;;  %v2925_v21 = vsel %vm1690_vm12, %v6060_v56, %v2924_v14  ;;  %v2937_v49 = vsel %vm1690_vm12, %v6067_v54, %v2936_v61  ;;  %v8008_v57 = vld [vmem:[#allocation80_spill] sm:$0xff] }
 0x1d9   : > { %v3141_v22 = vsel %vm1690_vm12, %v3125_v0, %v3140_v29  ;;  %v3139_v17 = vsel %vm1690_vm12, %v3138_v16, %v3101_v18  ;;  %v2948_v53 = vrot.slane %v6053_v52, 4  ;;  %v2960_v27 = vrot.slane %v6062_v62, 4  ;;  %v3262_v62 = vpop.permute.xlu2 %3261 }
 0x1da   : > { %v6315_v7 = vperm.slane %v3201_v51, %v5189_v30  ;;  %v3246_v39 = vrot.slane %v6299_v2, 4  ;;  %v6319_v28 = vperm.slane %v2937_v49, %v5159_v42  ;;  %v3243_v18 = vsel %vm1690_vm12, %v3242_v38, %v3205_v20  ;;  %v8006_v20 = vld [vmem:[#allocation131_spill] sm:$0xff]  ;;  %v8007_v38 = vld [vmem:[#allocation38_spill] sm:$0xff]  ;;  %v8009_v49 = vld [vmem:[#allocation81_spill] sm:$0xff] }
 0x1db   : > { %v3212_v56 = vrot.slane %v8005_v11, 4  ;;  %v2949_v54 = vsel %vm1690_vm12, %v7965_v45, %v2948_v53  ;;  %v2961_v52 = vsel %vm1690_vm12, %v7967_v50, %v2960_v27  ;;  %v6329_v5 = vperm.slane %v2925_v21, %v5159_v42  ;;  %v3285_v50 = vpop.permute.xlu1 %3284 }
 0x1dc   : > { %v6332_v15 = vperm.slane %v2961_v52, %v5159_v42  ;;  %v2982_v0 = vrot.slane %v6319_v28, 4  ;;  %v2235_v14 = vsel %vm1690_vm12, %v2234_v48, %v8006_v20  ;;  %v3247_v61 = vsel %vm1690_vm12, %v3246_v39, %v6315_v7 }
 0x1dd   : > { %3416 = vrot.lane.b32.xlu2 %v3243_v18, %s4333_s16  ;;  %v6339_v45 = vsel %vm3544_vm11, %v2235_v14, %v3262_v62  ;;  %v6344_v29 = vperm.slane %v2949_v54, %v5159_v42  ;;  %v2824_v51 = vrot.slane %v8007_v38, 4  ;;  %v3213_v48 = vsel %vm1690_vm12, %v8008_v57, %v3212_v56  ;;  %v8010_v54 = vld [vmem:[#allocation41_spill] sm:$0xff]  ;;  %v3264_v38 = vpop.permute.xlu0 %3263 }
 0x1de   : > { %v2983_v6 = vsel %vm1690_vm12, %v2982_v0, %v6329_v5  ;;  %v3006_v16 = vrot.slane %v6332_v15, 4  ;;  %v2972_v21 = vrot.slane %v6113_v41, 4  ;;  %v3188_v53 = vrot.slane %v8009_v49, 4  ;;  %v8011_v0 = vld [vmem:[#allocation54_spill] sm:$0xff] }
 0x1df   : > { %3332 = vrot.lane.b32.xlu0 %v3131_v47, %s4334_s17  ;;  %v2989_v47 = vperm.slane %v2983_v6, %v5189_v30  ;;  %v2996_v39 = vrot.slane %v6083_v37, 4  ;;  %v2458_v52 = vrot.slane %v8010_v54, 4  ;;  %v6364_v56 = vperm.slane %v3213_v48, %v5189_v30  ;;  %v8013_v6 = vld [vmem:[#allocation33_spill] sm:$0xff]  ;;  %v8016_v54 = vld [vmem:[#allocation44_spill] sm:$0xff] }
 0x1e0   : > { %3500 = vrot.lane.b32.xlu1 %v3247_v61, %s4337_s28  ;;  %v3007_v27 = vsel %vm1690_vm12, %v3006_v16, %v6344_v29  ;;  %v2973_v11 = vsel %vm1690_vm12, %v6101_v13, %v2972_v21  ;;  %v2825_v41 = vsel %vm1690_vm12, %v8011_v0, %v2824_v51  ;;  %v8012_v61 = vld [vmem:[#allocation60_spill] sm:$0xff]  ;;  %v3189_v13 = vsel %vm1690_vm12, %v8013_v6, %v3188_v53  ;;  %v8014_v53 = vld [vmem:[#allocation17_spill] sm:$0xff] }
 0x1e1   : > { %v3013_v18 = vperm.slane %v3007_v27, %v5189_v30  ;;  %v2997_v20 = vsel %vm1690_vm12, %v6086_v23, %v2996_v39  ;;  %v3028_v14 = vrot.slane %v2989_v47, 4  ;;  %v2812_v37 = vrot.slane %v8012_v61, 4  ;;  %v8017_v0 = vld [vmem:[#allocation21_spill] sm:$0xff] }
 0x1e2   : > { %v3005_v16 = vperm.slane %v2997_v20, %v5189_v30  ;;  %v3132_v57 = vrot.slane %v6288_v31, 4  ;;  %v6384_v21 = vperm.slane %v2825_v41, %v5159_v42  ;;  %v2459_v27 = vsel %vm1690_vm12, %v2458_v52, %v8014_v53  ;;  %v8018_v20 = vld [vmem:[#allocation55_spill] sm:$0xff]  ;;  %v8019_v61 = vld [vmem:[#allocation53_spill] sm:$0xff] }
 0x1e3   : > { %v3026_v62 = vrot.slane %v3013_v18, 4  ;;  %v6379_v48 = vsel %vm1690_vm12, %v3013_v18, %v3028_v14  ;;  %v6381_v23 = vpop.permute.xlu1 %3278  ;;  %v3238_v31 = vrot.slane %v6364_v56, 4  ;;  %v3556_v18 = vsel %vm3544_vm11, %v2459_v27, %v3264_v38 }
 0x1e4   : > { %v3022_v49 = vrot.slane %v3005_v16, 4  ;;  %v3248_v14 = vrot.slane %v6315_v7, 4  ;;  %v3133_v38 = vsel %vm1690_vm12, %v6265_v25, %v3132_v57  ;;  %v3574_v27 = vsel %vm3566_vm6, %v3556_v18, %v3285_v50 }
 0x1e5   : > { %3479 = vrot.lane.b32.xlu2 %v3139_v17, %s4334_s17  ;;  %v3027_v51 = vsel %vm1690_vm12, %v3026_v62, %v2989_v47  ;;  %v3197_v17 = vperm.slane %v3189_v13, %v5189_v30  ;;  %v8015_v47 = vld [vmem:[#allocation23_spill] sm:$0xff]  ;;  %v2813_v62 = vsel %vm1690_vm12, %v8016_v54, %v2812_v37  ;;  %v3008_v57 = vrot.slane %v6344_v29, 4 }
 0x1e6   : > { %v2848_v39 = vrot.slane %v8015_v47, 4  ;;  %v6408_v37 = vperm.slane %v2813_v62, %v5159_v42  ;;  %v2984_v47 = vrot.slane %v6329_v5, 4  ;;  %vm3626_vm14 = vcmask 785408  }
 0x1e7   : > { %3437 = vrot.lane.b32.xlu0 %v3137_v63, %s4332_s13  ;;  %v2981_v63 = vperm.slane %v2973_v11, %v5189_v30  ;;  %v2836_v11 = vrot.slane %v8017_v0, 4  ;;  %v3239_v13 = vsel %vm1690_vm12, %v3238_v31, %v3197_v17  ;;  %v3283_v31 = vpop.permute.xlu0 %3282  ;;  %v3240_v18 = vrot.slane %v3197_v17, 4 }
 0x1e8   : > { %3521 = vrot.lane.b32.xlu1 %v3141_v22, %s4338_s30  ;;  %v2849_v52 = vsel %vm1690_vm12, %v8018_v20, %v2848_v39  ;;  %v2870_v22 = vrot.slane %v6384_v21, 4  ;;  %v2712_v39 = vrot.slane %v7933_v10, 4  ;;  %v3572_v54 = vsel %vm3566_vm6, %v6339_v45, %v3283_v31  ;;  %v8020_v20 = vld [vmem:[#allocation88_spill] sm:$0xff]  ;;  %v8023_v31 = vld [vmem:[#allocation86_spill] sm:$0xff] }
 0x1e9   : > { %v3023_v41 = vsel %vm1690_vm12, %v3022_v49, %v2981_v63  ;;  %v2837_v6 = vsel %vm1690_vm12, %v8019_v61, %v2836_v11  ;;  %v6410_v53 = vpop.permute.xlu2 %3286  ;;  %v2857_v7 = vperm.slane %v2849_v52, %v5159_v42  ;;  %v2736_v49 = vrot.slane %v5911_v9, 4 }
 0x1ea   : > { %v2845_v25 = vperm.slane %v2837_v6, %v5159_v42  ;;  %v3249_v9 = vsel %vm1690_vm12, %v6299_v2, %v3248_v14  ;;  %v2871_v5 = vsel %vm1690_vm12, %v2870_v22, %v6408_v37  ;;  %v2985_v10 = vsel %vm1690_vm12, %v6319_v28, %v2984_v47  ;;  %v8021_v6 = vld [vmem:[#allocation132_spill] sm:$0xff] }
 0x1eb   : > { %v6423_v62 = vpop.permute.xlu1 %3290  ;;  %v3024_v50 = vrot.slane %v2981_v63, 4  ;;  %v3009_v29 = vsel %vm1690_vm12, %v6332_v15, %v3008_v57  ;;  %v2894_v45 = vrot.slane %v2857_v7, 4  ;;  %v2737_v0 = vsel %vm1690_vm12, %v5926_v26, %v2736_v49 }
 0x1ec   : > { %v3017_v2 = vperm.slane %v3009_v29, %v5189_v30  ;;  %v2600_v52 = vrot.slane %v8020_v20, 4  ;;  %v6442_v28 = vperm.slane %v2871_v5, %v5189_v30  ;;  %v2896_v63 = vrot.slane %v2845_v25, 4 }
 0x1ed   : > { %3374 = vrot.lane.b32.xlu2 %v3133_v38, %s4338_s30  ;;  %v6438_v11 = vsel %vm1690_vm12, %v3005_v16, %v3024_v50  ;;  %v2713_v17 = vsel %vm1690_vm12, %v7934_v24, %v2712_v39  ;;  %v2724_v15 = vrot.slane %v5902_v8, 4  ;;  %v2993_v14 = vperm.slane %v2985_v10, %v5189_v30  ;;  %v8025_v10 = vld [vmem:[#allocation32_spill] sm:$0xff] }
 0x1ee   : > { %v3030_v26 = vrot.slane %v3017_v2, 4  ;;  %v2700_v61 = vrot.slane %v7929_v32, 4  ;;  %v3126_v16 = vrot.slane %v8021_v6, 4  ;;  %v6451_v22 = vperm.slane %v2737_v0, %v5159_v42  ;;  %v8022_v32 = vld [vmem:[#allocation68_spill] sm:$0xff] }
 0x1ef   : > { %3353 = vrot.lane.b32.xlu0 %v3239_v13, %s4337_s28  ;;  %v3241_v38 = vsel %vm1690_vm12, %v6364_v56, %v3240_v18  ;;  %v2895_v24 = vsel %vm1690_vm12, %v2894_v45, %v2845_v25  ;;  %v2500_v47 = vrot.slane %v8022_v32, 4  ;;  %v2588_v39 = vrot.slane %v8023_v31, 4  ;;  %v8026_v45 = vld [vmem:[#allocation130_spill] sm:$0xff] }
 0x1f0   : > { %3542 = vrot.lane.b32.xlu1 %v3249_v9, %s4339_s9  ;;  %v6461_v49 = vsel %vm1690_vm12, %v3030_v26, %v2993_v14  ;;  %v2916_v57 = vrot.slane %v6442_v28, 4  ;;  %v2897_v25 = vsel %vm1690_vm12, %v2857_v7, %v2896_v63  ;;  %v8024_v9 = vld [vmem:[#allocation76_spill] sm:$0xff]  ;;  %v2612_v50 = vrot.slane %v8025_v10, 4  ;;  %v8029_v26 = vld [vmem:[#allocation69_spill] sm:$0xff] }
 0x1f1   : > { %v3306_v13 = vpop.permute.xlu2 %3305  ;;  %v2601_v5 = vsel %vm1690_vm12, %v8024_v9, %v2600_v52  ;;  %v6477_v18 = vperm.slane %v2895_v24, %v5189_v30  ;;  %v2782_v29 = vrot.slane %v6451_v22, 4  ;;  %v3127_v0 = vsel %vm1690_vm12, %v3126_v16, %v8026_v45  ;;  %v8028_v52 = vld [vmem:[#allocation140_spill] sm:$0xff]  ;;  %v8033_v9 = vld [vmem:[#allocation67_spill] sm:$0xff] }
 0x1f2   : > { %v6458_v8 = vsel %vm3581_vm9, %v3574_v27, %v3306_v13  ;;  %v2725_v27 = vsel %vm1690_vm12, %v5920_v12, %v2724_v15  ;;  %v2701_v12 = vsel %vm1690_vm12, %v7930_v46, %v2700_v61  ;;  %v2624_v63 = vrot.slane %v8028_v52, 4  ;;  %v8030_v46 = vld [vmem:[#allocation141_spill] sm:$0xff]  ;;  %v8035_v52 = vld [vmem:[#allocation100_spill] sm:$0xff] }
 0x1f3   : > { %v3304_v56 = vpop.permute.xlu1 %3303  ;;  %v3032_v15 = vrot.slane %v2993_v14, 4  ;;  %v2512_v6 = vrot.slane %v8029_v26, 4  ;;  %v2609_v16 = vperm.slane %v2601_v5, %v5159_v42  ;;  %v2613_v61 = vsel %vm1690_vm12, %v8030_v46, %v2612_v50 }
 0x1f4   : > { %v3270_v20 = vpop.permute.xlu0 %3269  ;;  %v6484_v7 = vsel %vm3581_vm9, %v3572_v54, %v3304_v56  ;;  %v2872_v54 = vrot.slane %v6408_v37, 4  ;;  %v2917_v14 = vsel %vm1690_vm12, %v6477_v18, %v2916_v57  ;;  %v6508_v32 = vperm.slane %v2701_v12, %v5159_v42  ;;  %v8031_v56 = vld [vmem:[#allocation73_spill] sm:$0xff] }
 0x1f5   : > { %3395 = vrot.lane.b32.xlu2 %v3241_v38, %s4339_s9  ;;  %8027 = vst [vmem:[#allocation106_spill] sm:$0xff] %v6484_v7  ;;  %v6498_v38 = vperm.slane %v2897_v25, %v5189_v30  ;;  %v6503_v24 = vsel %vm1690_vm12, %v3017_v2, %v3032_v15  ;;  %v2589_v37 = vsel %vm1690_vm12, %v8031_v56, %v2588_v39  ;;  %v2912_v25 = vrot.slane %v6222_v44, 4 }
 0x1f6   : > { %v2400_v5 = vrot.slane %v8033_v9, 4  ;;  %v2621_v10 = vperm.slane %v2613_v61, %v5159_v42  ;;  %v2646_v50 = vrot.slane %v2609_v16, 4  ;;  %v2873_v39 = vsel %vm1690_vm12, %v6384_v21, %v2872_v54 }
 0x1f7   : > { %3414 = vrot.lane.b32.xlu0 %v3027_v51, %s4333_s16  ;;  %v6468_v51 = vperm.slane %v2713_v17, %v5159_v42  ;;  %v3565_v17 = vsel %vm3544_vm11, %v3127_v0, %v3270_v20  ;;  %v2913_v44 = vsel %vm1690_vm12, %v6234_v40, %v2912_v25  ;;  %v2597_v45 = vperm.slane %v2589_v37, %v5159_v42  ;;  %v8034_v20 = vld [vmem:[#allocation99_spill] sm:$0xff]  ;;  %v8037_v37 = vld [vmem:[#allocation14_spill] sm:$0xff] }
 0x1f8   : > { %3351 = vrot.lane.b32.xlu1 %v3023_v41, %s4337_s28  ;;  %v6492_v41 = vperm.slane %v2725_v27, %v5159_v42  ;;  %v8032_v27 = vld [vmem:[#allocation142_spill] sm:$0xff]  ;;  %v2918_v0 = vrot.slane %v6498_v38, 4  ;;  %v2501_v12 = vsel %vm1690_vm12, %v8034_v20, %v2500_v47  ;;  %v2513_v21 = vsel %vm1690_vm12, %v8035_v52, %v2512_v6 }
 0x1f9   : > { %v2758_v13 = vrot.slane %v6468_v51, 4  ;;  %v2625_v2 = vsel %vm1690_vm12, %v8032_v27, %v2624_v63  ;;  %v8036_v63 = vld [vmem:[#allocation66_spill] sm:$0xff]  ;;  %v6542_v26 = vperm.slane %v2513_v21, %v5159_v42  ;;  %v2647_v54 = vsel %vm1690_vm12, %v2646_v50, %v2597_v45 }
 0x1fa   : > { %v2783_v31 = vsel %vm1690_vm12, %v2782_v29, %v6492_v41  ;;  %v2388_v15 = vrot.slane %v8036_v63, 4  ;;  %v2672_v46 = vrot.slane %v2621_v10, 4  ;;  %v6548_v47 = vperm.slane %v2501_v12, %v5159_v42 }
 0x1fb   : > { %v2759_v57 = vsel %vm1690_vm12, %v2758_v13, %v6508_v32  ;;  %v6529_v29 = vperm.slane %v2783_v31, %v5189_v30  ;;  %v2881_v13 = vperm.slane %v2873_v39, %v5189_v30  ;;  %v2558_v6 = vrot.slane %v6542_v26, 4 }
 0x1fc   : > { %v2765_v40 = vperm.slane %v2759_v57, %v5189_v30  ;;  %v2401_v25 = vsel %vm1690_vm12, %v8037_v37, %v2400_v5  ;;  %v8038_v57 = vld [vmem:[#allocation13_spill] sm:$0xff]  ;;  %v3134_v21 = vrot.slane %v6279_v33, 4  ;;  %vm3641_vm0 = vcmask 916480  }
 0x1fd   : > { %3456 = vrot.lane.b32.xlu2 %v6379_v48, %s4335_s27  ;;  %v2633_v48 = vperm.slane %v2625_v2, %v5159_v42  ;;  %v2802_v61 = vrot.slane %v6529_v29, 4  ;;  %v2919_v31 = vsel %vm1690_vm12, %v2918_v0, %v2881_v13  ;;  %v6557_v2 = vperm.slane %v2647_v54, %v5189_v30  ;;  %v8039_v54 = vld [vmem:[#allocation98_spill] sm:$0xff] }
 0x1fe   : > { %v6561_v9 = vsel %vm1690_vm12, %v2558_v6, %v6548_v47  ;;  %v2389_v50 = vsel %vm1690_vm12, %v8038_v57, %v2388_v15  ;;  %v2409_v5 = vperm.slane %v2401_v25, %v5159_v42  ;;  %v6574_v0 = vsel %vm3566_vm6, %v3565_v17, %v6423_v62 }
 0x1ff   : > { %3435 = vrot.lane.b32.xlu0 %v2917_v14, %s4332_s13  ;;  %v2648_v14 = vrot.slane %v2597_v45, 4  ;;  %v2670_v56 = vrot.slane %v2633_v48, 4  ;;  %v2803_v27 = vsel %vm1690_vm12, %v2802_v61, %v2765_v40  ;;  %v2673_v39 = vsel %vm1690_vm12, %v2633_v48, %v2672_v46 }
 0x200   : > { %3372 = vrot.lane.b32.xlu1 %v2913_v44, %s4338_s30  ;;  %v2397_v20 = vperm.slane %v2389_v50, %v5159_v42  ;;  %v2446_v12 = vrot.slane %v2409_v5, 4  ;;  %v2692_v52 = vrot.slane %v6557_v2, 4  ;;  %v6579_v48 = vperm.slane %v2673_v39, %v5189_v30  ;;  %v8042_v50 = vld [vmem:[#allocation101_spill] sm:$0xff] }
 0x201   : > { %v2649_v44 = vsel %vm1690_vm12, %v2609_v16, %v2648_v14  ;;  %v2671_v45 = vsel %vm1690_vm12, %v2670_v56, %v2621_v10  ;;  %v2784_v16 = vrot.slane %v6492_v41, 4  ;;  %v2760_v17 = vrot.slane %v6508_v32, 4 }
 0x202   : > { %v6587_v10 = vperm.slane %v2671_v45, %v5189_v30  ;;  %v6590_v62 = vperm.slane %v2649_v44, %v5189_v30  ;;  %v2694_v41 = vrot.slane %v6579_v48, 4  ;;  %v2488_v46 = vrot.slane %v8039_v54, 4 }
 0x203   : > { %v2785_v15 = vsel %vm1690_vm12, %v6451_v22, %v2784_v16  ;;  %v2448_v61 = vrot.slane %v2397_v20, 4  ;;  %v6606_v32 = vsel %vm1690_vm12, %v3134_v21, %v6268_v58  ;;  %v2920_v14 = vrot.slane %v2881_v13, 4  ;;  %v8040_v58 = vld [vmem:[#allocation16_spill] sm:$0xff]  ;;  %v8046_v16 = vld [vmem:[#allocation30_spill] sm:$0xff] }
 0x204   : > { %v2693_v63 = vsel %vm1690_vm12, %v6587_v10, %v2692_v52  ;;  %v2761_v6 = vsel %vm1690_vm12, %v6468_v51, %v2760_v17  ;;  %v2804_v56 = vrot.slane %v2765_v40, 4  ;;  %v6615_v22 = vperm.slane %v2785_v15, %v5189_v30  ;;  %v8043_v51 = vld [vmem:[#allocation97_spill] sm:$0xff] }
 0x205   : > { %3412 = vrot.lane.b32.xlu2 %v2803_v27, %s4333_s16  ;;  %v6618_v37 = vsel %vm1690_vm12, %v2409_v5, %v2448_v61  ;;  %v2906_v25 = vrot.slane %v8040_v58, 4  ;;  %v8041_v27 = vld [vmem:[#allocation87_spill] sm:$0xff]  ;;  %v2489_v13 = vsel %vm1690_vm12, %v8042_v50, %v2488_v46  ;;  %v6625_v39 = vperm.slane %v2761_v6, %v5189_v30  ;;  %v8044_v40 = vld [vmem:[#allocation61_spill] sm:$0xff]  ;;  %v8048_v46 = vld [vmem:[#allocation18_spill] sm:$0xff] }
 0x206   : > { %v6597_v33 = vpop.permute.xlu2 %3280  ;;  %v2748_v57 = vrot.slane %v8041_v27, 4  ;;  %v2476_v44 = vrot.slane %v8043_v51, 4  ;;  %v8045_v5 = vld [vmem:[#allocation11_spill] sm:$0xff]  ;;  %v2806_v52 = vrot.slane %v6615_v22, 4  ;;  %v6638_v21 = vperm.slane %v2489_v13, %v5159_v42  ;;  %v8052_v27 = vld [vmem:[#allocation74_spill] sm:$0xff] }
 0x207   : > { %3477 = vrot.lane.b32.xlu0 %v2919_v31, %s4334_s17  ;;  %v2772_v31 = vrot.slane %v5954_v1, 4  ;;  %v2921_v1 = vsel %vm1690_vm12, %v6498_v38, %v2920_v14  ;;  %v2907_v38 = vsel %vm1690_vm12, %v2906_v25, %v8046_v16  ;;  %v2560_v25 = vrot.slane %v6548_v47, 4 }
 0x208   : > { %3393 = vrot.lane.b32.xlu1 %v6438_v11, %s4339_s9  ;;  %v6584_v11 = vsel %vm1690_vm12, %v2446_v12, %v2397_v20  ;;  %v2376_v20 = vrot.slane %v8045_v5, 4  ;;  %v2805_v12 = vsel %vm1690_vm12, %v6529_v29, %v2804_v56  ;;  %v2807_v54 = vsel %vm1690_vm12, %v2806_v52, %v6625_v39  ;;  %v8051_v56 = vld [vmem:[#allocation12_spill] sm:$0xff]  ;;  %v8054_v52 = vld [vmem:[#allocation39_spill] sm:$0xff] }
 0x209   : > { %v2773_v45 = vsel %vm1690_vm12, %v8044_v40, %v2772_v31  ;;  %v3289_v17 = vpop.permute.xlu0 %3288  ;;  %v2477_v61 = vsel %vm1690_vm12, %v8048_v46, %v2476_v44  ;;  %v2534_v51 = vrot.slane %v6638_v21, 4  ;;  %v8053_v40 = vld [vmem:[#allocation9_spill] sm:$0xff]  ;;  %v6678_v47 = vsel %vm1690_vm12, %v6542_v26, %v2560_v25 }
 0x20a   : > { %v6648_v29 = vperm.slane %v2773_v45, %v5189_v30  ;;  %v2377_v58 = vsel %vm1690_vm12, %v8051_v56, %v2376_v20  ;;  %v6669_v44 = vperm.slane %v2477_v61, %v5159_v42  ;;  %v2364_v45 = vrot.slane %v8053_v40, 4 }
 0x20b   : > { %v2696_v20 = vrot.slane %v6590_v62, 4 }
 0x20c   : > { %v2798_v5 = vrot.slane %v6648_v29, 4  ;;  %v2535_v26 = vsel %vm1690_vm12, %v2534_v51, %v6669_v44 }
 0x20d   : > { %3433 = vrot.lane.b32.xlu2 %v2693_v63, %s4332_s13  ;;  %v8047_v63 = vld [vmem:[#allocation75_spill] sm:$0xff]  ;;  %v6713_v40 = vperm.slane %v2535_v26, %v5189_v30  ;;  %v8064_v26 = vld [vmem:[#allocation149_spill] sm:$0xff] }
 0x20f   : > { %3498 = vrot.lane.b32.xlu0 %v6461_v49, %s4337_s28  ;;  %v2695_v49 = vsel %vm1690_vm12, %v2694_v41, %v6590_v62  ;;  %v2749_v41 = vsel %vm1690_vm12, %v8047_v63, %v2748_v57  ;;  %v2264_v57 = vrot.slane %v8052_v27, 4  ;;  %v8056_v63 = vld [vmem:[#allocation134_spill] sm:$0xff] }
 0x210   : > { %3475 = vrot.lane.b32.xlu1 %v2695_v49, %s4334_s17  ;;  %v8049_v49 = vld [vmem:[#allocation136_spill] sm:$0xff]  ;;  %v6665_v13 = vperm.slane %v2749_v41, %v5189_v30  ;;  %v8057_v41 = vld [vmem:[#allocation137_spill] sm:$0xff]  ;;  %v8061_v27 = vld [vmem:[#allocation70_spill] sm:$0xff] }
 0x211   : > { %v2288_v14 = vrot.slane %v8049_v49, 4  ;;  %v2265_v62 = vsel %vm1690_vm12, %v8056_v63, %v2264_v57  ;;  %v8059_v49 = vld [vmem:[#allocation10_spill] sm:$0xff]  ;;  %v2140_v57 = vrot.slane %v8061_v27, 4 }
 0x212   : > { %v6655_v31 = vpop.permute.xlu1 %3322 }
 0x213   : > { %8050 = vst [vmem:[#allocation63_spill] sm:$0xff] %v6655_v31  ;;  %v2289_v16 = vsel %vm1690_vm12, %v8054_v52, %v2288_v14 }
 0x214   : > { %v6703_v14 = vperm.slane %v2289_v16, %v5159_v42  ;;  %v8063_v16 = vld [vmem:[#allocation122_spill] sm:$0xff] }
 0x215   : > { %3454 = vrot.lane.b32.xlu2 %v2805_v12, %s4335_s27  ;;  %v6683_v12 = vperm.slane %v2377_v58, %v5159_v42  ;;  %v2697_v58 = vsel %vm1690_vm12, %v6579_v48, %v2696_v20  ;;  %v8062_v48 = vld [vmem:[#allocation51_spill] sm:$0xff] }
 0x217   : > { %3519 = vrot.lane.b32.xlu0 %v2921_v1, %s4338_s30  ;;  %v3268_v15 = vpop.permute.xlu2 %3267  ;;  %v6673_v1 = vperm.slane %v6561_v9, %v5189_v30  ;;  %v2799_v9 = vsel %vm1690_vm12, %v2798_v5, %v6665_v13  ;;  %v2422_v25 = vrot.slane %v6683_v12, 4  ;;  %v2688_v5 = vrot.slane %v6184_v3, 4 }
 0x218   : > { %v3562_v6 = vsel %vm3544_vm11, %v2907_v38, %v3268_v15  ;;  %3496 = vrot.lane.b32.xlu1 %v2807_v54, %s4337_s28  ;;  %v8055_v38 = vld [vmem:[#allocation71_spill] sm:$0xff]  ;;  %v2276_v15 = vrot.slane %v8057_v41, 4  ;;  %v8058_v54 = vld [vmem:[#allocation150_spill] sm:$0xff]  ;;  %v2334_v3 = vrot.slane %v6703_v14, 4 }
 0x219   : > { %v6662_v50 = vsel %vm3566_vm6, %v3562_v6, %v3289_v17  ;;  %v2152_v17 = vrot.slane %v8055_v38, 4  ;;  %v2010_v46 = vrot.slane %v8058_v54, 4  ;;  %v2578_v61 = vrot.slane %v6673_v1, 4  ;;  %v8060_v6 = vld [vmem:[#allocation72_spill] sm:$0xff] }
 0x21a   : > { %v2252_v56 = vrot.slane %v8060_v6, 4  ;;  %v2277_v20 = vsel %vm1690_vm12, %v8062_v48, %v2276_v15  ;;  %v8066_v6 = vld [vmem:[#allocation125_spill] sm:$0xff] }
 0x21b   : > { %v2153_v38 = vsel %vm1690_vm12, %v8063_v16, %v2152_v17  ;;  %v2011_v63 = vsel %vm1690_vm12, %v2010_v46, %v8064_v26  ;;  %v2800_v16 = vrot.slane %v6665_v13, 4  ;;  %v8069_v26 = vld [vmem:[#allocation22_spill] sm:$0xff] }
 0x21c   : > { %v3308_v54 = vpop.permute.xlu0 %3307  ;;  %v6748_v27 = vperm.slane %v2153_v38, %v5159_v42  ;;  %v8067_v38 = vld [vmem:[#allocation121_spill] sm:$0xff] }
 0x21d   : > { %3349 = vrot.lane.b32.xlu2 %v2799_v9, %s4337_s28  ;;  %v2579_v9 = vsel %vm1690_vm12, %v2578_v61, %v6713_v40  ;;  %v6740_v61 = vperm.slane %v2277_v20, %v5159_v42 }
 0x21e   : > { %v2198_v13 = vrot.slane %v6748_v27, 4 }
 0x21f   : > { %3540 = vrot.lane.b32.xlu0 %v6503_v24, %s4339_s9  ;;  %v2365_v24 = vsel %vm1690_vm12, %v8059_v49, %v2364_v45  ;;  %v6710_v51 = vpop.permute.xlu2 %3299  ;;  %v6717_v45 = vperm.slane %v2265_v62, %v5159_v42  ;;  %v2808_v62 = vrot.slane %v6625_v39, 4 }
 0x220   : > { %3517 = vrot.lane.b32.xlu1 %v2697_v58, %s4338_s30  ;;  %v6721_v52 = vperm.slane %v2365_v24, %v5159_v42  ;;  %v8065_v24 = vld [vmem:[#allocation133_spill] sm:$0xff]  ;;  %v2176_v58 = vrot.slane %v8066_v6, 4 }
 0x221   : > { %v3260_v41 = vpop.permute.xlu1 %3259  ;;  %v2253_v17 = vsel %vm1690_vm12, %v8065_v24, %v2252_v56  ;;  %v2310_v46 = vrot.slane %v6717_v45, 4  ;;  %v2809_v20 = vsel %vm1690_vm12, %v6615_v22, %v2808_v62 }
 0x222   : > { %v3550_v49 = vsel %vm3544_vm11, %v2011_v63, %v3260_v41  ;;  %v2423_v15 = vsel %vm1690_vm12, %v2422_v25, %v6721_v52  ;;  %v2689_v25 = vsel %vm1690_vm12, %v6175_v34, %v2688_v5  ;;  %v6758_v48 = vperm.slane %v2253_v17, %v5159_v42  ;;  %v8068_v34 = vld [vmem:[#allocation34_spill] sm:$0xff]  ;;  %v8071_v17 = vld [vmem:[#allocation64_spill] sm:$0xff] }
 0x223   : > { %v6745_v39 = vsel %vm3566_vm6, %v3550_v49, %v6597_v33  ;;  %v6755_v56 = vperm.slane %v2423_v15, %v5189_v30  ;;  %v2335_v33 = vsel %vm1690_vm12, %v2334_v3, %v6740_v61  ;;  %v2177_v5 = vsel %vm1690_vm12, %v8068_v34, %v2176_v58  ;;  %v8070_v3 = vld [vmem:[#allocation124_spill] sm:$0xff] }
 0x224   : > { %v2682_v63 = vrot.slane %v8069_v26, 4  ;;  %v6774_v49 = vperm.slane %v6584_v11, %v5189_v30  ;;  %v2311_v22 = vsel %vm1690_vm12, %v2310_v46, %v6758_v48  ;;  %v6782_v62 = vperm.slane %v2335_v33, %v5189_v30 }
 0x225   : > { %3370 = vrot.lane.b32.xlu2 %v2689_v25, %s4338_s30  ;;  %v2164_v15 = vrot.slane %v8070_v3, 4  ;;  %v2468_v24 = vrot.slane %v6755_v56, 4  ;;  %v6792_v46 = vperm.slane %v2177_v5, %v5159_v42  ;;  %v6798_v33 = vperm.slane %v2311_v22, %v5189_v30 }
 0x226   : > { %v2683_v11 = vsel %vm1690_vm12, %v2682_v63, %v8071_v17  ;;  %v6807_v34 = vperm.slane %v6618_v37, %v5189_v30  ;;  %v2354_v5 = vrot.slane %v6782_v62, 4  ;;  %v8073_v63 = vld [vmem:[#allocation45_spill] sm:$0xff] }
 0x227   : > { %3410 = vrot.lane.b32.xlu0 %v2579_v9, %s4333_s16  ;;  %v2141_v9 = vsel %vm1690_vm12, %v8067_v38, %v2140_v57  ;;  %v6770_v41 = vpop.permute.xlu2 %3311  ;;  %v2690_v57 = vrot.slane %v6587_v10, 4  ;;  %v2801_v10 = vsel %vm1690_vm12, %v6648_v29, %v2800_v16  ;;  %v2469_v38 = vsel %vm1690_vm12, %v6774_v49, %v2468_v24  ;;  %v6812_v16 = vpop.permute.xlu0 %3320 }
 0x228   : > { %3538 = vrot.lane.b32.xlu1 %v2809_v20, %s4339_s9  ;;  %v6789_v58 = vperm.slane %v2141_v9, %v5159_v42  ;;  %v2424_v20 = vrot.slane %v6721_v52, 4  ;;  %v8072_v52 = vld [vmem:[#allocation102_spill] sm:$0xff]  ;;  %v2165_v22 = vsel %vm1690_vm12, %v8073_v63, %v2164_v15  ;;  %v2222_v37 = vrot.slane %v6792_v46, 4  ;;  %v8075_v15 = vld [vmem:[#allocation104_spill] sm:$0xff]  ;;  %v8079_v63 = vld [vmem:[#allocation35_spill] sm:$0xff] }
 0x229   : > { %v3266_v6 = vpop.permute.xlu1 %3265  ;;  %v2548_v26 = vrot.slane %v8072_v52, 4  ;;  %v2355_v3 = vsel %vm1690_vm12, %v2354_v5, %v6798_v33  ;;  %v2580_v5 = vrot.slane %v6713_v40, 4 }
 0x22a   : > { %v3559_v25 = vsel %vm3544_vm11, %v2683_v11, %v3266_v6  ;;  %v2199_v29 = vsel %vm1690_vm12, %v2198_v13, %v6789_v58  ;;  %v6823_v13 = vsel %vm1690_vm12, %v2690_v57, %v6557_v2  ;;  %v2524_v11 = vrot.slane %v8075_v15, 4  ;;  %v8076_v2 = vld [vmem:[#allocation59_spill] sm:$0xff] }
 0x22b   : > { %v3576_v9 = vsel %vm3566_vm6, %v3559_v25, %v6410_v53  ;;  %8074 = vst [vmem:[#allocation25_spill] sm:$0xff] %v6823_v13  ;;  %v6828_v24 = vperm.slane %v2199_v29, %v5189_v30  ;;  %v6837_v6 = vperm.slane %v2165_v22, %v5159_v42  ;;  %v8077_v25 = vld [vmem:[#allocation103_spill] sm:$0xff]  ;;  %v2581_v40 = vsel %vm1690_vm12, %v6673_v1, %v2580_v5  ;;  %v8083_v1 = vld [vmem:[#allocation49_spill] sm:$0xff] }
 0x22c   : > { %v3591_v53 = vsel %vm3581_vm9, %v3576_v9, %v3308_v54  ;;  %v2425_v54 = vsel %vm1690_vm12, %v6683_v12, %v2424_v20  ;;  %v8078_v9 = vld [vmem:[#allocation123_spill] sm:$0xff]  ;;  %v2536_v20 = vrot.slane %v6669_v44, 4 }
 0x22d   : > { %3391 = vrot.lane.b32.xlu2 %v2801_v10, %s4339_s9  ;;  %v2470_v10 = vrot.slane %v6807_v34, 4  ;;  %v1786_v29 = vrot.slane %v8078_v9, 4  ;;  %v2223_v12 = vsel %vm1690_vm12, %v2222_v37, %v6837_v6  ;;  %v8081_v57 = vld [vmem:[#allocation31_spill] sm:$0xff] }
 0x22e   : > { %v2525_v37 = vsel %vm1690_vm12, %v8081_v57, %v2524_v11  ;;  %v8084_v57 = vld [vmem:[#allocation120_spill] sm:$0xff] }
 0x22f   : > { %3431 = vrot.lane.b32.xlu0 %v2469_v38, %s4332_s13  ;;  %v6830_v17 = vpop.permute.xlu2 %3330  ;;  %v2549_v38 = vsel %vm1690_vm12, %v8077_v25, %v2548_v26  ;;  %v2244_v26 = vrot.slane %v6828_v24, 4  ;;  %v8080_v25 = vld [vmem:[#allocation65_spill] sm:$0xff] }
 0x230   : > { %3408 = vrot.lane.b32.xlu1 %v2355_v3, %s4333_s16  ;;  %v2433_v3 = vperm.slane %v2425_v54, %v5189_v30  ;;  %v1928_v9 = vrot.slane %v8080_v25, 4  ;;  %v6861_v44 = vperm.slane %v2549_v38, %v5189_v30  ;;  %v8082_v25 = vld [vmem:[#allocation56_spill] sm:$0xff]  ;;  %v1787_v38 = vsel %vm1690_vm12, %v1786_v29, %v8084_v57 }
 0x231   : > { %v3310_v52 = vpop.permute.xlu1 %3309  ;;  %v1952_v22 = vrot.slane %v8082_v25, 4  ;;  %v8085_v25 = vld [vmem:[#allocation82_spill] sm:$0xff] }
 0x232   : > { %v6852_v15 = vsel %vm3581_vm9, %v6662_v50, %v3310_v52  ;;  %v2471_v54 = vsel %vm1690_vm12, %v2470_v10, %v2433_v3  ;;  %v6866_v50 = vperm.slane %v2223_v12, %v5189_v30  ;;  %v6870_v52 = vperm.slane %v6678_v47, %v5189_v30 }
 0x233   : > { %v1929_v5 = vsel %vm1690_vm12, %v8083_v1, %v1928_v9  ;;  %v2537_v10 = vsel %vm1690_vm12, %v6638_v21, %v2536_v20  ;;  %v2300_v31 = vrot.slane %v8085_v25, 4  ;;  %v8086_v9 = vld [vmem:[#allocation19_spill] sm:$0xff]  ;;  %v2464_v21 = vrot.slane %v6201_v19, 4 }
 0x234   : > { %v2245_v47 = vsel %vm1690_vm12, %v6866_v50, %v2244_v26  ;;  %v1953_v1 = vsel %vm1690_vm12, %v8086_v9, %v1952_v22  ;;  %v2356_v20 = vrot.slane %v6798_v33, 4  ;;  %v2582_v22 = vrot.slane %v6870_v52, 4  ;;  %v8087_v25 = vld [vmem:[#allocation43_spill] sm:$0xff] }
 0x235   : > { %3473 = vrot.lane.b32.xlu2 %v2471_v54, %s4334_s17  ;;  %v2574_v54 = vrot.slane %v6861_v44, 4  ;;  %v2472_v57 = vrot.slane %v2433_v3, 4  ;;  %v6906_v19 = vperm.slane %v1953_v1, %v5159_v42  ;;  %v8089_v3 = vld [vmem:[#allocation26_spill] sm:$0xff] }
 0x236   : > { %v1940_v9 = vrot.slane %v8089_v3, 4  ;;  %v2357_v1 = vsel %vm1690_vm12, %v6782_v62, %v2356_v20  ;;  %v8092_v62 = vld [vmem:[#allocation139_spill] sm:$0xff] }
 0x237   : > { %3452 = vrot.lane.b32.xlu0 %v2581_v40, %s4335_s27  ;;  %v6882_v40 = vperm.slane %v2525_v37, %v5189_v30  ;;  %v6890_v29 = vpop.permute.xlu2 %3416  ;;  %v6899_v37 = vperm.slane %v2537_v10, %v5189_v30  ;;  %v1998_v20 = vrot.slane %v6906_v19, 4 }
 0x238   : > { %3429 = vrot.lane.b32.xlu1 %v2245_v47, %s4332_s13  ;;  %v2324_v47 = vrot.slane %v8087_v25, 4 }
 0x239   : > { %v3258_v12 = vpop.permute.xlu0 %3257  ;;  %v2575_v7 = vsel %vm1690_vm12, %v2574_v54, %v6882_v40 }
 0x23a   : > { %v3547_v11 = vsel %vm3544_vm11, %v1787_v38, %v3258_v12  ;;  %v3329_v38 = vpop.permute.xlu1 %3328 }
 0x23b   : > { %v3568_v26 = vsel %vm3566_vm6, %v3547_v11, %v6381_v23  ;;  %v6909_v33 = vsel %vm3596_vm10, %v3591_v53, %v3329_v38  ;;  %v8088_v11 = vld [vmem:[#allocation138_spill] sm:$0xff] }
 0x23c   : > { %v3583_v12 = vsel %vm3581_vm9, %v3568_v26, %v6710_v51  ;;  %v2301_v10 = vsel %vm1690_vm12, %v8088_v11, %v2300_v31  ;;  %v2465_v51 = vsel %vm1690_vm12, %v6178_v43, %v2464_v21  ;;  %v2473_v31 = vsel %vm1690_vm12, %v6807_v34, %v2472_v57  ;;  %v8090_v26 = vld [vmem:[#allocation62_spill] sm:$0xff]  ;;  %v8093_v57 = vld [vmem:[#allocation20_spill] sm:$0xff] }
 0x23d   : > { %v3598_v23 = vsel %vm3596_vm10, %v3583_v12, %v6812_v16  ;;  %v2583_v16 = vsel %vm1690_vm12, %v2582_v22, %v6899_v37  ;;  %v2064_v38 = vrot.slane %v8090_v26, 4  ;;  %v8091_v12 = vld [vmem:[#allocation84_spill] sm:$0xff]  ;;  %v6933_v43 = vperm.slane %v2301_v10, %v5189_v30  ;;  %v8094_v11 = vld [vmem:[#allocation114_spill] sm:$0xff]  ;;  %v8096_v26 = vld [vmem:[#allocation113_spill] sm:$0xff] }
 0x23e   : > { %v1941_v54 = vsel %vm1690_vm12, %v8091_v12, %v1940_v9  ;;  %3494 = vrot.lane.b32.xlu2 %v2583_v16, %s4337_s28  ;;  %v2325_v21 = vsel %vm1690_vm12, %v8092_v62, %v2324_v47  ;;  %v1704_v3 = vrot.slane %v8094_v11, 4  ;;  %v6951_v47 = vperm.slane %v1929_v5, %v5159_v42  ;;  %v8097_v62 = vld [vmem:[#allocation79_spill] sm:$0xff]  ;;  %v8098_v11 = vld [vmem:[#allocation29_spill] sm:$0xff] }
 0x23f   : > { %3347 = vrot.lane.b32.xlu0 %v2575_v7, %s4337_s28  ;;  %v2065_v25 = vsel %vm1690_vm12, %v8093_v57, %v2064_v38  ;;  %v6947_v9 = vpop.permute.xlu2 %3479  ;;  %v6954_v16 = vperm.slane %v1941_v54, %v5159_v42  ;;  %v1692_v12 = vrot.slane %v8096_v26, 4  ;;  %v6958_v38 = vperm.slane %v2325_v21, %v5189_v30 }
 0x240   : > { %3450 = vrot.lane.b32.xlu1 %v2357_v1, %s4335_s27  ;;  %v2040_v57 = vrot.slane %v8097_v62, 4  ;;  %v8100_v1 = vld [vmem:[#allocation144_spill] sm:$0xff]  ;;  %v6966_v5 = vperm.slane %v2065_v25, %v5159_v42  ;;  %v8105_v25 = vrot.slane %v8079_v63, 4  ;;  %v1974_v13 = vrot.slane %v6951_v47, 4 }
 0x241   : > { %v3302_v22 = vpop.permute.xlu0 %3301  ;;  %v2052_v53 = vrot.slane %v8100_v1, 4  ;;  %v1999_v54 = vsel %vm1690_vm12, %v1998_v20, %v6954_v16  ;;  %v8102_v62 = vld [vmem:[#allocation48_spill] sm:$0xff] }
 0x242   : > { %v6945_v10 = vsel %vm3581_vm9, %v6745_v39, %v3302_v22  ;;  %v1916_v39 = vrot.slane %v8098_v11, 4  ;;  %v8099_v22 = vld [vmem:[#allocation111_spill] sm:$0xff]  ;;  %v3342_v7 = vpop.permute.xlu1 %3341  ;;  %v8107_v20 = vld [vmem:[#allocation52_spill] sm:$0xff] }
 0x243   : > { %8095 = vst [vmem:[#allocation28_spill] sm:$0xff] %v6945_v10  ;;  %v1705_v34 = vsel %vm1690_vm12, %v8099_v22, %v1704_v3  ;;  %v6974_v21 = vsel %vm3611_vm13, %v3598_v23, %v3342_v7  ;;  %v8103_v3 = vrot.slane %v8076_v2, 4  ;;  %v8104_v22 = vld [vmem:[#allocation112_spill] sm:$0xff]  ;;  %v8106_v10 = vld [vmem:[#allocation115_spill] sm:$0xff]  ;;  %v8108_v23 = vld [vmem:[#allocation110_spill] sm:$0xff]  ;;  %v2350_v2 = vrot.slane %v6958_v38, 4 }
 0x244   : > { %v6971_v26 = vperm.slane %v1705_v34, %v5159_v42  ;;  %8101 = vst [vmem:[#allocation24_spill] sm:$0xff] %v6974_v21  ;;  %v1917_v11 = vsel %vm1690_vm12, %v8102_v62, %v1916_v39  ;;  %v1729_v59 = vsel %vm1690_vm12, %v8106_v10, %v8105_v25  ;;  %v2041_v34 = vsel %vm1690_vm12, %v8107_v20, %v2040_v57  ;;  %v8109_v62 = vld [vmem:[#allocation85_spill] sm:$0xff] }
 0x245   : > { %v1717_v1 = vsel %vm1690_vm12, %v8104_v22, %v8103_v3  ;;  %v1693_v7 = vsel %vm1690_vm12, %v8108_v23, %v1692_v12  ;;  %v6992_v39 = vperm.slane %v1729_v59, %v5159_v42  ;;  %v2053_v63 = vsel %vm1690_vm12, %v8109_v62, %v2052_v53  ;;  %v8111_v23 = vld [vmem:[#allocation89_spill] sm:$0xff] }
 0x246   : > { %v6999_v10 = vperm.slane %v1999_v54, %v5189_v30  ;;  %v1750_v57 = vrot.slane %v6971_v26, 4  ;;  %3515 = vrot.lane.b32.xlu2 %v2473_v31, %s4338_s30  ;;  %v2110_v3 = vrot.slane %v6966_v5, 4  ;;  %v7005_v12 = vperm.slane %v1917_v11, %v5159_v42 }
 0x247   : > { %3368 = vrot.lane.b32.xlu0 %v2465_v51, %s4338_s30  ;;  %v7008_v59 = vperm.slane %v1717_v1, %v5159_v42  ;;  %v1774_v51 = vrot.slane %v6992_v39, 4  ;;  %v2351_v53 = vsel %vm1690_vm12, %v2350_v2, %v6933_v43  ;;  %v2224_v54 = vrot.slane %v6837_v6, 4  ;;  %v7024_v1 = vpop.permute.xlu2 %3374 }
 0x248   : > { %v7015_v25 = vperm.slane %v2041_v34, %v5159_v42  ;;  %v7018_v31 = vperm.slane %v1693_v7, %v5159_v42  ;;  %3345 = vrot.lane.b32.xlu1 %v2351_v53, %s4337_s28  ;;  %v7028_v20 = vperm.slane %v2053_v63, %v5159_v42  ;;  %v1975_v6 = vsel %vm1690_vm12, %v1974_v13, %v7005_v12  ;;  %v8112_v53 = vld [vmem:[#allocation129_spill] sm:$0xff] }
 0x249   : > { %v3327_v22 = vpop.permute.xlu0 %3326  ;;  %v1775_v34 = vsel %vm1690_vm12, %v1774_v51, %v7008_v59  ;;  %v2028_v7 = vrot.slane %v8111_v23, 4  ;;  %v2018_v2 = vrot.slane %v6999_v10, 4  ;;  %v2240_v21 = vrot.slane %v8112_v53, 4 }
 0x24a   : > { %v7022_v11 = vsel %vm3596_vm10, %v6458_v8, %v3327_v22  ;;  %v1751_v8 = vsel %vm1690_vm12, %v1750_v57, %v7018_v31  ;;  %v7039_v62 = vperm.slane %v1775_v34, %v5189_v30  ;;  %v2242_v22 = vrot.slane %v6866_v50, 4  ;;  %v3459_v63 = vpop.permute.xlu1 %3458 }
 0x24b   : > { %8110 = vst [vmem:[#allocation40_spill] sm:$0xff] %v7022_v11  ;;  %v2111_v13 = vsel %vm1690_vm12, %v2110_v3, %v7028_v20  ;;  %v8113_v51 = vrot.slane %v6774_v49, 4  ;;  %v2225_v57 = vsel %vm1690_vm12, %v6792_v46, %v2224_v54  ;;  %v8114_v11 = vld [vmem:[#allocation50_spill] sm:$0xff]  ;;  %v1981_v50 = vperm.slane %v1975_v6, %v5189_v30 }
 0x24c   : > { %v2029_v34 = vsel %vm1690_vm12, %v8114_v11, %v2028_v7  ;;  %v1794_v35 = vrot.slane %v7039_v62, 4  ;;  %v8115_v53 = vrot.slane %v6882_v40, 4  ;;  %v8116_v49 = vrot.slane %v6899_v37, 4  ;;  %v8118_v7 = vld [vmem:[#allocation128_spill] sm:$0xff] }
 0x24d   : > { %v7049_v23 = vsel %vm1690_vm12, %v8113_v51, %v6755_v56  ;;  %v2086_v51 = vrot.slane %v7015_v25, 4  ;;  %v7067_v46 = vperm.slane %v1751_v8, %v5189_v30  ;;  %v8117_v54 = vrot.slane %v6789_v58, 4 }
 0x24e   : > { %v2577_v3 = vsel %vm1690_vm12, %v6861_v44, %v8115_v53  ;;  %v2585_v56 = vsel %vm1690_vm12, %v6870_v52, %v8116_v49  ;;  %v7075_v11 = vperm.slane %v2111_v13, %v5189_v30  ;;  %v7079_v44 = vsel %vm1690_vm12, %v2242_v22, %v6828_v24 }
 0x24f   : > { %3389 = vrot.lane.b32.xlu0 %v2577_v3, %s4339_s9  ;;  %v2201_v40 = vsel %vm1690_vm12, %v6748_v27, %v8117_v54  ;;  %v7082_v52 = vsel %vm1690_vm12, %v2018_v2, %v1981_v50  ;;  %3536 = vrot.lane.b32.xlu2 %v2585_v56, %s4339_s9  ;;  %v7086_v37 = vperm.slane %v2225_v57, %v5189_v30  ;;  %v2336_v8 = vrot.slane %v6740_v61, 4  ;;  %v7098_v2 = vpop.permute.xlu2 %3395 }
 0x250   : > { %v7089_v58 = vperm.slane %v2029_v34, %v5159_v42  ;;  %v7093_v27 = vsel %vm1690_vm12, %v1794_v35, %v7067_v46  ;;  %v2241_v24 = vsel %vm1690_vm12, %v8118_v7, %v2240_v21  ;;  %v7101_v22 = vperm.slane %v2201_v40, %v5189_v30 }
 0x251   : > { %v3333_v6 = vpop.permute.xlu0 %3332  ;;  %3366 = vrot.lane.b32.xlu1 %v2241_v24, %s4338_s30  ;;  %v2000_v57 = vrot.slane %v6954_v16, 4  ;;  %v7110_v35 = vsel %vm3596_vm10, %v6852_v15, %v6830_v17  ;;  %v2130_v21 = vrot.slane %v7075_v11, 4  ;;  %v2312_v61 = vrot.slane %v6758_v48, 4 }
 0x252   : > { %v2087_v13 = vsel %vm1690_vm12, %v2086_v51, %v7089_v58  ;;  %v2246_v34 = vrot.slane %v7086_v37, 4  ;;  %v3501_v53 = vpop.permute.xlu1 %3500  ;;  %v2337_v49 = vsel %vm1690_vm12, %v6703_v14, %v2336_v8  ;;  %v2352_v16 = vrot.slane %v6933_v43, 4 }
 0x253   : > { %v7116_v3 = vperm.slane %v2087_v13, %v5189_v30  ;;  %v2001_v17 = vsel %vm1690_vm12, %v6906_v19, %v2000_v57  ;;  %v2313_v15 = vsel %vm1690_vm12, %v6717_v45, %v2312_v61  ;;  %v7132_v14 = vperm.slane %v2337_v49, %v5189_v30 }
 0x254   : > { %v2247_v56 = vsel %vm1690_vm12, %v2246_v34, %v7101_v22  ;;  %v1976_v43 = vrot.slane %v7005_v12, 4  ;;  %v3682_v51 = vsel %vm3544_vm11, %v6606_v32, %v6890_v29  ;;  %v2353_v54 = vsel %vm1690_vm12, %v6958_v38, %v2352_v16 }
 0x255   : > { %v2131_v48 = vsel %vm1690_vm12, %v2130_v21, %v7116_v3  ;;  %v7141_v40 = vperm.slane %v2001_v17, %v5189_v30  ;;  %v7147_v24 = vperm.slane %v2313_v15, %v5189_v30  ;;  %v2112_v12 = vrot.slane %v7028_v20, 4 }
 0x256   : > { %v1840_v32 = vrot.slane %v7988_v4, 4  ;;  %v2358_v29 = vrot.slane %v7132_v14, 4  ;;  %v1977_v38 = vsel %vm1690_vm12, %v6951_v47, %v1976_v43  ;;  %v2020_v57 = vrot.slane %v1981_v50, 4 }
 0x257   : > { %3471 = vrot.lane.b32.xlu0 %v2247_v56, %s4334_s17  ;;  %3406 = vrot.lane.b32.xlu2 %v2131_v48, %s4333_s16  ;;  %v7144_v7 = vpop.permute.xlu2 %3456  ;;  %v2022_v21 = vrot.slane %v7141_v40, 4  ;;  %v3595_v61 = vsel %vm3581_vm9, %v6574_v0, %v6770_v41  ;;  %v2113_v4 = vsel %vm1690_vm12, %v6966_v5, %v2112_v12  ;;  %v7169_v50 = vperm.slane %v1977_v38, %v5189_v30  ;;  %v8119_v41 = vld [vmem:[#allocation148_spill] sm:$0xff]  ;;  %v8120_v48 = vld [vmem:[#allocation57_spill] sm:$0xff]  ;;  %v8121_v12 = vld [vmem:[#allocation147_spill] sm:$0xff] }
 0x258   : > { %v2359_v20 = vsel %vm1690_vm12, %v2358_v29, %v7147_v24  ;;  %v2021_v47 = vsel %vm1690_vm12, %v6999_v10, %v2020_v57  ;;  %v2088_v34 = vrot.slane %v7089_v58, 4  ;;  %v2100_v5 = vrot.slane %v8119_v41, 4  ;;  %v8122_v38 = vld [vmem:[#allocation145_spill] sm:$0xff] }
 0x259   : > { %v3438_v19 = vpop.permute.xlu0 %3437  ;;  %3387 = vrot.lane.b32.xlu1 %v2353_v54, %s4339_s9  ;;  %v1841_v49 = vsel %vm1690_vm12, %v6121_v60, %v1840_v32  ;;  %v3610_v10 = vsel %vm3596_vm10, %v3595_v61, %v3333_v6  ;;  %v7182_v58 = vperm.slane %v2113_v4, %v5189_v30  ;;  %v1816_v60 = vrot.slane %v8120_v48, 4  ;;  %v8127_v48 = vld [vmem:[#allocation116_spill] sm:$0xff] }
 0x25a   : > { %v3696_v45 = vsel %vm3566_vm6, %v3682_v51, %v3438_v19  ;;  %v3522_v8 = vpop.permute.xlu1 %3521  ;;  %v7196_v51 = vperm.slane %v1841_v49, %v5159_v42  ;;  %v2132_v32 = vrot.slane %v7116_v3, 4  ;;  %v2360_v49 = vrot.slane %v7147_v24, 4 }
 0x25b   : > { %v3710_v13 = vsel %vm3581_vm9, %v3696_v45, %v3459_v63  ;;  %v2248_v63 = vrot.slane %v7101_v22, 4  ;;  %v2023_v22 = vsel %vm1690_vm12, %v2022_v21, %v7169_v50  ;;  %v2089_v45 = vsel %vm1690_vm12, %v7015_v25, %v2088_v34  ;;  %v8124_v25 = vld [vmem:[#allocation46_spill] sm:$0xff] }
 0x25c   : > { %v3724_v0 = vsel %vm3596_vm10, %v3710_v13, %v6947_v9  ;;  %v1828_v9 = vrot.slane %v7987_v36, 4  ;;  %v2134_v29 = vrot.slane %v7182_v58, 4  ;;  %v8123_v13 = vld [vmem:[#allocation109_spill] sm:$0xff]  ;;  %v2133_v3 = vsel %vm1690_vm12, %v7075_v11, %v2132_v32 }
 0x25d   : > { %v3738_v6 = vsel %vm3611_vm13, %v3724_v0, %v3501_v53  ;;  %v2249_v43 = vsel %vm1690_vm12, %v7086_v37, %v2248_v63  ;;  %v2101_v53 = vsel %vm1690_vm12, %v8121_v12, %v2100_v5  ;;  %v1817_v57 = vsel %vm1690_vm12, %v8123_v13, %v1816_v60 }
 0x25e   : > { %v3752_v36 = vsel %vm3626_vm14, %v3738_v6, %v3522_v8  ;;  %v1829_v21 = vsel %vm1690_vm12, %v8124_v25, %v1828_v9  ;;  %v2097_v61 = vperm.slane %v2089_v45, %v5189_v30  ;;  %v1886_v4 = vrot.slane %v7196_v51, 4 }
 0x25f   : > { %3492 = vrot.lane.b32.xlu0 %v2359_v20, %s4337_s28  ;;  %3427 = vrot.lane.b32.xlu2 %v2021_v47, %s4332_s13  ;;  %v7186_v17 = vpop.permute.xlu2 %3412  ;;  %v2109_v20 = vperm.slane %v2101_v53, %v5189_v30  ;;  %v8125_v47 = vld [vmem:[#allocation47_spill] sm:$0xff]  ;;  %v1825_v41 = vperm.slane %v1817_v57, %v5159_v42  ;;  %v7228_v5 = vperm.slane %v1829_v21, %v5159_v42  ;;  %v1796_v21 = vrot.slane %v7067_v46, 4 }
 0x260   : > { %v1804_v63 = vrot.slane %v8125_v47, 4  ;;  %v2135_v0 = vsel %vm1690_vm12, %v2134_v29, %v2097_v61 }
 0x261   : > { %v3354_v16 = vpop.permute.xlu0 %3353  ;;  %3469 = vrot.lane.b32.xlu1 %v2023_v22, %s4334_s17  ;;  %v2126_v22 = vrot.slane %v2109_v20, 4  ;;  %v1887_v9 = vsel %vm1690_vm12, %v1886_v4, %v7228_v5  ;;  %v1797_v46 = vsel %vm1690_vm12, %v7039_v62, %v1796_v21  ;;  %v8132_v21 = vld [vmem:[#allocation58_spill] sm:$0xff] }
 0x262   : > { %v3625_v56 = vsel %vm3611_vm13, %v3610_v10, %v3354_v16  ;;  %v3543_v54 = vpop.permute.xlu1 %3542  ;;  %v8126_v10 = vld [vmem:[#allocation146_spill] sm:$0xff]  ;;  %v1805_v60 = vsel %vm1690_vm12, %v8127_v48, %v1804_v63  ;;  %v1893_v24 = vperm.slane %v1887_v9, %v5189_v30 }
 0x263   : > { %v3640_v15 = vsel %vm3626_vm14, %v3625_v56, %v7024_v1  ;;  %v3772_v37 = vsel %vm3641_vm0, %v3752_v36, %v3543_v54  ;;  %v2024_v54 = vrot.slane %v7169_v50, 4 }
 0x264   : > { %v3661_v19 = vsel %vm3641_vm0, %v3640_v15, %v7098_v2  ;;  %v3784_v8 = vsel %vm815_vm2, %v3772_v37, 0  ;;  %v2076_v2 = vrot.slane %v8122_v38, 4  ;;  %v1862_v15 = vrot.slane %v1825_v41, 4 }
 0x265   : > { %v3782_v1 = vsel %vm815_vm2, %v3661_v19, 0  ;;  %3800 = vmatpush.bf16.msra.mxu1 %v3784_v8  ;;  %v1813_v19 = vperm.slane %v1805_v60, %v5159_v42  ;;  %v2025_v53 = vsel %vm1690_vm12, %v7141_v40, %v2024_v54  ;;  %v8128_v42 = vld [vmem:[#allocation15_spill] sm:$0xff]  ;;  %v1776_v40 = vrot.slane %v7008_v59, 4 }
 0x266   : > { %3787 = vmatpush.bf16.msra.mxu0 %v3782_v1  ;;  %v2077_v16 = vsel %vm1690_vm12, %v8126_v10, %v2076_v2  ;;  %v1906_v1 = vrot.slane %v1893_v24, 4  ;;  %v2016_v29 = vrot.slane %v8128_v42, 4  ;;  %v8129_v8 = vld [vmem:[#allocation143_spill] sm:$0xff]  ;;  %v2136_v2 = vrot.slane %v2097_v61, 4 }
 0x267   : > { %3513 = vrot.lane.b32.xlu0 %v2249_v43, %s4338_s30  ;;  %3448 = vrot.lane.b32.xlu2 %v2133_v3, %s4335_s27  ;;  %v7230_v11 = vpop.permute.xlu2 %3433  ;;  %v2085_v6 = vperm.slane %v2077_v16, %v5189_v30  ;;  %v2361_v43 = vsel %vm1690_vm12, %v7132_v14, %v2360_v49  ;;  %v1863_v12 = vsel %vm1690_vm12, %v1862_v15, %v1813_v19  ;;  %v1864_v3 = vrot.slane %v1813_v19, 4  ;;  %v8130_v49 = vld [vmem:[#allocation117_spill] sm:$0xff] }
 0x268   : > { %v1869_v32 = vperm.slane %v1863_v12, %v5189_v30  ;;  %v2017_v38 = vsel %vm1690_vm12, %v8129_v8, %v2016_v29  ;;  %v2137_v57 = vsel %vm1690_vm12, %v7182_v58, %v2136_v2  ;;  %v1777_v63 = vsel %vm1690_vm12, %v6992_v39, %v1776_v40 }
 0x269   : > { %v7223_v34 = vpop.permute.xlu0 %3414  ;;  %3490 = vrot.lane.b32.xlu1 %v2135_v0, %s4337_s28  ;;  %v2127_v36 = vsel %vm1690_vm12, %v2126_v22, %v2085_v6  ;;  %v2128_v59 = vrot.slane %v2085_v6, 4  ;;  %v1792_v58 = vrot.slane %v8130_v49, 4  ;;  %v1752_v10 = vrot.slane %v7018_v31, 4 }
 0x26a   : > { %v3352_v56 = vpop.permute.xlu1 %3351  ;;  %v1907_v50 = vsel %vm1690_vm12, %v1906_v1, %v1869_v32  ;;  %v1865_v16 = vsel %vm1690_vm12, %v1825_v41, %v1864_v3  ;;  %v1785_v22 = vperm.slane %v1777_v63, %v5189_v30  ;;  %v1888_v39 = vrot.slane %v7228_v5, 4  ;;  %v8133_v3 = vld [vmem:[#allocation25_spill] sm:$0xff] }
 0x26b   : > { %v3623_v4 = vsel %vm3611_vm13, %v7110_v35, %v3352_v56  ;;  %v2129_v35 = vsel %vm1690_vm12, %v2109_v20, %v2128_v59  ;;  %v8131_v56 = vld [vmem:[#allocation118_spill] sm:$0xff]  ;;  %v1873_v62 = vperm.slane %v1865_v16, %v5189_v30  ;;  %v1908_v31 = vrot.slane %v1869_v32, 4 }
 0x26c   : > { %v1793_v48 = vsel %vm1690_vm12, %v8131_v56, %v1792_v58  ;;  %v1753_v41 = vsel %vm1690_vm12, %v6971_v26, %v1752_v10  ;;  %v1798_v20 = vrot.slane %v1785_v22, 4  ;;  %v1889_v6 = vsel %vm1690_vm12, %v7196_v51, %v1888_v39 }
 0x26d   : > { %v2914_v15 = vrot.slane %v6477_v18, 4  ;;  %v1909_v19 = vsel %vm1690_vm12, %v1893_v24, %v1908_v31  ;;  %v1897_v54 = vperm.slane %v1889_v6, %v5189_v30  ;;  %vm3778_vm2 = vcmask 883712  }
 0x26f   : > { %3534 = vrot.lane.b32.xlu0 %v2361_v43, %s4339_s9  ;;  %3343 = vrot.lane.b32.xlu2 %v2127_v36, %s4337_s28  ;;  %v7254_v14 = vpop.permute.xlu2 %3454  ;;  %v1761_v43 = vperm.slane %v1753_v41, %v5189_v30  ;;  %v1912_v36 = vrot.slane %v1873_v62, 4  ;;  %v2915_v26 = vsel %vm1690_vm12, %v2914_v15, %v6442_v28  ;;  %v1910_v32 = vrot.slane %v1897_v54, 4  ;;  %v8134_v15 = vld [vmem:[#allocation40_spill] sm:$0xff] }
 0x270   : > { %v3679_v24 = vsel %vm3544_vm11, %v2915_v26, %v7223_v34 }
 0x271   : > { %v7249_v45 = vpop.permute.xlu0 %3435  ;;  %3511 = vrot.lane.b32.xlu1 %v2025_v53, %s4338_s30  ;;  %v1799_v12 = vsel %vm1690_vm12, %v1798_v20, %v1761_v43  ;;  %v1913_v53 = vsel %vm1690_vm12, %v1897_v54, %v1912_v36  ;;  %v1800_v42 = vrot.slane %v1761_v43, 4 }
 0x272   : > { %v3373_v37 = vpop.permute.xlu1 %3372 }
 0x273   : > { %v3638_v47 = vsel %vm3626_vm14, %v3623_v4, %v3373_v37  ;;  %v3694_v37 = vsel %vm3566_vm6, %v3679_v24, %v7249_v45  ;;  %v1801_v8 = vsel %vm1690_vm12, %v1785_v22, %v1800_v42  ;;  %v3676_v4 = vsel %vm3544_vm11, %v8133_v3, %v7186_v17 }
 0x274   : > { %v3708_v29 = vsel %vm3581_vm9, %v3694_v37, %v7144_v7  ;;  %v1904_v7 = vrot.slane %v6208_v55, 4 }
 0x277   : > { %3404 = vrot.lane.b32.xlu0 %v1907_v50, %s4333_s16  ;;  %3364 = vrot.lane.b32.xlu2 %v2017_v38, %s4338_s30  ;;  %v3350_v25 = vpop.permute.xlu2 %3349  ;;  %v1911_v50 = vsel %vm1690_vm12, %v1910_v32, %v1873_v62  ;;  %s553_s16 = scalar_lea.vmem [#allocation6], %s4053_s18 }
 0x278   : > { %v3621_v51 = vsel %vm3611_vm13, %v6909_v33, %v3350_v25 }
 0x279   : > { %v3478_v13 = vpop.permute.xlu0 %3477  ;;  %3532 = vrot.lane.b32.xlu1 %v2137_v57, %s4339_s9 }
 0x27a   : > { %v3394_v61 = vpop.permute.xlu1 %3393  ;;  %v3722_v34 = vsel %vm3596_vm10, %v3708_v29, %v3478_v13  ;;  %v1905_v13 = vsel %vm1690_vm12, %v8132_v21, %v1904_v7 }
 0x27b   : > { %v3658_v0 = vsel %vm3641_vm0, %v3638_v47, %v3394_v61  ;;  %v3692_v47 = vsel %vm3566_vm6, %v3676_v4, %v7230_v11 }
 0x27c   : > { %3788 = vmatpush.bf16.msra.mxu0 %v3658_v0  ;;  %v3706_v61 = vsel %vm3581_vm9, %v3692_v47, %v7254_v14 }
 0x27f   : > { %3425 = vrot.lane.b32.xlu0 %v1797_v46, %s4332_s13  ;;  %3385 = vrot.lane.b32.xlu2 %v2129_v35, %s4339_s9  ;;  %v3371_v60 = vpop.permute.xlu2 %3370  ;;  %s3828_s13 = scalar_lea.hbm %s7436_s6, %s4089_s19 }
 0x280   : > { %v3636_v30 = vsel %vm3626_vm14, %v3621_v51, %v3371_v60 }
 0x281   : > { %v3499_v9 = vpop.permute.xlu0 %3498  ;;  %3362 = vrot.lane.b32.xlu1 %v1793_v48, %s4338_s30 }
 0x282   : > { %v3476_v5 = vpop.permute.xlu1 %3475  ;;  %v3736_v38 = vsel %vm3611_vm13, %v3722_v34, %v3499_v9  ;;  %v8138_v34 = vld [vmem:[#allocation28_spill] sm:$0xff] }
 0x283   : > { %v3720_v55 = vsel %vm3596_vm10, %v3706_v61, %v3476_v5 }
 0x287   : > { %3446 = vrot.lane.b32.xlu0 %v1909_v19, %s4335_s27  ;;  %3467 = vrot.lane.b32.xlu2 %v1799_v12, %s4334_s17  ;;  %v3392_v1 = vpop.permute.xlu2 %3391  ;;  %s3830_s17 = sshll.u32 %s553_s16, 4  ;;  %s3832_s27 = sshll.u32 %s3828_s13, 4  ;;  %s3831_s17 = int_to_ptr.vmem [resolvable:$true] %s3830_s17  ;;  %s3833_s27 = int_to_ptr.hbm [resolvable:$true] %s3832_s27 }
 0x288   : > { %v3655_v28 = vsel %vm3641_vm0, %v3636_v30, %v3392_v1 }
 0x289   : > { %v3520_v18 = vpop.permute.xlu0 %3519  ;;  %3530 = vrot.lane.b32.xlu1 %v1913_v53, %s4339_s9  ;;  %3789 = vmatpush.bf16.msra.mxu0 %v3655_v28  ;;  %v8136_v53 = vld [vmem:[#allocation106_spill] sm:$0xff] }
 0x28a   : > { %v3497_v33 = vpop.permute.xlu1 %3496  ;;  %v3750_v45 = vsel %vm3626_vm14, %v3736_v38, %v3520_v18  ;;  %v8135_v18 = vld [vmem:[#allocation105_spill] sm:$0xff] }
 0x28b   : > { %v3734_v0 = vsel %vm3611_vm13, %v3720_v55, %v3497_v33  ;;  %v3602_v24 = vsel %vm3596_vm10, %v8136_v53, %v8135_v18 }
 0x28f   : > { %3488 = vrot.lane.b32.xlu0 %v1911_v50, %s4337_s28  ;;  %3509 = vrot.lane.b32.xlu2 %v1801_v8, %s4338_s30  ;;  %v3474_v57 = vpop.permute.xlu2 %3473  ;;  %v8137_v50 = vld [vmem:[#allocation63_spill] sm:$0xff]  ;;  %s3815_s28 = scalar_lea.sflag [#allocation3], %s4467_s7  ;;  %s4237_s30 = sshra.s32 %s3833_s27, 4  ;;  %s4238_s30 = int_to_ptr.hbm [resolvable:$true] %s4237_s30 }
 0x290   : > { %v3600_v8 = vsel %vm3596_vm10, %v8138_v34, %v8137_v50  ;;  %p4244_p9 = scmp.lt.s32.totalorder %s4238_s30, %s7436_s6 }
 0x291   : > { %v3541_v2 = vpop.permute.xlu0 %3540 }
 0x292   : > { %v3769_v40 = vsel %vm3641_vm0, %v3750_v45, %v3541_v2  ;;  %v3518_v25 = vpop.permute.xlu1 %3517 }
 0x293   : > { %3801 = vmatpush.bf16.msra.mxu1 %v3769_v40  ;;  %v3748_v49 = vsel %vm3626_vm14, %v3734_v0, %v3518_v25 }
 0x297   : > { %3383 = vrot.lane.b32.xlu0 %v1905_v13, %s4339_s9  ;;  %s4239_s9 = scalar_lea.hbm %s4238_s30, 16 }
 0x298   : > { %v3495_v59 = vpop.permute.xlu2 %3494  ;;  %p4240_p6 = scmp.ne.s32.totalorder %s4238_s30, %s4239_s9  ;;  %p4245_p10 = scmp.lt.s32.totalorder %s4243_s15, %s4239_s9 }
 0x299   : > { %v3411_v63 = vpop.permute.xlu0 %3410 }
 0x29a   : > { %v3539_v58 = vpop.permute.xlu1 %3538  ;;  %v3673_v11 = vsel %vm3544_vm11, %v7049_v23, %v3411_v63  ;;  %p4241_p7 = pnand %p4240_p6, %p4418_p5  ;;  %p4246_p12 = por %p4245_p10, %p4244_p9 }
 0x29b   : > { %v3766_v46 = vsel %vm3641_vm0, %v3748_v49, %v3539_v58 }
 0x29c   : > { %3802 = vmatpush.bf16.msra.mxu1 %v3766_v46  ;;  %p4242_p8 = pneg %p4241_p7 }
 0x29e   : > { %p4247_p13 = pnand %p4246_p12, %p4242_p8 }
 0x2a0   : > { %v3516_v10 = vpop.permute.xlu2 %3515 }
 0x2a1   : > { %v3432_v17 = vpop.permute.xlu0 %3431 }
 0x2a2   : > { %v3409_v16 = vpop.permute.xlu1 %3408  ;;  %v3690_v14 = vsel %vm3566_vm6, %v3673_v11, %v3432_v17 }
 0x2a3   : > { %v3670_v7 = vsel %vm3544_vm11, %v7079_v44, %v3409_v16 }
 0x2a9   : > { %v3453_v35 = vpop.permute.xlu0 %3452  ;;  %v3537_v39 = vpop.permute.xlu2 %3536 }
 0x2aa   : > { %v3704_v22 = vsel %vm3581_vm9, %v3690_v14, %v3453_v35  ;;  %v3430_v48 = vpop.permute.xlu1 %3429 }
 0x2ab   : > { %v3718_v9 = vsel %vm3596_vm10, %v3704_v22, %v3474_v57  ;;  %v3688_v21 = vsel %vm3566_vm6, %v3670_v7, %v3430_v48 }
 0x2ac   : > { %v3732_v56 = vsel %vm3611_vm13, %v3718_v9, %v3495_v59 }
 0x2ad   : > { %v3746_v62 = vsel %vm3626_vm14, %v3732_v56, %v3516_v10 }
 0x2ae   : > { %v3763_v60 = vsel %vm3641_vm0, %v3746_v62, %v3537_v39 }
 0x2af   : > { %3803 = vmatpush.bf16.msra.mxu1 %v3763_v60 }
 0x2b1   : > { %v3348_v31 = vpop.permute.xlu0 %3347  ;;  %v3407_v41 = vpop.permute.xlu2 %3406 }
 0x2b2   : > { %v3451_v20 = vpop.permute.xlu1 %3450  ;;  %v3619_v43 = vsel %vm3611_vm13, %v8134_v15, %v3348_v31  ;;  %v3667_v44 = vsel %vm3544_vm11, %v7082_v52, %v3407_v41 }
 0x2b3   : > { %v3702_v13 = vsel %vm3581_vm9, %v3688_v21, %v3451_v20 }
 0x2b9   : > { %v3369_v23 = vpop.permute.xlu0 %3368  ;;  %v3428_v6 = vpop.permute.xlu2 %3427 }
 0x2ba   : > { %v3346_v5 = vpop.permute.xlu1 %3345  ;;  %v3634_v36 = vsel %vm3626_vm14, %v3619_v43, %v3369_v23  ;;  %v3686_v59 = vsel %vm3566_vm6, %v3667_v44, %v3428_v6  ;;  %v8139_v23 = vld [vmem:[#allocation24_spill] sm:$0xff] }
 0x2bb   : > { %v3617_v1 = vsel %vm3611_vm13, %v3602_v24, %v3346_v5 }
 0x2c1   : > { %v3390_v19 = vpop.permute.xlu0 %3389  ;;  %v3449_v12 = vpop.permute.xlu2 %3448 }
 0x2c2   : > { %v3652_v54 = vsel %vm3641_vm0, %v3634_v36, %v3390_v19  ;;  %v3700_v0 = vsel %vm3581_vm9, %v3686_v59, %v3449_v12 }
 0x2c3   : > { %3790 = vmatpush.bf16.msra.mxu0 %v3652_v54  ;;  %v3367_v26 = vpop.permute.xlu1 %3366 }
 0x2c4   : > { %v3632_v32 = vsel %vm3626_vm14, %v3617_v1, %v3367_v26 }
 0x2c9   : > { %v3472_v51 = vpop.permute.xlu0 %3471  ;;  %v3344_v30 = vpop.permute.xlu2 %3343 }
 0x2ca   : > { %v3615_v38 = vsel %vm3611_vm13, %v3600_v8, %v3344_v30  ;;  %v3716_v3 = vsel %vm3596_vm10, %v3702_v13, %v3472_v51 }
 0x2cb   : > { %v3388_v37 = vpop.permute.xlu1 %3387 }
 0x2cc   : > { %v3649_v28 = vsel %vm3641_vm0, %v3632_v32, %v3388_v37 }
 0x2cd   : > { %3791 = vmatpush.bf16.msra.mxu0 %v3649_v28 }
 0x2d1   : > { %v3493_v42 = vpop.permute.xlu0 %3492  ;;  %v3365_v33 = vpop.permute.xlu2 %3364 }
 0x2d2   : > { %v3630_v2 = vsel %vm3626_vm14, %v3615_v38, %v3365_v33  ;;  %v3730_v4 = vsel %vm3611_vm13, %v3716_v3, %v3493_v42 }
 0x2d3   : > { %v3470_v29 = vpop.permute.xlu1 %3469 }
 0x2d4   : > { %v3714_v58 = vsel %vm3596_vm10, %v3700_v0, %v3470_v29 }
 0x2d9   : > { %v3514_v45 = vpop.permute.xlu0 %3513  ;;  %v3386_v40 = vpop.permute.xlu2 %3385 }
 0x2da   : > { %v3646_v57 = vsel %vm3641_vm0, %v3630_v2, %v3386_v40  ;;  %v3744_v47 = vsel %vm3626_vm14, %v3730_v4, %v3514_v45 }
 0x2db   : > { %3792 = vmatpush.bf16.msra.mxu0 %v3646_v57  ;;  %v3491_v25 = vpop.permute.xlu1 %3490 }
 0x2dc   : > { %v3728_v46 = vsel %vm3611_vm13, %v3714_v58, %v3491_v25 }
 0x2e1   : > { %v3535_v61 = vpop.permute.xlu0 %3534  ;;  %v3468_v35 = vpop.permute.xlu2 %3467 }
 0x2e2   : > { %v3760_v63 = vsel %vm3641_vm0, %v3744_v47, %v3535_v61 }
 0x2e3   : > { %3804 = vmatpush.bf16.msra.mxu1 %v3760_v63  ;;  %v3512_v55 = vpop.permute.xlu1 %3511 }
 0x2e4   : > { %v3742_v17 = vsel %vm3626_vm14, %v3728_v46, %v3512_v55 }
 0x2e9   : > { %v3405_v49 = vpop.permute.xlu0 %3404  ;;  %v3510_v60 = vpop.permute.xlu2 %3509 }
 0x2ea   : > { %v3664_v52 = vsel %vm3544_vm11, %v7093_v27, %v3405_v49  ;;  %v4088_v27 = vld [vmem:[%s7435_s5] sm:$0xff] }
 0x2eb   : > { %v3533_v10 = vpop.permute.xlu1 %3532 }
 0x2ec   : > { %v3757_v16 = vsel %vm3641_vm0, %v3742_v17, %v3533_v10 }
 0x2ed   : > { %3805 = vmatpush.bf16.msra.mxu1 %v3757_v16 }
 0x2f1   : > { %v3426_v11 = vpop.permute.xlu0 %3425 }
 0x2f2   : > { %v3684_v39 = vsel %vm3566_vm6, %v3664_v52, %v3426_v11 }
 0x2f3   : > { %v3363_v14 = vpop.permute.xlu1 %3362 }
 0x2f4   : > { %v3628_v6 = vsel %vm3626_vm14, %v8139_v23, %v3363_v14 }
 0x2f9   : > { %v3447_v22 = vpop.permute.xlu0 %3446 }
 0x2fa   : > { %v3698_v9 = vsel %vm3581_vm9, %v3684_v39, %v3447_v22 }
 0x2fb   : > { %v3712_v56 = vsel %vm3596_vm10, %v3698_v9, %v3468_v35  ;;  %v3531_v62 = vpop.permute.xlu1 %3530 }
 0x301   : > { %v3489_v48 = vpop.permute.xlu0 %3488 }
 0x302   : > { %v3726_v31 = vsel %vm3611_vm13, %v3712_v56, %v3489_v48 }
 0x303   : > { %v3740_v41 = vsel %vm3626_vm14, %v3726_v31, %v3510_v60 }
 0x304   : > { %v3754_v20 = vsel %vm3641_vm0, %v3740_v41, %v3531_v62 }
 0x305   : > { %3806 = vmatpush.bf16.msra.mxu1 %v3754_v20 }
 0x308   : > { %4078 = vmatmul.msk.bf16.vlgmr.msra.gmra.mxu1 %vm3778_vm2, %v4088_v27 }
 0x309   : > { %v3384_v5 = vpop.permute.xlu0 %3383 }
 0x30a   : > { %v3643_v15 = vsel %vm3641_vm0, %v3628_v6, %v3384_v5 }
 0x30b   : > { %3793 = vmatpush.bf16.msra.mxu0 %v3643_v15 }
 0x30e   : > { %4077 = vmatmul.msk.bf16.vlgmr.msra.gmra.mxu0 %vm3778_vm2, %v4088_v27 }
 0x385   : > { %v3808_v43 = vpop.f32.mrf.mxu1 }
 0x386   : > { %3813 = vst [vmem:[%s553_s16 + $0x8] sm:$0xff] %v3808_v43 }
 0x38b   : > { %v3795_v36 = vpop.f32.mrf.mxu0 }
 0x38c   : > { %3812 = vst [vmem:[%s553_s16] sm:$0xff] %v3795_v36 }
 0x38d   : > { %v3810_v19 = vpop.f32.mrf.mxu1 }
 0x38e   : > { %4250 = shalt.err (!%p4247_p13)
}
 0x38f   : > { %4096 = dma.vmem_to_hbm [thread:$0]  (%p4418_p5), %s3831_s17, 256, %s3833_s27, %s3815_s28  }
 0x393   : > { %v3797_v54 = vpop.f32.mrf.mxu0 }
 0x394 PF: > { %s3844_s7 = sand.u32 1, %s4301_s21   ;;  %p4103_p0 = pnand %p4039_p2, %p4431_p11 }
 0x395   : > { %s3845_s20 = scalar_lea.sflag [#allocation3], %s3844_s7 }
 0x396   : > { %p4104_p1 = pneg %p4103_p0 }
 0x398   : > { %4296 = dma.done.wait (%p4104_p1), %s3845_s20, 256  }
 0x399   : > { %4298 = vsyncadd (%p4104_p1), %s3845_s20, 4294967040  ;;  %s20_s26 = sadd.s32 1, %s4321_s26   ;;  %s8140_s21 = smov %s4305_s22 }
 0x39a   : > { %p17_p3 = scmp.ge.s32.totalorder %s20_s26, 4   ;;  %s8141_s22 = smov %s4309_s23 }
 0x39b   : > { %s8142_s23 = smov %s4429_s10  ;;  %s8143_s24 = smov %s4317_s25 }
 0x39c   : > { %s8144_s25 = smov %s8146_s29  ;;  %19 = sbr.rel (!%p17_p3) target bundleno = 5 (0x5), region = 196 }
 0x3a1   :  { %3851 = vsyncpa [#allocation3], 1 }
 0x3a2   :  { %3853 = vsyncpa [#allocation3 + $0x1], 1 }
 0x3a3   :  { %3854 = vsyncpa [#allocation4], 1 }
 0x3a4   :  { %3856 = vsyncpa [#allocation4 + $0x1], 1 }

</bundles_post_ra>
